<compile_context>
chip_gen: v6e
topology: v6e:2x2x1
jax: 0.10.0
libtpu: 0.0.40
codegen_flags: <defaults>
</compile_context>

<pallas_src>
import jax
import jax.numpy as jnp
from jax import lax
from jax.experimental import pallas as pl
from jax.experimental.pallas import tpu as pltpu


def conv2d_block(x, weight, bias, *, stride=1, padding=0,
                 channels_last_out=False):
    """Conv2dBlock forward: ZeroPad2d -> Conv2d(bias) -> ReLU.

    x:      (N, C, H, W)    float32 (NCHW, PyTorch convention)
    weight: (OC, C, KH, KW) float32 (PyTorch Conv2d layout)
    bias:   (OC,)           float32
    """
    N, C, H, W = x.shape
    OC, Cw, KH, KW = weight.shape
    assert Cw == C, (Cw, C)

    Hp, Wp = H + 2 * padding, W + 2 * padding
    OH = (Hp - KH) // stride + 1
    OW = (Wp - KW) // stride + 1
    OCp = ((OC + 127) // 128) * 128            # lane-dense output channels

    # --- wrapper-side layout prep (cheap XLA glue, no KH*KW replication) ---
    x_nhwc = jnp.transpose(x, (0, 2, 3, 1))                       # (N, H, W, C)
    x_pad = jnp.pad(x_nhwc,
                    ((0, 0), (padding, padding), (padding, padding), (0, 0)))
    x_pad = x_pad.astype(jnp.float32)                             # (N, Hp, Wp, C)

    # (OC, C, KH, KW) -> (KH*KW, C, OCp), bf16 for the MXU
    w_mat = jnp.transpose(weight, (2, 3, 1, 0)).reshape(KH * KW, C, OC)
    w_mat = jnp.pad(w_mat, ((0, 0), (0, 0), (0, OCp - OC))).astype(jnp.bfloat16)
    b_mat = jnp.pad(bias.reshape(1, OC).astype(jnp.float32),
                    ((0, 0), (0, OCp - OC)))                      # (1, OCp) f32

    def kernel(x_ref, w_ref, b_ref, o_ref):
        # x_ref: (Hp, Wp, C) f32   w_ref: (KH*KW, C, OCp) bf16
        # b_ref: (1, OCp) f32      o_ref: (OH, OW, OCp) f32
        acc = jnp.zeros((OH, OW, OCp), jnp.float32)
        for kh in range(KH):
            for kw in range(KW):
                if stride == 1:
                    slab = x_ref[kh:kh + OH, kw:kw + OW, :]
                else:
                    slab = x_ref[pl.ds(kh, OH, stride=stride),
                                 pl.ds(kw, OW, stride=stride), :]
                slab = slab.astype(jnp.bfloat16)                 # bf16 MXU feed
                wk = jnp.broadcast_to(w_ref[kh * KW + kw], (OH, C, OCp))
                # batched (over output rows) matmul, f32 accumulate on the MXU
                acc = acc + jnp.einsum('hwc,hco->hwo', slab, wk,
                                       preferred_element_type=jnp.float32)
        y = jnp.maximum(acc + b_ref[...], 0.0)                   # bias + ReLU (f32)
        o_ref[...] = y.astype(o_ref.dtype)

    flops = 2 * N * OH * OW * KH * KW * C * OCp
    bytes_accessed = (N * Hp * Wp * C * 4          # activations in
                      + KH * KW * C * OCp * 2      # weights (bf16)
                      + OCp * 4                    # bias
                      + N * OH * OW * OCp * 4)     # output

    out = pl.pallas_call(
        kernel,
        out_shape=jax.ShapeDtypeStruct((N, OH, OW, OCp), jnp.float32),
        grid_spec=pltpu.PrefetchScalarGridSpec(
            num_scalar_prefetch=0,
            grid=(N,),
            in_specs=[
                # one full padded sample per step (halo included for free)
                pl.BlockSpec((None, Hp, Wp, C), lambda n: (n, 0, 0, 0)),
                # full weight / bias resident across the grid
                pl.BlockSpec((KH * KW, C, OCp), lambda n: (0, 0, 0)),
                pl.BlockSpec((1, OCp), lambda n: (0, 0)),
            ],
            out_specs=pl.BlockSpec((None, OH, OW, OCp), lambda n: (n, 0, 0, 0)),
        ),
        compiler_params=pltpu.CompilerParams(
            dimension_semantics=("parallel",),
            vmem_limit_bytes=32 * 1024 * 1024,
        ),
        cost_estimate=pl.CostEstimate(flops=flops, transcendentals=0,
                                      bytes_accessed=bytes_accessed),
    )(x_pad, w_mat, b_mat)

    out = out[..., :OC]                            # drop OC padding
    if channels_last_out:
        return out                                 # NHWC (preferred for chaining)
    # NHWC -> NCHW to match the PyTorch module's output layout.
    return jnp.transpose(out, (0, 3, 1, 2))


if __name__ == "__main__":
    key = jax.random.PRNGKey(0)
    k_x, k_w, k_b = jax.random.split(key, 3)

    # Conv2dBlock(input_dim=4, output_dim=8, kernel_size=3, stride=1, padding=1)
    N, C, H, W = 2, 4, 16, 16
    OC, KH, KW = 8, 3, 3
    stride, padding = 1, 1

    x = jax.random.normal(k_x, (N, C, H, W), dtype=jnp.float32)
    weight = jax.random.normal(k_w, (OC, C, KH, KW), dtype=jnp.float32) * 0.1
    bias = jax.random.uniform(k_b, (OC,), dtype=jnp.float32, minval=-0.1, maxval=0.1)

    y = conv2d_block(x, weight, bias, stride=stride, padding=padding)
    y = jax.block_until_ready(y)

    # Reference: same bf16-rounded operands, f32 conv + bias + ReLU.
    xb = x.astype(jnp.bfloat16).astype(jnp.float32)
    wb = weight.astype(jnp.bfloat16).astype(jnp.float32)
    ref = lax.conv_general_dilated(
        xb, wb, window_strides=(stride, stride),
        padding=((padding, padding), (padding, padding)),
        dimension_numbers=("NCHW", "OIHW", "NCHW"),
        precision=lax.Precision.HIGHEST)
    ref = jnp.maximum(ref + bias.reshape(1, OC, 1, 1), 0.0)

    assert y.shape == (N, OC, H, W), y.shape
    err = float(jnp.max(jnp.abs(y - ref)))
    assert jnp.allclose(y, ref, atol=1e-3, rtol=1e-3), err

    print("KERNEL_OK")
</pallas_src>

<mosaic_0001>
module attributes {stable_mosaic.version = 11 : i64} {
  func.func @kernel(%arg0: i32, %arg1: memref<1x18x18x4xf32, #tpu.memory_space<vmem>>, %arg2: memref<9x4x128xbf16, #tpu.memory_space<vmem>>, %arg3: memref<1x128xf32, #tpu.memory_space<vmem>>, %arg4: memref<1x16x16x128xf32, #tpu.memory_space<vmem>>) attributes {dimension_semantics = [#tpu.dimension_semantics<parallel>], iteration_bounds = array<i64: 2>, scalar_prefetch = 0 : i64, scratch_operands = 0 : i64, tpu.core_type = #tpu.core_type<tc>, window_params = [{transform_indices = @transform_0, window_bounds = array<i64: 1, 18, 18, 4>}, {pipeline_mode = #tpu.pipeline_mode<synchronous>, transform_indices = @transform_1, window_bounds = array<i64: 9, 4, 128>}, {pipeline_mode = #tpu.pipeline_mode<synchronous>, transform_indices = @transform_2, window_bounds = array<i64: 1, 128>}, {transform_indices = @transform_3, window_bounds = array<i64: 1, 16, 16, 128>}]} {
    %cst = arith.constant 0.000000e+00 : f32
    %0 = vector.broadcast %cst : f32 to vector<16x16x128xf32>
    %c0 = arith.constant 0 : index
    %c0_0 = arith.constant 0 : index
    %c0_1 = arith.constant 0 : index
    %c0_2 = arith.constant 0 : index
    %1 = vector.load %arg1[%c0, %c0_0, %c0_1, %c0_2] : memref<1x18x18x4xf32, #tpu.memory_space<vmem>>, vector<1x16x16x4xf32>
    %2 = vector.shape_cast %1 : vector<1x16x16x4xf32> to vector<16x16x4xf32>
    %3 = arith.truncf %2 : vector<16x16x4xf32> to vector<16x16x4xbf16>
    %c0_3 = arith.constant 0 : index
    %c0_4 = arith.constant 0 : index
    %c0_5 = arith.constant 0 : index
    %4 = vector.load %arg2[%c0_3, %c0_4, %c0_5] : memref<9x4x128xbf16, #tpu.memory_space<vmem>>, vector<1x4x128xbf16>
    %5 = vector.shape_cast %4 : vector<1x4x128xbf16> to vector<4x128xbf16>
    %6 = vector.shape_cast %5 : vector<4x128xbf16> to vector<1x4x128xbf16>
    %7 = vector.broadcast %6 : vector<1x4x128xbf16> to vector<16x4x128xbf16>
    "tpu.trace_start"() <{level = 10 : i32, message = "hwc,hco->hwo"}> : () -> ()
    %cst_6 = arith.constant dense<0.000000e+00> : vector<16x16x128xf32>
    %8 = tpu.matmul %3, %7, %cst_6 {dimension_numbers = #tpu.dot_dimension_numbers<[2], [1], [1], [2], [0, 0, 0, 1, 1, 2], [0], [0]>} : vector<16x16x4xbf16>, vector<16x4x128xbf16>, vector<16x16x128xf32> -> vector<16x16x128xf32>
    "tpu.trace_stop"() : () -> ()
    %9 = arith.addf %0, %8 : vector<16x16x128xf32>
    %c0_7 = arith.constant 0 : index
    %c0_8 = arith.constant 0 : index
    %c1 = arith.constant 1 : index
    %c0_9 = arith.constant 0 : index
    %10 = vector.load %arg1[%c0_7, %c0_8, %c1, %c0_9] : memref<1x18x18x4xf32, #tpu.memory_space<vmem>>, vector<1x16x16x4xf32>
    %11 = vector.shape_cast %10 : vector<1x16x16x4xf32> to vector<16x16x4xf32>
    %12 = arith.truncf %11 : vector<16x16x4xf32> to vector<16x16x4xbf16>
    %c1_10 = arith.constant 1 : index
    %c0_11 = arith.constant 0 : index
    %c0_12 = arith.constant 0 : index
    %13 = vector.load %arg2[%c1_10, %c0_11, %c0_12] : memref<9x4x128xbf16, #tpu.memory_space<vmem>>, vector<1x4x128xbf16>
    %14 = vector.shape_cast %13 : vector<1x4x128xbf16> to vector<4x128xbf16>
    %15 = vector.shape_cast %14 : vector<4x128xbf16> to vector<1x4x128xbf16>
    %16 = vector.broadcast %15 : vector<1x4x128xbf16> to vector<16x4x128xbf16>
    "tpu.trace_start"() <{level = 10 : i32, message = "hwc,hco->hwo"}> : () -> ()
    %cst_13 = arith.constant dense<0.000000e+00> : vector<16x16x128xf32>
    %17 = tpu.matmul %12, %16, %cst_13 {dimension_numbers = #tpu.dot_dimension_numbers<[2], [1], [1], [2], [0, 0, 0, 1, 1, 2], [0], [0]>} : vector<16x16x4xbf16>, vector<16x4x128xbf16>, vector<16x16x128xf32> -> vector<16x16x128xf32>
    "tpu.trace_stop"() : () -> ()
    %18 = arith.addf %9, %17 : vector<16x16x128xf32>
    %c0_14 = arith.constant 0 : index
    %c0_15 = arith.constant 0 : index
    %c2 = arith.constant 2 : index
    %c0_16 = arith.constant 0 : index
    %19 = vector.load %arg1[%c0_14, %c0_15, %c2, %c0_16] : memref<1x18x18x4xf32, #tpu.memory_space<vmem>>, vector<1x16x16x4xf32>
    %20 = vector.shape_cast %19 : vector<1x16x16x4xf32> to vector<16x16x4xf32>
    %21 = arith.truncf %20 : vector<16x16x4xf32> to vector<16x16x4xbf16>
    %c2_17 = arith.constant 2 : index
    %c0_18 = arith.constant 0 : index
    %c0_19 = arith.constant 0 : index
    %22 = vector.load %arg2[%c2_17, %c0_18, %c0_19] : memref<9x4x128xbf16, #tpu.memory_space<vmem>>, vector<1x4x128xbf16>
    %23 = vector.shape_cast %22 : vector<1x4x128xbf16> to vector<4x128xbf16>
    %24 = vector.shape_cast %23 : vector<4x128xbf16> to vector<1x4x128xbf16>
    %25 = vector.broadcast %24 : vector<1x4x128xbf16> to vector<16x4x128xbf16>
    "tpu.trace_start"() <{level = 10 : i32, message = "hwc,hco->hwo"}> : () -> ()
    %cst_20 = arith.constant dense<0.000000e+00> : vector<16x16x128xf32>
    %26 = tpu.matmul %21, %25, %cst_20 {dimension_numbers = #tpu.dot_dimension_numbers<[2], [1], [1], [2], [0, 0, 0, 1, 1, 2], [0], [0]>} : vector<16x16x4xbf16>, vector<16x4x128xbf16>, vector<16x16x128xf32> -> vector<16x16x128xf32>
    "tpu.trace_stop"() : () -> ()
    %27 = arith.addf %18, %26 : vector<16x16x128xf32>
    %c0_21 = arith.constant 0 : index
    %c1_22 = arith.constant 1 : index
    %c0_23 = arith.constant 0 : index
    %c0_24 = arith.constant 0 : index
    %28 = vector.load %arg1[%c0_21, %c1_22, %c0_23, %c0_24] : memref<1x18x18x4xf32, #tpu.memory_space<vmem>>, vector<1x16x16x4xf32>
    %29 = vector.shape_cast %28 : vector<1x16x16x4xf32> to vector<16x16x4xf32>
    %30 = arith.truncf %29 : vector<16x16x4xf32> to vector<16x16x4xbf16>
    %c3 = arith.constant 3 : index
    %c0_25 = arith.constant 0 : index
    %c0_26 = arith.constant 0 : index
    %31 = vector.load %arg2[%c3, %c0_25, %c0_26] : memref<9x4x128xbf16, #tpu.memory_space<vmem>>, vector<1x4x128xbf16>
    %32 = vector.shape_cast %31 : vector<1x4x128xbf16> to vector<4x128xbf16>
    %33 = vector.shape_cast %32 : vector<4x128xbf16> to vector<1x4x128xbf16>
    %34 = vector.broadcast %33 : vector<1x4x128xbf16> to vector<16x4x128xbf16>
    "tpu.trace_start"() <{level = 10 : i32, message = "hwc,hco->hwo"}> : () -> ()
    %cst_27 = arith.constant dense<0.000000e+00> : vector<16x16x128xf32>
    %35 = tpu.matmul %30, %34, %cst_27 {dimension_numbers = #tpu.dot_dimension_numbers<[2], [1], [1], [2], [0, 0, 0, 1, 1, 2], [0], [0]>} : vector<16x16x4xbf16>, vector<16x4x128xbf16>, vector<16x16x128xf32> -> vector<16x16x128xf32>
    "tpu.trace_stop"() : () -> ()
    %36 = arith.addf %27, %35 : vector<16x16x128xf32>
    %c0_28 = arith.constant 0 : index
    %c1_29 = arith.constant 1 : index
    %c1_30 = arith.constant 1 : index
    %c0_31 = arith.constant 0 : index
    %37 = vector.load %arg1[%c0_28, %c1_29, %c1_30, %c0_31] : memref<1x18x18x4xf32, #tpu.memory_space<vmem>>, vector<1x16x16x4xf32>
    %38 = vector.shape_cast %37 : vector<1x16x16x4xf32> to vector<16x16x4xf32>
    %39 = arith.truncf %38 : vector<16x16x4xf32> to vector<16x16x4xbf16>
    %c4 = arith.constant 4 : index
    %c0_32 = arith.constant 0 : index
    %c0_33 = arith.constant 0 : index
    %40 = vector.load %arg2[%c4, %c0_32, %c0_33] : memref<9x4x128xbf16, #tpu.memory_space<vmem>>, vector<1x4x128xbf16>
    %41 = vector.shape_cast %40 : vector<1x4x128xbf16> to vector<4x128xbf16>
    %42 = vector.shape_cast %41 : vector<4x128xbf16> to vector<1x4x128xbf16>
    %43 = vector.broadcast %42 : vector<1x4x128xbf16> to vector<16x4x128xbf16>
    "tpu.trace_start"() <{level = 10 : i32, message = "hwc,hco->hwo"}> : () -> ()
    %cst_34 = arith.constant dense<0.000000e+00> : vector<16x16x128xf32>
    %44 = tpu.matmul %39, %43, %cst_34 {dimension_numbers = #tpu.dot_dimension_numbers<[2], [1], [1], [2], [0, 0, 0, 1, 1, 2], [0], [0]>} : vector<16x16x4xbf16>, vector<16x4x128xbf16>, vector<16x16x128xf32> -> vector<16x16x128xf32>
    "tpu.trace_stop"() : () -> ()
    %45 = arith.addf %36, %44 : vector<16x16x128xf32>
    %c0_35 = arith.constant 0 : index
    %c1_36 = arith.constant 1 : index
    %c2_37 = arith.constant 2 : index
    %c0_38 = arith.constant 0 : index
    %46 = vector.load %arg1[%c0_35, %c1_36, %c2_37, %c0_38] : memref<1x18x18x4xf32, #tpu.memory_space<vmem>>, vector<1x16x16x4xf32>
    %47 = vector.shape_cast %46 : vector<1x16x16x4xf32> to vector<16x16x4xf32>
    %48 = arith.truncf %47 : vector<16x16x4xf32> to vector<16x16x4xbf16>
    %c5 = arith.constant 5 : index
    %c0_39 = arith.constant 0 : index
    %c0_40 = arith.constant 0 : index
    %49 = vector.load %arg2[%c5, %c0_39, %c0_40] : memref<9x4x128xbf16, #tpu.memory_space<vmem>>, vector<1x4x128xbf16>
    %50 = vector.shape_cast %49 : vector<1x4x128xbf16> to vector<4x128xbf16>
    %51 = vector.shape_cast %50 : vector<4x128xbf16> to vector<1x4x128xbf16>
    %52 = vector.broadcast %51 : vector<1x4x128xbf16> to vector<16x4x128xbf16>
    "tpu.trace_start"() <{level = 10 : i32, message = "hwc,hco->hwo"}> : () -> ()
    %cst_41 = arith.constant dense<0.000000e+00> : vector<16x16x128xf32>
    %53 = tpu.matmul %48, %52, %cst_41 {dimension_numbers = #tpu.dot_dimension_numbers<[2], [1], [1], [2], [0, 0, 0, 1, 1, 2], [0], [0]>} : vector<16x16x4xbf16>, vector<16x4x128xbf16>, vector<16x16x128xf32> -> vector<16x16x128xf32>
    "tpu.trace_stop"() : () -> ()
    %54 = arith.addf %45, %53 : vector<16x16x128xf32>
    %c0_42 = arith.constant 0 : index
    %c2_43 = arith.constant 2 : index
    %c0_44 = arith.constant 0 : index
    %c0_45 = arith.constant 0 : index
    %55 = vector.load %arg1[%c0_42, %c2_43, %c0_44, %c0_45] : memref<1x18x18x4xf32, #tpu.memory_space<vmem>>, vector<1x16x16x4xf32>
    %56 = vector.shape_cast %55 : vector<1x16x16x4xf32> to vector<16x16x4xf32>
    %57 = arith.truncf %56 : vector<16x16x4xf32> to vector<16x16x4xbf16>
    %c6 = arith.constant 6 : index
    %c0_46 = arith.constant 0 : index
    %c0_47 = arith.constant 0 : index
    %58 = vector.load %arg2[%c6, %c0_46, %c0_47] : memref<9x4x128xbf16, #tpu.memory_space<vmem>>, vector<1x4x128xbf16>
    %59 = vector.shape_cast %58 : vector<1x4x128xbf16> to vector<4x128xbf16>
    %60 = vector.shape_cast %59 : vector<4x128xbf16> to vector<1x4x128xbf16>
    %61 = vector.broadcast %60 : vector<1x4x128xbf16> to vector<16x4x128xbf16>
    "tpu.trace_start"() <{level = 10 : i32, message = "hwc,hco->hwo"}> : () -> ()
    %cst_48 = arith.constant dense<0.000000e+00> : vector<16x16x128xf32>
    %62 = tpu.matmul %57, %61, %cst_48 {dimension_numbers = #tpu.dot_dimension_numbers<[2], [1], [1], [2], [0, 0, 0, 1, 1, 2], [0], [0]>} : vector<16x16x4xbf16>, vector<16x4x128xbf16>, vector<16x16x128xf32> -> vector<16x16x128xf32>
    "tpu.trace_stop"() : () -> ()
    %63 = arith.addf %54, %62 : vector<16x16x128xf32>
    %c0_49 = arith.constant 0 : index
    %c2_50 = arith.constant 2 : index
    %c1_51 = arith.constant 1 : index
    %c0_52 = arith.constant 0 : index
    %64 = vector.load %arg1[%c0_49, %c2_50, %c1_51, %c0_52] : memref<1x18x18x4xf32, #tpu.memory_space<vmem>>, vector<1x16x16x4xf32>
    %65 = vector.shape_cast %64 : vector<1x16x16x4xf32> to vector<16x16x4xf32>
    %66 = arith.truncf %65 : vector<16x16x4xf32> to vector<16x16x4xbf16>
    %c7 = arith.constant 7 : index
    %c0_53 = arith.constant 0 : index
    %c0_54 = arith.constant 0 : index
    %67 = vector.load %arg2[%c7, %c0_53, %c0_54] : memref<9x4x128xbf16, #tpu.memory_space<vmem>>, vector<1x4x128xbf16>
    %68 = vector.shape_cast %67 : vector<1x4x128xbf16> to vector<4x128xbf16>
    %69 = vector.shape_cast %68 : vector<4x128xbf16> to vector<1x4x128xbf16>
    %70 = vector.broadcast %69 : vector<1x4x128xbf16> to vector<16x4x128xbf16>
    "tpu.trace_start"() <{level = 10 : i32, message = "hwc,hco->hwo"}> : () -> ()
    %cst_55 = arith.constant dense<0.000000e+00> : vector<16x16x128xf32>
    %71 = tpu.matmul %66, %70, %cst_55 {dimension_numbers = #tpu.dot_dimension_numbers<[2], [1], [1], [2], [0, 0, 0, 1, 1, 2], [0], [0]>} : vector<16x16x4xbf16>, vector<16x4x128xbf16>, vector<16x16x128xf32> -> vector<16x16x128xf32>
    "tpu.trace_stop"() : () -> ()
    %72 = arith.addf %63, %71 : vector<16x16x128xf32>
    %c0_56 = arith.constant 0 : index
    %c2_57 = arith.constant 2 : index
    %c2_58 = arith.constant 2 : index
    %c0_59 = arith.constant 0 : index
    %73 = vector.load %arg1[%c0_56, %c2_57, %c2_58, %c0_59] : memref<1x18x18x4xf32, #tpu.memory_space<vmem>>, vector<1x16x16x4xf32>
    %74 = vector.shape_cast %73 : vector<1x16x16x4xf32> to vector<16x16x4xf32>
    %75 = arith.truncf %74 : vector<16x16x4xf32> to vector<16x16x4xbf16>
    %c8 = arith.constant 8 : index
    %c0_60 = arith.constant 0 : index
    %c0_61 = arith.constant 0 : index
    %76 = vector.load %arg2[%c8, %c0_60, %c0_61] : memref<9x4x128xbf16, #tpu.memory_space<vmem>>, vector<1x4x128xbf16>
    %77 = vector.shape_cast %76 : vector<1x4x128xbf16> to vector<4x128xbf16>
    %78 = vector.shape_cast %77 : vector<4x128xbf16> to vector<1x4x128xbf16>
    %79 = vector.broadcast %78 : vector<1x4x128xbf16> to vector<16x4x128xbf16>
    "tpu.trace_start"() <{level = 10 : i32, message = "hwc,hco->hwo"}> : () -> ()
    %cst_62 = arith.constant dense<0.000000e+00> : vector<16x16x128xf32>
    %80 = tpu.matmul %75, %79, %cst_62 {dimension_numbers = #tpu.dot_dimension_numbers<[2], [1], [1], [2], [0, 0, 0, 1, 1, 2], [0], [0]>} : vector<16x16x4xbf16>, vector<16x4x128xbf16>, vector<16x16x128xf32> -> vector<16x16x128xf32>
    "tpu.trace_stop"() : () -> ()
    %81 = arith.addf %72, %80 : vector<16x16x128xf32>
    %c0_63 = arith.constant 0 : index
    %c0_64 = arith.constant 0 : index
    %82 = vector.load %arg3[%c0_63, %c0_64] : memref<1x128xf32, #tpu.memory_space<vmem>>, vector<1x128xf32>
    %83 = vector.shape_cast %82 : vector<1x128xf32> to vector<1x1x128xf32>
    %84 = vector.broadcast %83 : vector<1x1x128xf32> to vector<16x16x128xf32>
    %85 = arith.addf %81, %84 : vector<16x16x128xf32>
    %cst_65 = arith.constant 0.000000e+00 : f32
    %86 = vector.broadcast %cst_65 : f32 to vector<16x16x128xf32>
    %87 = arith.maximumf %85, %86 : vector<16x16x128xf32>
    %c0_66 = arith.constant 0 : index
    %c0_67 = arith.constant 0 : index
    %c0_68 = arith.constant 0 : index
    %c0_69 = arith.constant 0 : index
    %88 = vector.load %arg4[%c0_66, %c0_67, %c0_68, %c0_69] : memref<1x16x16x128xf32, #tpu.memory_space<vmem>>, vector<1x16x16x128xf32>
    %89 = vector.shape_cast %88 : vector<1x16x16x128xf32> to vector<16x16x128xf32>
    %90 = vector.shape_cast %87 : vector<16x16x128xf32> to vector<1x16x16x128xf32>
    tpu.vector_store %arg4[%c0_66, %c0_67, %c0_68, %c0_69], %90 {strides = array<i32>} : memref<1x16x16x128xf32, #tpu.memory_space<vmem>>, vector<1x16x16x128xf32>,
    return
  }
  func.func @transform_0(%arg0: i32) -> (i32, i32, i32, i32) {
    %c0_i32 = arith.constant 0 : i32
    %c0_i32_0 = arith.constant 0 : i32
    %c0_i32_1 = arith.constant 0 : i32
    %c0_i32_2 = arith.constant 0 : i32
    return %arg0, %c0_i32, %c0_i32_0, %c0_i32_1 : i32, i32, i32, i32
  }
  func.func @transform_1(%arg0: i32) -> (i32, i32, i32) {
    %c0_i32 = arith.constant 0 : i32
    %c0_i32_0 = arith.constant 0 : i32
    %c0_i32_1 = arith.constant 0 : i32
    %c0_i32_2 = arith.constant 0 : i32
    return %c0_i32, %c0_i32_0, %c0_i32_1 : i32, i32, i32
  }
  func.func @transform_2(%arg0: i32) -> (i32, i32) {
    %c0_i32 = arith.constant 0 : i32
    %c0_i32_0 = arith.constant 0 : i32
    %c0_i32_1 = arith.constant 0 : i32
    return %c0_i32, %c0_i32_0 : i32, i32
  }
  func.func @transform_3(%arg0: i32) -> (i32, i32, i32, i32) {
    %c0_i32 = arith.constant 0 : i32
    %c0_i32_0 = arith.constant 0 : i32
    %c0_i32_1 = arith.constant 0 : i32
    %c0_i32_2 = arith.constant 0 : i32
    return %arg0, %c0_i32, %c0_i32_0, %c0_i32_1 : i32, i32, i32, i32
  }
}

</mosaic_0001>

<bundles_post_ra>
// kernel: tpu_custom_call.1
= control target key start
LH: loop header
LB: loop body
LE: loop exit
PB: predicated region body
PF: predicated region fallthrough
CT: control target
= control target key end

     0   :  { %8 = vsyncpa [#allocation3], 0  ;;  %s11075_s0 = inlined_call_operand.vmem [shape: f32[2,18,18,4], index: 0, kind: input, shape index: {}]   ;;  %s11076_s1 = inlined_call_operand.vmem [shape: bf16[9,4,128], index: 1, kind: input, shape index: {}]   ;;  %s11077_s2 = inlined_call_operand.vmem [shape: f32[1,128], index: 2, kind: input, shape index: {}]   ;;  %s11078_s3 = inlined_call_operand.hbm [shape: f32[2,16,16,128], index: 3, kind: output, shape index: {}]  }
   0x1   :  { %10 = vsyncpa [#allocation3 + $0x1], 0  ;;  %s9029_s12 = smov 0   ;;  %s9031_s13 = smov 0  }
   0x2   :  { %s9033_s14 = smov 0   ;;  %s9035_s15 = smov 0  }
   0x3 LB: > { %s9050_s16 = sadd.s32 4294967295, %s9002_s15   ;;  %s7389_s17 = sadd.s32 4294967294, %s9002_s15   ;;  %s9002_s15 = sphi %s9035_s15, %s11112_s15   ;;  %s8998_s14 = sphi %s9033_s14, %s11111_s14   ;;  %s8994_s13 = sphi %s9031_s13, %s11110_s13   ;;  %s8990_s12 = sphi %s9029_s12, %s11109_s12  }
   0x4   : > { %s9054_s18 = sadd.s32 1, %s9002_s15   ;;  %s91_s19 = sadd.s32 1, %s8998_s14 }
   0x5   : > { %s88_s20 = ssub.s32 %s9002_s15, %s9054_s18  ;;  %p101_p0 = scmp.ne.s32.totalorder %s8998_s14, %s8994_s13 }
   0x6   : > { %p89_p1 = scmp.eq.s32.totalorder %s88_s20, 0  ;;  %p102_p2 = scmp.eq.s32.totalorder %s9050_s16, 1 }
   0x7   : > { %p107_p3 = scmp.ne.s32.totalorder %s8994_s13, %s8990_s12  ;;  %p108_p4 = scmp.eq.s32.totalorder %s7389_s17, 1 }
   0x8   : > { %s9065_s21 = scalar_select %p89_p1, %s8998_s14, %s91_s19  }
   0x9   : > { %p9067_p5 = por %p102_p2, %p101_p0  ;;  %p9071_p6 = por %p108_p4, %p107_p3 }
   0xa   : > { %p7392_p7 = scmp.ge.s32.totalorder %s9002_s15, 1  ;;  %p140_p8 = scmp.lt.s32.totalorder %s9002_s15, 3 }
   0xc   : > { %p141_p9 = pnand %p7392_p7, %p140_p8 }
   0xe   : > { %144 = sbr.rel (%p141_p9) target bundleno = 815 (0x32f), region = 32 }
  0x13   : > { %v7395_v0 = vld [vmem:[%s11076_s1 + $0x2] sm:$0x3]  ;;  %vm273_vm0 = vcmask 1041408   ;;  %p164_p10 = scmp.lt.s32.totalorder %s9050_s16, 1  ;;  %v9004_v1 = vmov 0.0   ;;  %vm9005_vm1 = vmmov 0  }
  0x14   : > { %8034 = vmatprep.subr.bf16.mxu0 %v9004_v1  ;;  %8040 = vmatprep.subr.bf16.mxu1 %v9004_v1  ;;  %v9084_v2 = vsel %vm273_vm0, %v7395_v0, 0  ;;  %vm269_vm2 = vcmask 31744   ;;  %v218_v49 = vld [vmem:[%s11076_s1] sm:$0x3]  ;;  %s161_s29 = sand.u32 1, %s8994_s13   ;;  %s7745_s7 = sshll.u32 %s9050_s16, 12 }
  0x15   : > { %8035 = vmatpush3.bf16.msra.mxu0 %v9084_v2  ;;  %8041 = vmatpush3.bf16.msra.mxu1 %v9084_v2  ;;  %s165_s26 = scalar_select %p164_p10, %s9050_s16, 1  ;;  %v9206_v52 = vsel %vm273_vm0, %v218_v49, 0 }
  0x16   : > { %8036 = vmatprep.mubr.msk.bf16.mxu0 %vm9005_vm1, %v9004_v1  ;;  %8042 = vmatprep.mubr.msk.bf16.mxu1 %vm9005_vm1, %v9004_v1  ;;  %s7393_s5 = sshll.u32 %s161_s29, 8  ;;  %s11027_s11 = scalar_lea.hbm %s11078_s3, %s7745_s7 }
  0x17   : > { %8046 = vmatprep.subr.bf16.mxu0 %v9004_v1  ;;  %8052 = vmatprep.subr.bf16.mxu1 %v9004_v1  ;;  %s8898_s27 = smul.u32 432, %s165_s26  ;;  %s10906_s6 = scalar_lea.vmem [#allocation2], %s7393_s5 }
  0x18   : > { %s7327_s8 = sshll.u32 %s10906_s6, 4  ;;  %s11035_s16 = scalar_lea.sflag [#allocation3], %s161_s29  ;;  %s11029_s8 = int_to_ptr.vmem [resolvable:$true] %s7327_s8 }
  0x19   : > { %s9098_s30 = scalar_lea.vmem %s11075_s0, %s8898_s27  ;;  %s8942_s17 = scalar_lea.vmem %s11029_s8, 4096 }
  0x1a   : > { %v219_v3 = vld [vmem:[%s9098_s30 + $0x1] sm:$0xff]  ;;  %v220_v4 = vld [vmem:[%s9098_s30 + $0x9] sm:$0xff]  ;;  %v221_v5 = vld [vmem:[%s9098_s30 + $0x19] sm:$0xff]  ;;  %p8943_p11 = scmp.ne.s32.totalorder %s11029_s8, %s8942_s17  ;;  %s9006_s19 = smov [#allocation2]  }
  0x1b   : > { %v251_v6 = vpack.c.bf16 %v220_v4, %v219_v3  ;;  %v222_v7 = vld [vmem:[%s9098_s30 + $0x21] sm:$0xff]  ;;  %v223_v9 = vld [vmem:[%s9098_s30 + $0x31] sm:$0xff]  ;;  %v224_v10 = vld [vmem:[%s9098_s30 + $0x39] sm:$0xff]  ;;  %s8946_s20 = sshll.u32 %s9006_s19, 4  ;;  %s8947_s20 = int_to_ptr.vmem [resolvable:$false] %s8946_s20 }
  0x1c   : > { %v252_v8 = vpack.c.bf16 %v222_v7, %v221_v5  ;;  %v225_v11 = vld [vmem:[%s9098_s30 + $0x49] sm:$0xff]  ;;  %v226_v12 = vld [vmem:[%s9098_s30 + $0x51] sm:$0xff]  ;;  %v253_v13 = vpack.c.bf16 %v224_v10, %v223_v9  ;;  %v227_v15 = vld [vmem:[%s9098_s30 + $0x61] sm:$0xff]  ;;  %p8944_p12 = pnand %p8943_p11, %p9067_p5  ;;  %s8948_s24 = scalar_lea.vmem %s8947_s20, 8192 }
  0x1d   : > { %8037 = vmatmul.mubr.msk.bf16.vlgmr.msra.gmra.mxu0 %vm269_vm2, %v251_v6  ;;  %v254_v14 = vpack.c.bf16 %v226_v12, %v225_v11  ;;  %v228_v16 = vld [vmem:[%s9098_s30 + $0x69] sm:$0xff]  ;;  %v229_v17 = vld [vmem:[%s9098_s30 + $0x79] sm:$0xff]  ;;  %v230_v18 = vld [vmem:[%s9098_s30 + $0x81] sm:$0xff]  ;;  %p8949_p0 = scmp.lt.s32.totalorder %s11029_s8, %s8947_s20  ;;  %p8950_p1 = scmp.lt.s32.totalorder %s8948_s24, %s8942_s17 }
  0x1e   : > { %8043 = vmatmul.mubr.msk.bf16.vlgmr.msra.gmra.mxu1 %vm269_vm2, %v252_v8  ;;  %8047 = vmatpush3.bf16.msra.mxu0 %v9084_v2  ;;  %v255_v19 = vpack.c.bf16 %v228_v16, %v227_v15  ;;  %v256_v20 = vpack.c.bf16 %v230_v18, %v229_v17  ;;  %v231_v21 = vld [vmem:[%s9098_s30 + $0x91] sm:$0xff]  ;;  %v232_v22 = vld [vmem:[%s9098_s30 + $0x99] sm:$0xff]  ;;  %v233_v23 = vld [vmem:[%s9098_s30 + $0xa9] sm:$0xff]  ;;  %p8945_p13 = pneg %p8944_p12 }
  0x1f   : > { %8053 = vmatpush3.bf16.msra.mxu1 %v9084_v2  ;;  %8048 = vmatprep.mubr.msk.bf16.mxu0 %vm9005_vm1, %v9004_v1  ;;  %v234_v24 = vld [vmem:[%s9098_s30 + $0xb1] sm:$0xff]  ;;  %v257_v25 = vpack.c.bf16 %v232_v22, %v231_v21  ;;  %v235_v27 = vld [vmem:[%s9098_s30 + $0xc1] sm:$0xff]  ;;  %v236_v28 = vld [vmem:[%s9098_s30 + $0xc9] sm:$0xff]  ;;  %p8951_p2 = por %p8950_p1, %p8949_p0 }
  0x20   : > { %8054 = vmatprep.mubr.msk.bf16.mxu1 %vm9005_vm1, %v9004_v1  ;;  %8058 = vmatprep.subr.bf16.mxu0 %v9004_v1  ;;  %v258_v26 = vpack.c.bf16 %v234_v24, %v233_v23  ;;  %v237_v29 = vld [vmem:[%s9098_s30 + $0xd9] sm:$0xff]  ;;  %v238_v30 = vld [vmem:[%s9098_s30 + $0xe1] sm:$0xff]  ;;  %v259_v31 = vpack.c.bf16 %v236_v28, %v235_v27  ;;  %v239_v33 = vld [vmem:[%s9098_s30 + $0xf1] sm:$0xff] }
  0x21   : > { %8064 = vmatprep.subr.bf16.mxu1 %v9004_v1  ;;  %v260_v32 = vpack.c.bf16 %v238_v30, %v237_v29  ;;  %v240_v34 = vld [vmem:[%s9098_s30 + $0xf9] sm:$0xff]  ;;  %v241_v35 = vld [vmem:[%s9098_s30 + $0x109] sm:$0xff]  ;;  %v242_v36 = vld [vmem:[%s9098_s30 + $0x111] sm:$0xff]  ;;  %p8952_p3 = pnand %p8951_p2, %p8945_p13 }
  0x22   : > { %v261_v37 = vpack.c.bf16 %v240_v34, %v239_v33  ;;  %v262_v38 = vpack.c.bf16 %v242_v36, %v241_v35  ;;  %v243_v39 = vld [vmem:[%s9098_s30 + $0x121] sm:$0xff]  ;;  %v244_v40 = vld [vmem:[%s9098_s30 + $0x129] sm:$0xff]  ;;  %v245_v41 = vld [vmem:[%s9098_s30 + $0x139] sm:$0xff] }
  0x23   : > { %v246_v42 = vld [vmem:[%s9098_s30 + $0x141] sm:$0xff]  ;;  %v263_v43 = vpack.c.bf16 %v244_v40, %v243_v39  ;;  %v247_v45 = vld [vmem:[%s9098_s30 + $0x151] sm:$0xff]  ;;  %v248_v46 = vld [vmem:[%s9098_s30 + $0x159] sm:$0xff] }
  0x24   : > { %v264_v44 = vpack.c.bf16 %v246_v42, %v245_v41  ;;  %v249_v47 = vld [vmem:[%s9098_s30 + $0x169] sm:$0xff]  ;;  %v250_v48 = vld [vmem:[%s9098_s30 + $0x171] sm:$0xff]  ;;  %v265_v50 = vpack.c.bf16 %v248_v46, %v247_v45  ;;  %v170_v53 = vld [vmem:[%s9098_s30] sm:$0xff] }
  0x25   : > { %8049 = vmatmul.mubr.msk.bf16.vlgmr.msra.gmra.mxu0 %vm269_vm2, %v253_v13  ;;  %v266_v51 = vpack.c.bf16 %v250_v48, %v249_v47  ;;  %v171_v54 = vld [vmem:[%s9098_s30 + $0x8] sm:$0xff]  ;;  %v172_v55 = vld [vmem:[%s9098_s30 + $0x18] sm:$0xff]  ;;  %v173_v56 = vld [vmem:[%s9098_s30 + $0x20] sm:$0xff] }
  0x26   : > { %8055 = vmatmul.mubr.msk.bf16.vlgmr.msra.gmra.mxu1 %vm269_vm2, %v254_v14  ;;  %8059 = vmatpush3.bf16.msra.mxu0 %v9084_v2  ;;  %v202_v57 = vpack.c.bf16 %v171_v54, %v170_v53  ;;  %v9222_v58 = vpack.c.bf16 %v173_v56, %v172_v55  ;;  %v174_v59 = vld [vmem:[%s9098_s30 + $0x30] sm:$0xff]  ;;  %v175_v60 = vld [vmem:[%s9098_s30 + $0x38] sm:$0xff]  ;;  %v176_v61 = vld [vmem:[%s9098_s30 + $0x48] sm:$0xff] }
  0x27   : > { %8065 = vmatpush3.bf16.msra.mxu1 %v9084_v2  ;;  %8060 = vmatprep.mubr.msk.bf16.mxu0 %vm9005_vm1, %v9004_v1  ;;  %v177_v62 = vld [vmem:[%s9098_s30 + $0x50] sm:$0xff]  ;;  %v9239_v63 = vpack.c.bf16 %v175_v60, %v174_v59  ;;  %v179_v3 = vld [vmem:[%s9098_s30 + $0x68] sm:$0xff]  ;;  %v180_v4 = vld [vmem:[%s9098_s30 + $0x78] sm:$0xff] }
  0x28   : > { %8066 = vmatprep.mubr.msk.bf16.mxu1 %vm9005_vm1, %v9004_v1  ;;  %8070 = vmatprep.subr.bf16.mxu0 %v9004_v1  ;;  %v9241_v0 = vpack.c.bf16 %v177_v62, %v176_v61  ;;  %v181_v5 = vld [vmem:[%s9098_s30 + $0x80] sm:$0xff]  ;;  %v182_v8 = vld [vmem:[%s9098_s30 + $0x90] sm:$0xff]  ;;  %v183_v9 = vld [vmem:[%s9098_s30 + $0x98] sm:$0xff] }
  0x29   : > { %8076 = vmatprep.subr.bf16.mxu1 %v9004_v1  ;;  %v9261_v7 = vpack.c.bf16 %v181_v5, %v180_v4  ;;  %v184_v10 = vld [vmem:[%s9098_s30 + $0xa8] sm:$0xff]  ;;  %v185_v11 = vld [vmem:[%s9098_s30 + $0xb0] sm:$0xff]  ;;  %v9279_v12 = vpack.c.bf16 %v183_v9, %v182_v8  ;;  %v186_v14 = vld [vmem:[%s9098_s30 + $0xc0] sm:$0xff] }
  0x2a   : > { %v9281_v13 = vpack.c.bf16 %v185_v11, %v184_v10  ;;  %v187_v15 = vld [vmem:[%s9098_s30 + $0xc8] sm:$0xff]  ;;  %v188_v16 = vld [vmem:[%s9098_s30 + $0xd8] sm:$0xff]  ;;  %v189_v17 = vld [vmem:[%s9098_s30 + $0xe0] sm:$0xff] }
  0x2b   : > { %v9299_v18 = vpack.c.bf16 %v187_v15, %v186_v14  ;;  %v191_v21 = vld [vmem:[%s9098_s30 + $0xf8] sm:$0xff]  ;;  %v192_v22 = vld [vmem:[%s9098_s30 + $0x108] sm:$0xff]  ;;  %v193_v23 = vld [vmem:[%s9098_s30 + $0x110] sm:$0xff] }
  0x2c   : > { %v195_v27 = vld [vmem:[%s9098_s30 + $0x128] sm:$0xff]  ;;  %v196_v28 = vld [vmem:[%s9098_s30 + $0x138] sm:$0xff]  ;;  %v197_v29 = vld [vmem:[%s9098_s30 + $0x140] sm:$0xff] }
  0x2d   : > { %8061 = vmatmul.mubr.msk.bf16.vlgmr.msra.gmra.mxu0 %vm269_vm2, %v255_v19  ;;  %v9301_v19 = vpack.c.bf16 %v189_v17, %v188_v16  ;;  %v199_v33 = vld [vmem:[%s9098_s30 + $0x158] sm:$0xff]  ;;  %v200_v34 = vld [vmem:[%s9098_s30 + $0x168] sm:$0xff]  ;;  %v201_v35 = vld [vmem:[%s9098_s30 + $0x170] sm:$0xff] }
  0x2e   : > { %8067 = vmatmul.mubr.msk.bf16.vlgmr.msra.gmra.mxu1 %vm269_vm2, %v256_v20  ;;  %8071 = vmatpush3.bf16.msra.mxu0 %v9084_v2  ;;  %v190_v20 = vld [vmem:[%s9098_s30 + $0xf0] sm:$0xff]  ;;  %v7428_v36 = vld [vmem:[%s11076_s1 + $0x4] sm:$0x3]  ;;  %v1687_v42 = vld [vmem:[%s9098_s30 + $0x1a] sm:$0xff] }
  0x2f   : > { %8077 = vmatpush3.bf16.msra.mxu1 %v9084_v2  ;;  %8072 = vmatprep.mubr.msk.bf16.mxu0 %vm9005_vm1, %v9004_v1  ;;  %v9319_v24 = vpack.c.bf16 %v191_v21, %v190_v20  ;;  %v9367_v39 = vsel %vm273_vm0, %v7428_v36, 0  ;;  %v1685_v40 = vld [vmem:[%s9098_s30 + $0x2] sm:$0xff]  ;;  %v1686_v41 = vld [vmem:[%s9098_s30 + $0xa] sm:$0xff]  ;;  %v1689_v46 = vld [vmem:[%s9098_s30 + $0x32] sm:$0xff] }
  0x30   : > { %8078 = vmatprep.mubr.msk.bf16.mxu1 %vm9005_vm1, %v9004_v1  ;;  %8082 = vmatprep.subr.bf16.mxu0 %v9004_v1  ;;  %v1690_v47 = vld [vmem:[%s9098_s30 + $0x3a] sm:$0xff]  ;;  %v1691_v48 = vld [vmem:[%s9098_s30 + $0x4a] sm:$0xff]  ;;  %v1692_v49 = vld [vmem:[%s9098_s30 + $0x52] sm:$0xff] }
  0x31   : > { %8088 = vmatprep.subr.bf16.mxu1 %v9004_v1  ;;  %v1694_v53 = vld [vmem:[%s9098_s30 + $0x6a] sm:$0xff]  ;;  %v1695_v54 = vld [vmem:[%s9098_s30 + $0x7a] sm:$0xff]  ;;  %v1696_v55 = vld [vmem:[%s9098_s30 + $0x82] sm:$0xff] }
  0x32   : > { %v1697_v59 = vld [vmem:[%s9098_s30 + $0x92] sm:$0xff]  ;;  %v1698_v60 = vld [vmem:[%s9098_s30 + $0x9a] sm:$0xff]  ;;  %v1699_v61 = vld [vmem:[%s9098_s30 + $0xaa] sm:$0xff] }
  0x33   : > { %v1700_v62 = vld [vmem:[%s9098_s30 + $0xb2] sm:$0xff]  ;;  %v1701_v4 = vld [vmem:[%s9098_s30 + $0xc2] sm:$0xff]  ;;  %v1702_v5 = vld [vmem:[%s9098_s30 + $0xca] sm:$0xff] }
  0x34   : > { %v1703_v8 = vld [vmem:[%s9098_s30 + $0xda] sm:$0xff]  ;;  %v1704_v9 = vld [vmem:[%s9098_s30 + $0xe2] sm:$0xff]  ;;  %v1725_v10 = vpack.c.bf16 %v1702_v5, %v1701_v4  ;;  %v1705_v14 = vld [vmem:[%s9098_s30 + $0xf2] sm:$0xff] }
  0x35   : > { %8073 = vmatmul.mubr.msk.bf16.vlgmr.msra.gmra.mxu0 %vm269_vm2, %v257_v25  ;;  %v9321_v25 = vpack.c.bf16 %v193_v23, %v192_v22  ;;  %v1726_v11 = vpack.c.bf16 %v1704_v9, %v1703_v8  ;;  %v1706_v15 = vld [vmem:[%s9098_s30 + $0xfa] sm:$0xff]  ;;  %v1707_v16 = vld [vmem:[%s9098_s30 + $0x10a] sm:$0xff]  ;;  %v1708_v17 = vld [vmem:[%s9098_s30 + $0x112] sm:$0xff] }
  0x36   : > { %8079 = vmatmul.mubr.msk.bf16.vlgmr.msra.gmra.mxu1 %vm269_vm2, %v258_v26  ;;  %8083 = vmatpush3.bf16.msra.mxu0 %v9084_v2  ;;  %v194_v26 = vld [vmem:[%s9098_s30 + $0x120] sm:$0xff]  ;;  %v1727_v20 = vpack.c.bf16 %v1706_v15, %v1705_v14  ;;  %v1728_v21 = vpack.c.bf16 %v1708_v17, %v1707_v16  ;;  %v1710_v23 = vld [vmem:[%s9098_s30 + $0x12a] sm:$0xff] }
  0x37   : > { %8089 = vmatpush3.bf16.msra.mxu1 %v9084_v2  ;;  %8084 = vmatprep.mubr.msk.bf16.mxu0 %vm9005_vm1, %v9004_v1  ;;  %v9339_v30 = vpack.c.bf16 %v195_v27, %v194_v26  ;;  %v1709_v22 = vld [vmem:[%s9098_s30 + $0x122] sm:$0xff]  ;;  %v1711_v26 = vld [vmem:[%s9098_s30 + $0x13a] sm:$0xff] }
  0x38   : > { %8090 = vmatprep.mubr.msk.bf16.mxu1 %vm9005_vm1, %v9004_v1  ;;  %8094 = vmatprep.subr.bf16.mxu0 %v9004_v1  ;;  %v1712_v27 = vld [vmem:[%s9098_s30 + $0x142] sm:$0xff] }
  0x39   : > { %8100 = vmatprep.subr.bf16.mxu1 %v9004_v1  ;;  %v7477_v36 = vld [vmem:[%s11076_s1 + $0x6] sm:$0x3] }
  0x3d   : > { %8085 = vmatmul.mubr.msk.bf16.vlgmr.msra.gmra.mxu0 %vm269_vm2, %v259_v31  ;;  %v9341_v31 = vpack.c.bf16 %v197_v29, %v196_v28  ;;  %v1729_v28 = vpack.c.bf16 %v1710_v23, %v1709_v22  ;;  %v1730_v29 = vpack.c.bf16 %v1712_v27, %v1711_v26 }
  0x3e   : > { %8091 = vmatmul.mubr.msk.bf16.vlgmr.msra.gmra.mxu1 %vm269_vm2, %v260_v32  ;;  %8095 = vmatpush3.bf16.msra.mxu0 %v9084_v2  ;;  %v198_v32 = vld [vmem:[%s9098_s30 + $0x150] sm:$0xff] }
  0x3f   : > { %8101 = vmatpush3.bf16.msra.mxu1 %v9084_v2  ;;  %8096 = vmatprep.mubr.msk.bf16.mxu0 %vm9005_vm1, %v9004_v1 }
  0x40   : > { %8102 = vmatprep.mubr.msk.bf16.mxu1 %vm9005_vm1, %v9004_v1  ;;  %8106 = vmatprep.subr.bf16.mxu0 %v9004_v1 }
  0x41   : > { %8112 = vmatprep.subr.bf16.mxu1 %v9004_v1 }
  0x45   : > { %8097 = vmatmul.mubr.msk.bf16.vlgmr.msra.gmra.mxu0 %vm269_vm2, %v261_v37  ;;  %v9362_v37 = vpack.c.bf16 %v199_v33, %v198_v32  ;;  %v1713_v32 = vld [vmem:[%s9098_s30 + $0x152] sm:$0xff]  ;;  %v1714_v33 = vld [vmem:[%s9098_s30 + $0x15a] sm:$0xff] }
  0x46   : > { %8103 = vmatmul.mubr.msk.bf16.vlgmr.msra.gmra.mxu1 %vm269_vm2, %v262_v38  ;;  %8107 = vmatpush3.bf16.msra.mxu0 %v9084_v2  ;;  %v9364_v38 = vpack.c.bf16 %v201_v35, %v200_v34  ;;  %v1715_v34 = vld [vmem:[%s9098_s30 + $0x16a] sm:$0xff]  ;;  %v1716_v35 = vld [vmem:[%s9098_s30 + $0x172] sm:$0xff] }
  0x47   : > { %8113 = vmatpush3.bf16.msra.mxu1 %v9084_v2  ;;  %8108 = vmatprep.mubr.msk.bf16.mxu0 %vm9005_vm1, %v9004_v1 }
  0x48   : > { %8114 = vmatprep.mubr.msk.bf16.mxu1 %vm9005_vm1, %v9004_v1  ;;  %8118 = vmatprep.subr.bf16.mxu0 %v9004_v1 }
  0x49   : > { %8124 = vmatprep.subr.bf16.mxu1 %v9004_v1 }
  0x4d   : > { %8109 = vmatmul.mubr.msk.bf16.vlgmr.msra.gmra.mxu0 %vm269_vm2, %v263_v43  ;;  %v1688_v43 = vld [vmem:[%s9098_s30 + $0x22] sm:$0xff] }
  0x4e   : > { %8115 = vmatmul.mubr.msk.bf16.vlgmr.msra.gmra.mxu1 %vm269_vm2, %v264_v44  ;;  %8119 = vmatpush3.bf16.msra.mxu0 %v9084_v2  ;;  %v1717_v44 = vpack.c.bf16 %v1686_v41, %v1685_v40  ;;  %v9385_v45 = vpack.c.bf16 %v1688_v43, %v1687_v42  ;;  %v1731_v40 = vpack.c.bf16 %v1714_v33, %v1713_v32 }
  0x4f   : > { %8125 = vmatpush3.bf16.msra.mxu1 %v9084_v2  ;;  %8120 = vmatprep.mubr.msk.bf16.mxu0 %vm9005_vm1, %v9004_v1  ;;  %v178_v2 = vld [vmem:[%s9098_s30 + $0x60] sm:$0xff]  ;;  %v1732_v41 = vpack.c.bf16 %v1716_v35, %v1715_v34  ;;  %v7476_v35 = vld [vmem:[%s9098_s30 + $0x188] sm:$0xff] }
  0x50   : > { %8126 = vmatprep.mubr.msk.bf16.mxu1 %vm9005_vm1, %v9004_v1  ;;  %8130 = vmatprep.subr.bf16.mxu0 %v9004_v1  ;;  %v9259_v6 = vpack.c.bf16 %v179_v3, %v178_v2  ;;  %v1723_v2 = vpack.c.bf16 %v1698_v60, %v1697_v59  ;;  %v1724_v3 = vpack.c.bf16 %v1700_v62, %v1699_v61  ;;  %v7475_v34 = vld [vmem:[%s9098_s30 + $0x180] sm:$0xff] }
  0x51   : > { %8136 = vmatprep.subr.bf16.mxu1 %v9004_v1 }
  0x55   : > { %8121 = vmatmul.mubr.msk.bf16.vlgmr.msra.gmra.mxu0 %vm269_vm2, %v265_v50  ;;  %v9402_v50 = vpack.c.bf16 %v1690_v47, %v1689_v46 }
  0x56   : > { %8127 = vmatmul.mubr.msk.bf16.vlgmr.msra.gmra.mxu1 %vm269_vm2, %v266_v51  ;;  %8131 = vmatpush3.bf16.msra.mxu0 %v9206_v52  ;;  %v1720_v51 = vpack.c.bf16 %v1692_v49, %v1691_v48 }
  0x57   : > { %8137 = vmatpush3.bf16.msra.mxu1 %v9206_v52  ;;  %8132 = vmatprep.mubr.msk.bf16.mxu0 %vm9005_vm1, %v9004_v1 }
  0x58   : > { %8138 = vmatprep.mubr.msk.bf16.mxu1 %vm9005_vm1, %v9004_v1  ;;  %8142 = vmatprep.subr.bf16.mxu0 %v9004_v1 }
  0x59   : > { %8148 = vmatprep.subr.bf16.mxu1 %v9004_v1 }
  0x5d   : > { %8133 = vmatmul.mubr.msk.bf16.vlgmr.msra.gmra.mxu0 %vm269_vm2, %v202_v57  ;;  %v1722_v57 = vpack.c.bf16 %v1696_v55, %v1695_v54 }
  0x5e   : > { %8139 = vmatmul.mubr.msk.bf16.vlgmr.msra.gmra.mxu1 %vm269_vm2, %v9222_v58  ;;  %8143 = vmatpush3.bf16.msra.mxu0 %v9206_v52 }
  0x5f   : > { %8149 = vmatpush3.bf16.msra.mxu1 %v9206_v52  ;;  %8144 = vmatprep.mubr.msk.bf16.mxu0 %vm9005_vm1, %v9004_v1 }
  0x60   : > { %8150 = vmatprep.mubr.msk.bf16.mxu1 %vm9005_vm1, %v9004_v1  ;;  %8154 = vmatprep.subr.bf16.mxu0 %v9004_v1 }
  0x61   : > { %8160 = vmatprep.subr.bf16.mxu1 %v9004_v1 }
  0x65   : > { %8145 = vmatmul.mubr.msk.bf16.vlgmr.msra.gmra.mxu0 %vm269_vm2, %v9239_v63 }
  0x66   : > { %8151 = vmatmul.mubr.msk.bf16.vlgmr.msra.gmra.mxu1 %vm269_vm2, %v9241_v0  ;;  %8155 = vmatpush3.bf16.msra.mxu0 %v9206_v52 }
  0x67   : > { %8161 = vmatpush3.bf16.msra.mxu1 %v9206_v52  ;;  %8156 = vmatprep.mubr.msk.bf16.mxu0 %vm9005_vm1, %v9004_v1 }
  0x68   : > { %8162 = vmatprep.mubr.msk.bf16.mxu1 %vm9005_vm1, %v9004_v1  ;;  %8166 = vmatprep.subr.bf16.mxu0 %v9004_v1 }
  0x69   : > { %8172 = vmatprep.subr.bf16.mxu1 %v9004_v1 }
  0x6d   : > { %8157 = vmatmul.mubr.msk.bf16.vlgmr.msra.gmra.mxu0 %vm269_vm2, %v9259_v6 }
  0x6e   : > { %8163 = vmatmul.mubr.msk.bf16.vlgmr.msra.gmra.mxu1 %vm269_vm2, %v9261_v7  ;;  %8167 = vmatpush3.bf16.msra.mxu0 %v9206_v52 }
  0x6f   : > { %8173 = vmatpush3.bf16.msra.mxu1 %v9206_v52  ;;  %8168 = vmatprep.mubr.msk.bf16.mxu0 %vm9005_vm1, %v9004_v1 }
  0x70   : > { %8174 = vmatprep.mubr.msk.bf16.mxu1 %vm9005_vm1, %v9004_v1  ;;  %8178 = vmatprep.subr.bf16.mxu0 %v9004_v1 }
  0x71   : > { %8184 = vmatprep.subr.bf16.mxu1 %v9004_v1 }
  0x75   : > { %8169 = vmatmul.mubr.msk.bf16.vlgmr.msra.gmra.mxu0 %vm269_vm2, %v9279_v12 }
  0x76   : > { %8175 = vmatmul.mubr.msk.bf16.vlgmr.msra.gmra.mxu1 %vm269_vm2, %v9281_v13  ;;  %8179 = vmatpush3.bf16.msra.mxu0 %v9206_v52 }
  0x77   : > { %8185 = vmatpush3.bf16.msra.mxu1 %v9206_v52  ;;  %8180 = vmatprep.mubr.msk.bf16.mxu0 %vm9005_vm1, %v9004_v1 }
  0x78   : > { %8186 = vmatprep.mubr.msk.bf16.mxu1 %vm9005_vm1, %v9004_v1  ;;  %8190 = vmatprep.subr.bf16.mxu0 %v9004_v1 }
  0x79   : > { %8196 = vmatprep.subr.bf16.mxu1 %v9004_v1 }
  0x7d   : > { %8181 = vmatmul.mubr.msk.bf16.vlgmr.msra.gmra.mxu0 %vm269_vm2, %v9299_v18 }
  0x7e   : > { %8187 = vmatmul.mubr.msk.bf16.vlgmr.msra.gmra.mxu1 %vm269_vm2, %v9301_v19  ;;  %8191 = vmatpush3.bf16.msra.mxu0 %v9206_v52 }
  0x7f   : > { %8197 = vmatpush3.bf16.msra.mxu1 %v9206_v52  ;;  %8192 = vmatprep.mubr.msk.bf16.mxu0 %vm9005_vm1, %v9004_v1 }
  0x80   : > { %8198 = vmatprep.mubr.msk.bf16.mxu1 %vm9005_vm1, %v9004_v1  ;;  %8202 = vmatprep.subr.bf16.mxu0 %v9004_v1 }
  0x81   : > { %8208 = vmatprep.subr.bf16.mxu1 %v9004_v1 }
  0x85   : > { %8193 = vmatmul.mubr.msk.bf16.vlgmr.msra.gmra.mxu0 %vm269_vm2, %v9319_v24 }
  0x86   : > { %8199 = vmatmul.mubr.msk.bf16.vlgmr.msra.gmra.mxu1 %vm269_vm2, %v9321_v25  ;;  %8203 = vmatpush3.bf16.msra.mxu0 %v9206_v52 }
  0x87   : > { %8209 = vmatpush3.bf16.msra.mxu1 %v9206_v52  ;;  %8204 = vmatprep.mubr.msk.bf16.mxu0 %vm9005_vm1, %v9004_v1 }
  0x88   : > { %8210 = vmatprep.mubr.msk.bf16.mxu1 %vm9005_vm1, %v9004_v1  ;;  %8214 = vmatprep.subr.bf16.mxu0 %v9004_v1 }
  0x89   : > { %8220 = vmatprep.subr.bf16.mxu1 %v9004_v1 }
  0x8d   : > { %8205 = vmatmul.mubr.msk.bf16.vlgmr.msra.gmra.mxu0 %vm269_vm2, %v9339_v30 }
  0x8e   : > { %8211 = vmatmul.mubr.msk.bf16.vlgmr.msra.gmra.mxu1 %vm269_vm2, %v9341_v31  ;;  %8215 = vmatpush3.bf16.msra.mxu0 %v9206_v52 }
  0x8f   : > { %8221 = vmatpush3.bf16.msra.mxu1 %v9206_v52  ;;  %8216 = vmatprep.mubr.msk.bf16.mxu0 %vm9005_vm1, %v9004_v1  ;;  %v1693_v52 = vld [vmem:[%s9098_s30 + $0x62] sm:$0xff] }
  0x90   : > { %8222 = vmatprep.mubr.msk.bf16.mxu1 %vm9005_vm1, %v9004_v1  ;;  %8226 = vmatprep.subr.bf16.mxu0 %v9004_v1  ;;  %v9419_v56 = vpack.c.bf16 %v1694_v53, %v1693_v52 }
  0x91   : > { %8232 = vmatprep.subr.bf16.mxu1 %v9004_v1 }
  0x95   : > { %8217 = vmatmul.mubr.msk.bf16.vlgmr.msra.gmra.mxu0 %vm269_vm2, %v9362_v37 }
  0x96   : > { %8223 = vmatmul.mubr.msk.bf16.vlgmr.msra.gmra.mxu1 %vm269_vm2, %v9364_v38  ;;  %8227 = vmatpush3.bf16.msra.mxu0 %v9367_v39 }
  0x97   : > { %8233 = vmatpush3.bf16.msra.mxu1 %v9367_v39  ;;  %8228 = vmatprep.mubr.msk.bf16.mxu0 %vm9005_vm1, %v9004_v1 }
  0x98   : > { %8234 = vmatprep.mubr.msk.bf16.mxu1 %vm9005_vm1, %v9004_v1  ;;  %8238 = vmatprep.subr.bf16.mxu0 %v9004_v1 }
  0x99   : > { %8244 = vmatprep.subr.bf16.mxu1 %v9004_v1 }
  0x9d   : > { %8229 = vmatmul.mubr.msk.bf16.vlgmr.msra.gmra.mxu0 %vm269_vm2, %v1717_v44 }
  0x9e   : > { %8235 = vmatmul.mubr.msk.bf16.vlgmr.msra.gmra.mxu1 %vm269_vm2, %v9385_v45  ;;  %8239 = vmatpush3.bf16.msra.mxu0 %v9367_v39 }
  0x9f   : > { %8245 = vmatpush3.bf16.msra.mxu1 %v9367_v39  ;;  %8240 = vmatprep.mubr.msk.bf16.mxu0 %vm9005_vm1, %v9004_v1 }
  0xa0   : > { %8246 = vmatprep.mubr.msk.bf16.mxu1 %vm9005_vm1, %v9004_v1  ;;  %8250 = vmatprep.subr.bf16.mxu0 %v9004_v1 }
  0xa1   : > { %8256 = vmatprep.subr.bf16.mxu1 %v9004_v1 }
  0xa5   : > { %8241 = vmatmul.mubr.msk.bf16.vlgmr.msra.gmra.mxu0 %vm269_vm2, %v9402_v50 }
  0xa6   : > { %8247 = vmatmul.mubr.msk.bf16.vlgmr.msra.gmra.mxu1 %vm269_vm2, %v1720_v51  ;;  %8251 = vmatpush3.bf16.msra.mxu0 %v9367_v39 }
  0xa7   : > { %8257 = vmatpush3.bf16.msra.mxu1 %v9367_v39  ;;  %8252 = vmatprep.mubr.msk.bf16.mxu0 %vm9005_vm1, %v9004_v1 }
  0xa8   : > { %8258 = vmatprep.mubr.msk.bf16.mxu1 %vm9005_vm1, %v9004_v1  ;;  %8262 = vmatprep.subr.bf16.mxu0 %v9004_v1 }
  0xa9   : > { %8268 = vmatprep.subr.bf16.mxu1 %v9004_v1 }
  0xad   : > { %8253 = vmatmul.mubr.msk.bf16.vlgmr.msra.gmra.mxu0 %vm269_vm2, %v9419_v56 }
  0xae   : > { %8259 = vmatmul.mubr.msk.bf16.vlgmr.msra.gmra.mxu1 %vm269_vm2, %v1722_v57  ;;  %8263 = vmatpush3.bf16.msra.mxu0 %v9367_v39 }
  0xaf   : > { %8269 = vmatpush3.bf16.msra.mxu1 %v9367_v39  ;;  %8264 = vmatprep.mubr.msk.bf16.mxu0 %vm9005_vm1, %v9004_v1 }
  0xb0   : > { %8270 = vmatprep.mubr.msk.bf16.mxu1 %vm9005_vm1, %v9004_v1  ;;  %8274 = vmatprep.subr.bf16.mxu0 %v9004_v1 }
  0xb1   : > { %8280 = vmatprep.subr.bf16.mxu1 %v9004_v1 }
  0xb5   : > { %8265 = vmatmul.mubr.msk.bf16.vlgmr.msra.gmra.mxu0 %vm269_vm2, %v1723_v2 }
  0xb6   : > { %8271 = vmatmul.mubr.msk.bf16.vlgmr.msra.gmra.mxu1 %vm269_vm2, %v1724_v3  ;;  %8275 = vmatpush3.bf16.msra.mxu0 %v9367_v39 }
  0xb7   : > { %8281 = vmatpush3.bf16.msra.mxu1 %v9367_v39  ;;  %8276 = vmatprep.mubr.msk.bf16.mxu0 %vm9005_vm1, %v9004_v1 }
  0xb8   : > { %8282 = vmatprep.mubr.msk.bf16.mxu1 %vm9005_vm1, %v9004_v1  ;;  %8286 = vmatprep.subr.bf16.mxu0 %v9004_v1 }
  0xb9   : > { %8292 = vmatprep.subr.bf16.mxu1 %v9004_v1 }
  0xbd   : > { %8277 = vmatmul.mubr.msk.bf16.vlgmr.msra.gmra.mxu0 %vm269_vm2, %v1725_v10 }
  0xbe   : > { %8283 = vmatmul.mubr.msk.bf16.vlgmr.msra.gmra.mxu1 %vm269_vm2, %v1726_v11  ;;  %8287 = vmatpush3.bf16.msra.mxu0 %v9367_v39 }
  0xbf   : > { %8293 = vmatpush3.bf16.msra.mxu1 %v9367_v39  ;;  %8288 = vmatprep.mubr.msk.bf16.mxu0 %vm9005_vm1, %v9004_v1 }
  0xc0   : > { %8294 = vmatprep.mubr.msk.bf16.mxu1 %vm9005_vm1, %v9004_v1  ;;  %8298 = vmatprep.subr.bf16.mxu0 %v9004_v1 }
  0xc1   : > { %8304 = vmatprep.subr.bf16.mxu1 %v9004_v1 }
  0xc5   : > { %8289 = vmatmul.mubr.msk.bf16.vlgmr.msra.gmra.mxu0 %vm269_vm2, %v1727_v20 }
  0xc6   : > { %8295 = vmatmul.mubr.msk.bf16.vlgmr.msra.gmra.mxu1 %vm269_vm2, %v1728_v21  ;;  %8299 = vmatpush3.bf16.msra.mxu0 %v9367_v39 }
  0xc7   : > { %8305 = vmatpush3.bf16.msra.mxu1 %v9367_v39  ;;  %8300 = vmatprep.mubr.msk.bf16.mxu0 %vm9005_vm1, %v9004_v1 }
  0xc8   : > { %8306 = vmatprep.mubr.msk.bf16.mxu1 %vm9005_vm1, %v9004_v1  ;;  %8310 = vmatprep.subr.bf16.mxu0 %v9004_v1 }
  0xc9   : > { %8316 = vmatprep.subr.bf16.mxu1 %v9004_v1 }
  0xcd   : > { %8301 = vmatmul.mubr.msk.bf16.vlgmr.msra.gmra.mxu0 %vm269_vm2, %v1729_v28 }
  0xce   : > { %8307 = vmatmul.mubr.msk.bf16.vlgmr.msra.gmra.mxu1 %vm269_vm2, %v1730_v29  ;;  %8311 = vmatpush3.bf16.msra.mxu0 %v9367_v39 }
  0xcf   : > { %8317 = vmatpush3.bf16.msra.mxu1 %v9367_v39  ;;  %8312 = vmatprep.mubr.msk.bf16.mxu0 %vm9005_vm1, %v9004_v1  ;;  %v9496_v39 = vsel %vm273_vm0, %v7477_v36, 0 }
  0xd0   : > { %8318 = vmatprep.mubr.msk.bf16.mxu1 %vm9005_vm1, %v9004_v1  ;;  %8322 = vmatprep.subr.bf16.mxu0 %v9004_v1 }
  0xd1   : > { %8328 = vmatprep.subr.bf16.mxu1 %v9004_v1 }
  0xd5   : > { %8313 = vmatmul.mubr.msk.bf16.vlgmr.msra.gmra.mxu0 %vm269_vm2, %v1731_v40 }
  0xd6   : > { %8319 = vmatmul.mubr.msk.bf16.vlgmr.msra.gmra.mxu1 %vm269_vm2, %v1732_v41  ;;  %8323 = vmatpush3.bf16.msra.mxu0 %v9496_v39  ;;  %v2522_v41 = vpack.c.bf16 %v7476_v35, %v7475_v34 }
  0xd7   : > { %8329 = vmatpush3.bf16.msra.mxu1 %v9496_v39  ;;  %8324 = vmatprep.mubr.msk.bf16.mxu0 %vm9005_vm1, %v9004_v1 }
  0xd8   : > { %8330 = vmatprep.mubr.msk.bf16.mxu1 %vm9005_vm1, %v9004_v1  ;;  %8334 = vmatprep.subr.bf16.mxu0 %v9004_v1 }
  0xd9   : > { %8340 = vmatprep.subr.bf16.mxu1 %v9004_v1 }
  0xdd   : > { %v9508_v42 = vpop.f32.mrf.mxu0  ;;  %8325 = vmatmul.mubr.msk.bf16.vlgmr.msra.gmra.mxu0 %vm269_vm2, %v9222_v58 }
  0xde   : > { %v9512_v43 = vpop.f32.mrf.mxu1  ;;  %8331 = vmatmul.mubr.msk.bf16.vlgmr.msra.gmra.mxu1 %vm269_vm2, %v9239_v63  ;;  %8335 = vmatpush3.bf16.msra.mxu0 %v9496_v39 }
  0xdf   : > { %8341 = vmatpush3.bf16.msra.mxu1 %v9496_v39  ;;  %v8038_v44 = vpop.f32.mrf.mxu0  ;;  %8336 = vmatprep.mubr.msk.bf16.mxu0 %vm9005_vm1, %v9004_v1 }
  0xe0   : > { %v8044_v46 = vpop.f32.mrf.mxu1  ;;  %8342 = vmatprep.mubr.msk.bf16.mxu1 %vm9005_vm1, %v9004_v1  ;;  %8346 = vmatprep.subr.bf16.mxu0 %v9004_v1 }
  0xe1   : > { %v9523_v58 = vpop.f32.mrf.mxu0  ;;  %8352 = vmatprep.subr.bf16.mxu1 %v9004_v1 }
  0xe2   : > { %v9526_v47 = vpop.f32.mrf.mxu1 }
  0xe3   : > { %v8039_v63 = vpop.f32.mrf.mxu0 }
  0xe4   : > { %v8045_v48 = vpop.f32.mrf.mxu1 }
  0xe5   : > { %v9528_v49 = vpop.f32.mrf.mxu0  ;;  %8337 = vmatmul.mubr.msk.bf16.vlgmr.msra.gmra.mxu0 %vm269_vm2, %v9241_v0 }
  0xe6   : > { %v9532_v51 = vpop.f32.mrf.mxu1  ;;  %8343 = vmatmul.mubr.msk.bf16.vlgmr.msra.gmra.mxu1 %vm269_vm2, %v9259_v6  ;;  %8347 = vmatpush3.bf16.msra.mxu0 %v9496_v39 }
  0xe7   : > { %8353 = vmatpush3.bf16.msra.mxu1 %v9496_v39  ;;  %v8050_v52 = vpop.f32.mrf.mxu0  ;;  %8348 = vmatprep.mubr.msk.bf16.mxu0 %vm9005_vm1, %v9004_v1 }
  0xe8   : > { %v8056_v53 = vpop.f32.mrf.mxu1  ;;  %8354 = vmatprep.mubr.msk.bf16.mxu1 %vm9005_vm1, %v9004_v1  ;;  %8358 = vmatprep.subr.bf16.mxu0 %v9004_v1  ;;  %v7494_v52 = vld [vmem:[%s9098_s30 + $0x19] sm:$0xff] }
  0xe9   : > { %v9543_v0 = vpop.f32.mrf.mxu0  ;;  %8364 = vmatprep.subr.bf16.mxu1 %v9004_v1  ;;  %v7495_v53 = vld [vmem:[%s9098_s30 + $0x21] sm:$0xff] }
  0xea   : > { %v9546_v54 = vpop.f32.mrf.mxu1 }
  0xeb   : > { %v8051_v6 = vpop.f32.mrf.mxu0 }
  0xec   : > { %v8057_v55 = vpop.f32.mrf.mxu1 }
  0xed   : > { %v9548_v57 = vpop.f32.mrf.mxu0  ;;  %8349 = vmatmul.mubr.msk.bf16.vlgmr.msra.gmra.mxu0 %vm269_vm2, %v9261_v7  ;;  %v7496_v55 = vld [vmem:[%s9098_s30 + $0x31] sm:$0xff] }
  0xee   : > { %v9552_v59 = vpop.f32.mrf.mxu1  ;;  %8355 = vmatmul.mubr.msk.bf16.vlgmr.msra.gmra.mxu1 %vm269_vm2, %v9279_v12  ;;  %8359 = vmatpush3.bf16.msra.mxu0 %v9496_v39 }
  0xef   : > { %8365 = vmatpush3.bf16.msra.mxu1 %v9496_v39  ;;  %v8062_v60 = vpop.f32.mrf.mxu0  ;;  %8360 = vmatprep.mubr.msk.bf16.mxu0 %vm9005_vm1, %v9004_v1 }
  0xf0   : > { %v8068_v61 = vpop.f32.mrf.mxu1  ;;  %8366 = vmatprep.mubr.msk.bf16.mxu1 %vm9005_vm1, %v9004_v1  ;;  %8370 = vmatprep.subr.bf16.mxu0 %v9004_v1  ;;  %v7497_v60 = vld [vmem:[%s9098_s30 + $0x39] sm:$0xff] }
  0xf1   : > { %v9563_v7 = vpop.f32.mrf.mxu0  ;;  %8376 = vmatprep.subr.bf16.mxu1 %v9004_v1 }
  0xf2   : > { %v9566_v62 = vpop.f32.mrf.mxu1 }
  0xf3   : > { %v8063_v12 = vpop.f32.mrf.mxu0 }
  0xf4   : > { %v8069_v2 = vpop.f32.mrf.mxu1  ;;  %v3296_v12 = vpack.c.bf16 %v7495_v53, %v7494_v52 }
  0xf5   : > { %v9568_v3 = vpop.f32.mrf.mxu0  ;;  %8361 = vmatmul.mubr.msk.bf16.vlgmr.msra.gmra.mxu0 %vm269_vm2, %v9281_v13 }
  0xf6   : > { %v9572_v4 = vpop.f32.mrf.mxu1  ;;  %8367 = vmatmul.mubr.msk.bf16.vlgmr.msra.gmra.mxu1 %vm269_vm2, %v9299_v18  ;;  %8371 = vmatpush3.bf16.msra.mxu0 %v9496_v39 }
  0xf7   : > { %8377 = vmatpush3.bf16.msra.mxu1 %v9496_v39  ;;  %v8074_v5 = vpop.f32.mrf.mxu0  ;;  %8372 = vmatprep.mubr.msk.bf16.mxu0 %vm9005_vm1, %v9004_v1 }
  0xf8   : > { %v8080_v8 = vpop.f32.mrf.mxu1  ;;  %8378 = vmatprep.mubr.msk.bf16.mxu1 %vm9005_vm1, %v9004_v1  ;;  %8382 = vmatprep.subr.bf16.mxu0 %v9004_v1  ;;  %v3297_v5 = vpack.c.bf16 %v7497_v60, %v7496_v55  ;;  %v7504_v60 = vld [vmem:[%s9098_s30 + $0x91] sm:$0xff] }
  0xf9   : > { %v9583_v13 = vpop.f32.mrf.mxu0  ;;  %8388 = vmatprep.subr.bf16.mxu1 %v9004_v1 }
  0xfa   : > { %v9586_v9 = vpop.f32.mrf.mxu1 }
  0xfb   : > { %v8075_v18 = vpop.f32.mrf.mxu0 }
  0xfc   : > { %v8081_v10 = vpop.f32.mrf.mxu1 }
  0xfd   : > { %v9588_v11 = vpop.f32.mrf.mxu0  ;;  %8373 = vmatmul.mubr.msk.bf16.vlgmr.msra.gmra.mxu0 %vm269_vm2, %v9301_v19 }
  0xfe   : > { %v9592_v14 = vpop.f32.mrf.mxu1  ;;  %8379 = vmatmul.mubr.msk.bf16.vlgmr.msra.gmra.mxu1 %vm269_vm2, %v9319_v24  ;;  %8383 = vmatpush3.bf16.msra.mxu0 %v9496_v39 }
  0xff   : > { %8389 = vmatpush3.bf16.msra.mxu1 %v9496_v39  ;;  %v8086_v15 = vpop.f32.mrf.mxu0  ;;  %8384 = vmatprep.mubr.msk.bf16.mxu0 %vm9005_vm1, %v9004_v1 }
 0x100   : > { %v8092_v16 = vpop.f32.mrf.mxu1  ;;  %8390 = vmatprep.mubr.msk.bf16.mxu1 %vm9005_vm1, %v9004_v1  ;;  %8394 = vmatprep.subr.bf16.mxu0 %v9004_v1 }
 0x101   : > { %v9603_v19 = vpop.f32.mrf.mxu0  ;;  %8400 = vmatprep.subr.bf16.mxu1 %v9004_v1 }
 0x102   : > { %v9606_v17 = vpop.f32.mrf.mxu1 }
 0x103   : > { %v8087_v24 = vpop.f32.mrf.mxu0 }
 0x104   : > { %v8093_v20 = vpop.f32.mrf.mxu1  ;;  %v7498_v24 = vld [vmem:[%s9098_s30 + $0x49] sm:$0xff] }
 0x105   : > { %v9608_v21 = vpop.f32.mrf.mxu0  ;;  %8385 = vmatmul.mubr.msk.bf16.vlgmr.msra.gmra.mxu0 %vm269_vm2, %v9321_v25  ;;  %v7499_v20 = vld [vmem:[%s9098_s30 + $0x51] sm:$0xff] }
 0x106   : > { %v9612_v22 = vpop.f32.mrf.mxu1  ;;  %8391 = vmatmul.mubr.msk.bf16.vlgmr.msra.gmra.mxu1 %vm269_vm2, %v9339_v30  ;;  %8395 = vmatpush3.bf16.msra.mxu0 %v9496_v39 }
 0x107   : > { %8401 = vmatpush3.bf16.msra.mxu1 %v9496_v39  ;;  %v8098_v23 = vpop.f32.mrf.mxu0  ;;  %8396 = vmatprep.mubr.msk.bf16.mxu0 %vm9005_vm1, %v9004_v1 }
 0x108   : > { %v8104_v26 = vpop.f32.mrf.mxu1  ;;  %8402 = vmatprep.mubr.msk.bf16.mxu1 %vm9005_vm1, %v9004_v1  ;;  %8406 = vmatprep.subr.bf16.mxu0 %v9004_v1 }
 0x109   : > { %v9623_v25 = vpop.f32.mrf.mxu0  ;;  %8412 = vmatprep.subr.bf16.mxu1 %v9004_v1 }
 0x10a   : > { %v9626_v30 = vpop.f32.mrf.mxu1 }
 0x10b   : > { %v8099_v27 = vpop.f32.mrf.mxu0 }
 0x10c   : > { %v8105_v28 = vpop.f32.mrf.mxu1  ;;  %v7500_v27 = vld [vmem:[%s9098_s30 + $0x61] sm:$0xff] }
 0x10d   : > { %v9628_v29 = vpop.f32.mrf.mxu0  ;;  %8397 = vmatmul.mubr.msk.bf16.vlgmr.msra.gmra.mxu0 %vm269_vm2, %v9341_v31  ;;  %v7526_v31 = vld [vmem:[%s11076_s1 + $0x8] sm:$0x3] }
 0x10e   : > { %v9632_v32 = vpop.f32.mrf.mxu1  ;;  %8403 = vmatmul.mubr.msk.bf16.vlgmr.msra.gmra.mxu1 %vm269_vm2, %v9362_v37  ;;  %8407 = vmatpush3.bf16.msra.mxu0 %v9496_v39  ;;  %v9654_v44 = vsel %vm273_vm0, %v7526_v31, 0  ;;  %v7501_v28 = vld [vmem:[%s9098_s30 + $0x69] sm:$0xff] }
 0x10f   : > { %8413 = vmatpush3.bf16.msra.mxu1 %v9496_v39  ;;  %v8110_v33 = vpop.f32.mrf.mxu0  ;;  %8408 = vmatprep.mubr.msk.bf16.mxu0 %vm9005_vm1, %v9004_v1 }
 0x110   : > { %v8116_v36 = vpop.f32.mrf.mxu1  ;;  %8414 = vmatprep.mubr.msk.bf16.mxu1 %vm9005_vm1, %v9004_v1  ;;  %8418 = vmatprep.subr.bf16.mxu0 %v9004_v1 }
 0x111   : > { %v9648_v37 = vpop.f32.mrf.mxu0  ;;  %8424 = vmatprep.subr.bf16.mxu1 %v9004_v1  ;;  %v3299_v36 = vpack.c.bf16 %v7501_v28, %v7500_v27  ;;  %v7507_v28 = vld [vmem:[%s9098_s30 + $0xb1] sm:$0xff] }
 0x112   : > { %v9651_v40 = vpop.f32.mrf.mxu1 }
 0x113   : > { %v8111_v39 = vpop.f32.mrf.mxu0 }
 0x114   : > { %v8117_v46 = vpop.f32.mrf.mxu1 }
 0x115   : > { %v9656_v63 = vpop.f32.mrf.mxu0  ;;  %8409 = vmatmul.mubr.msk.bf16.vlgmr.msra.gmra.mxu0 %vm269_vm2, %v9364_v38 }
 0x116   : > { %v9660_v48 = vpop.f32.mrf.mxu1  ;;  %8415 = vmatmul.mubr.msk.bf16.vlgmr.msra.gmra.mxu1 %vm269_vm2, %v2522_v41  ;;  %8419 = vmatpush3.bf16.msra.mxu0 %v9654_v44 }
 0x117   : > { %8425 = vmatpush3.bf16.msra.mxu1 %v9654_v44  ;;  %v8122_v6 = vpop.f32.mrf.mxu0  ;;  %8420 = vmatprep.mubr.msk.bf16.mxu0 %vm9005_vm1, %v9004_v1 }
 0x118   : > { %v8128_v61 = vpop.f32.mrf.mxu1  ;;  %8426 = vmatprep.mubr.msk.bf16.mxu1 %vm9005_vm1, %v9004_v1  ;;  %8430 = vmatprep.subr.bf16.mxu0 %v9004_v1  ;;  %v7503_v6 = vld [vmem:[%s9098_s30 + $0x81] sm:$0xff] }
 0x119   : > { %v9674_v38 = vpop.f32.mrf.mxu0  ;;  %8436 = vmatprep.subr.bf16.mxu1 %v9004_v1  ;;  %v7505_v61 = vld [vmem:[%s9098_s30 + $0x99] sm:$0xff] }
 0x11a   : > { %v9677_v2 = vpop.f32.mrf.mxu1 }
 0x11b   : > { %v8123_v8 = vpop.f32.mrf.mxu0 }
 0x11c   : > { %v8129_v18 = vpop.f32.mrf.mxu1 }
 0x11d   : > { %v1018_v10 = vpop.f32.mrf.mxu0  ;;  %8421 = vmatmul.mubr.msk.bf16.vlgmr.msra.gmra.mxu0 %vm269_vm2, %v3296_v12  ;;  %v3301_v18 = vpack.c.bf16 %v7505_v61, %v7504_v60  ;;  %v7511_v61 = vld [vmem:[%s9098_s30 + $0xe1] sm:$0xff] }
 0x11e   : > { %v9681_v15 = vadd.f32 %v1018_v10, %v9508_v42  ;;  %v1062_v16 = vpop.f32.mrf.mxu1  ;;  %8427 = vmatmul.mubr.msk.bf16.vlgmr.msra.gmra.mxu1 %vm269_vm2, %v3297_v5  ;;  %8431 = vmatpush3.bf16.msra.mxu0 %v9654_v44 }
 0x11f   : > { %v9688_v23 = vadd.f32 %v1062_v16, %v9512_v43  ;;  %8437 = vmatpush3.bf16.msra.mxu1 %v9654_v44  ;;  %v8134_v26 = vpop.f32.mrf.mxu0  ;;  %8432 = vmatprep.mubr.msk.bf16.mxu0 %vm9005_vm1, %v9004_v1  ;;  %v3298_v43 = vpack.c.bf16 %v7499_v20, %v7498_v24 }
 0x120   : > { %v8140_v42 = vpop.f32.mrf.mxu1  ;;  %8438 = vmatprep.mubr.msk.bf16.mxu1 %vm9005_vm1, %v9004_v1  ;;  %8442 = vmatprep.subr.bf16.mxu0 %v9004_v1 }
 0x121   : > { %v1021_v33 = vpop.f32.mrf.mxu0  ;;  %8448 = vmatprep.subr.bf16.mxu1 %v9004_v1 }
 0x122   : > { %v9700_v34 = vadd.f32 %v1021_v33, %v9523_v58  ;;  %v1065_v35 = vpop.f32.mrf.mxu1  ;;  %v7502_v58 = vld [vmem:[%s9098_s30 + $0x79] sm:$0xff]  ;;  %v7508_v33 = vld [vmem:[%s9098_s30 + $0xc1] sm:$0xff] }
 0x123   : > { %v9703_v31 = vadd.f32 %v1065_v35, %v9526_v47  ;;  %v8135_v41 = vpop.f32.mrf.mxu0 }
 0x124   : > { %v8141_v39 = vpop.f32.mrf.mxu1 }
 0x125   : > { %v1106_v46 = vpop.f32.mrf.mxu0  ;;  %8433 = vmatmul.mubr.msk.bf16.vlgmr.msra.gmra.mxu0 %vm269_vm2, %v3298_v43  ;;  %v7509_v43 = vld [vmem:[%s9098_s30 + $0xc9] sm:$0xff] }
 0x126   : > { %v9707_v52 = vadd.f32 %v1106_v46, %v9528_v49  ;;  %v1150_v53 = vpop.f32.mrf.mxu1  ;;  %8439 = vmatmul.mubr.msk.bf16.vlgmr.msra.gmra.mxu1 %vm269_vm2, %v3299_v36  ;;  %8443 = vmatpush3.bf16.msra.mxu0 %v9654_v44  ;;  %v3303_v39 = vpack.c.bf16 %v7509_v43, %v7508_v33  ;;  %v7515_v43 = vld [vmem:[%s9098_s30 + $0x111] sm:$0xff] }
 0x127   : > { %v9714_v55 = vadd.f32 %v1150_v53, %v9532_v51  ;;  %8449 = vmatpush3.bf16.msra.mxu1 %v9654_v44  ;;  %v8146_v47 = vpop.f32.mrf.mxu0  ;;  %8444 = vmatprep.mubr.msk.bf16.mxu0 %vm9005_vm1, %v9004_v1  ;;  %v3300_v51 = vpack.c.bf16 %v7503_v6, %v7502_v58 }
 0x128   : > { %v8152_v49 = vpop.f32.mrf.mxu1  ;;  %8450 = vmatprep.mubr.msk.bf16.mxu1 %vm9005_vm1, %v9004_v1  ;;  %8454 = vmatprep.subr.bf16.mxu0 %v9004_v1 }
 0x129   : > { %v1109_v12 = vpop.f32.mrf.mxu0  ;;  %8460 = vmatprep.subr.bf16.mxu1 %v9004_v1 }
 0x12a   : > { %v9726_v5 = vadd.f32 %v1109_v12, %v9543_v0  ;;  %v1153_v8 = vpop.f32.mrf.mxu1  ;;  %v7506_v0 = vld [vmem:[%s9098_s30 + $0xa9] sm:$0xff]  ;;  %v7512_v12 = vld [vmem:[%s9098_s30 + $0xf1] sm:$0xff] }
 0x12b   : > { %v9729_v10 = vadd.f32 %v1153_v8, %v9546_v54  ;;  %v8147_v16 = vpop.f32.mrf.mxu0 }
 0x12c   : > { %v8153_v24 = vpop.f32.mrf.mxu1 }
 0x12d   : > { %v1194_v20 = vpop.f32.mrf.mxu0  ;;  %8445 = vmatmul.mubr.msk.bf16.vlgmr.msra.gmra.mxu0 %vm269_vm2, %v3300_v51  ;;  %v7513_v51 = vld [vmem:[%s9098_s30 + $0xf9] sm:$0xff] }
 0x12e   : > { %v9733_v26 = vadd.f32 %v1194_v20, %v9548_v57  ;;  %v1238_v27 = vpop.f32.mrf.mxu1  ;;  %8451 = vmatmul.mubr.msk.bf16.vlgmr.msra.gmra.mxu1 %vm269_vm2, %v3301_v18  ;;  %8455 = vmatpush3.bf16.msra.mxu0 %v9654_v44  ;;  %v3305_v24 = vpack.c.bf16 %v7513_v51, %v7512_v12  ;;  %v7519_v51 = vld [vmem:[%s9098_s30 + $0x141] sm:$0xff] }
 0x12f   : > { %v9740_v42 = vadd.f32 %v1238_v27, %v9552_v59  ;;  %8461 = vmatpush3.bf16.msra.mxu1 %v9654_v44  ;;  %v8158_v54 = vpop.f32.mrf.mxu0  ;;  %8456 = vmatprep.mubr.msk.bf16.mxu0 %vm9005_vm1, %v9004_v1  ;;  %v3302_v59 = vpack.c.bf16 %v7507_v28, %v7506_v0 }
 0x130   : > { %v8164_v57 = vpop.f32.mrf.mxu1  ;;  %8462 = vmatprep.mubr.msk.bf16.mxu1 %vm9005_vm1, %v9004_v1  ;;  %8466 = vmatprep.subr.bf16.mxu0 %v9004_v1 }
 0x131   : > { %v1197_v35 = vpop.f32.mrf.mxu0  ;;  %8472 = vmatprep.subr.bf16.mxu1 %v9004_v1 }
 0x132   : > { %v9752_v36 = vadd.f32 %v1197_v35, %v9563_v7  ;;  %v1241_v41 = vpop.f32.mrf.mxu1  ;;  %v7510_v7 = vld [vmem:[%s9098_s30 + $0xd9] sm:$0xff]  ;;  %v7516_v35 = vld [vmem:[%s9098_s30 + $0x121] sm:$0xff] }
 0x133   : > { %v9755_v46 = vadd.f32 %v1241_v41, %v9566_v62  ;;  %v8159_v53 = vpop.f32.mrf.mxu0 }
 0x134   : > { %v8165_v58 = vpop.f32.mrf.mxu1 }
 0x135   : > { %v1282_v6 = vpop.f32.mrf.mxu0  ;;  %8457 = vmatmul.mubr.msk.bf16.vlgmr.msra.gmra.mxu0 %vm269_vm2, %v3302_v59  ;;  %v7517_v59 = vld [vmem:[%s9098_s30 + $0x129] sm:$0xff] }
 0x136   : > { %v9759_v47 = vadd.f32 %v1282_v6, %v9568_v3  ;;  %v1326_v60 = vpop.f32.mrf.mxu1  ;;  %8463 = vmatmul.mubr.msk.bf16.vlgmr.msra.gmra.mxu1 %vm269_vm2, %v3303_v39  ;;  %8467 = vmatpush3.bf16.msra.mxu0 %v9654_v44  ;;  %v3307_v58 = vpack.c.bf16 %v7517_v59, %v7516_v35  ;;  %v7523_v59 = vld [vmem:[%s9098_s30 + $0x171] sm:$0xff] }
 0x137   : > { %v9766_v49 = vadd.f32 %v1326_v60, %v9572_v4  ;;  %8473 = vmatpush3.bf16.msra.mxu1 %v9654_v44  ;;  %v8170_v62 = vpop.f32.mrf.mxu0  ;;  %8468 = vmatprep.mubr.msk.bf16.mxu0 %vm9005_vm1, %v9004_v1  ;;  %v3304_v4 = vpack.c.bf16 %v7511_v61, %v7510_v7 }
 0x138   : > { %v8176_v3 = vpop.f32.mrf.mxu1  ;;  %8474 = vmatprep.mubr.msk.bf16.mxu1 %vm9005_vm1, %v9004_v1  ;;  %8478 = vmatprep.subr.bf16.mxu0 %v9004_v1 }
 0x139   : > { %v1285_v8 = vpop.f32.mrf.mxu0  ;;  %8484 = vmatprep.subr.bf16.mxu1 %v9004_v1 }
 0x13a   : > { %v9778_v18 = vadd.f32 %v1285_v8, %v9583_v13  ;;  %v1329_v16 = vpop.f32.mrf.mxu1  ;;  %v7514_v13 = vld [vmem:[%s9098_s30 + $0x109] sm:$0xff]  ;;  %v7520_v8 = vld [vmem:[%s9098_s30 + $0x151] sm:$0xff] }
 0x13b   : > { %v9781_v20 = vadd.f32 %v1329_v16, %v9586_v9  ;;  %v8171_v27 = vpop.f32.mrf.mxu0 }
 0x13c   : > { %v8177_v0 = vpop.f32.mrf.mxu1 }
 0x13d   : > { %v1370_v28 = vpop.f32.mrf.mxu0  ;;  %8469 = vmatmul.mubr.msk.bf16.vlgmr.msra.gmra.mxu0 %vm269_vm2, %v3304_v4  ;;  %v7521_v4 = vld [vmem:[%s9098_s30 + $0x159] sm:$0xff] }
 0x13e   : > { %v9785_v54 = vadd.f32 %v1370_v28, %v9588_v11  ;;  %v1414_v33 = vpop.f32.mrf.mxu1  ;;  %8475 = vmatmul.mubr.msk.bf16.vlgmr.msra.gmra.mxu1 %vm269_vm2, %v3305_v24  ;;  %8479 = vmatpush3.bf16.msra.mxu0 %v9654_v44  ;;  %v3309_v0 = vpack.c.bf16 %v7521_v4, %v7520_v8 }
 0x13f   : > { %v9792_v57 = vadd.f32 %v1414_v33, %v9592_v14  ;;  %8485 = vmatpush3.bf16.msra.mxu1 %v9654_v44  ;;  %v8182_v9 = vpop.f32.mrf.mxu0  ;;  %8480 = vmatprep.mubr.msk.bf16.mxu0 %vm9005_vm1, %v9004_v1  ;;  %v3306_v14 = vpack.c.bf16 %v7515_v43, %v7514_v13 }
 0x140   : > { %v8188_v11 = vpop.f32.mrf.mxu1  ;;  %8486 = vmatprep.mubr.msk.bf16.mxu1 %vm9005_vm1, %v9004_v1  ;;  %8490 = vmatprep.subr.bf16.mxu0 %v9004_v1 }
 0x141   : > { %v1373_v41 = vpop.f32.mrf.mxu0  ;;  %8496 = vmatprep.subr.bf16.mxu1 %v9004_v1 }
 0x142   : > { %v9804_v39 = vadd.f32 %v1373_v41, %v9603_v19  ;;  %v1417_v53 = vpop.f32.mrf.mxu1  ;;  %v7518_v19 = vld [vmem:[%s9098_s30 + $0x139] sm:$0xff]  ;;  %v7524_v41 = vld [vmem:[%s9098_s30 + $0x181] sm:$0xff] }
 0x143   : > { %v9807_v6 = vadd.f32 %v1417_v53, %v9606_v17  ;;  %v8183_v60 = vpop.f32.mrf.mxu0  ;;  %v7575_v53 = vld [vmem:[%s11076_s1 + $0xa] sm:$0x3] }
 0x144   : > { %v8189_v7 = vpop.f32.mrf.mxu1 }
 0x145   : > { %v1458_v61 = vpop.f32.mrf.mxu0  ;;  %8481 = vmatmul.mubr.msk.bf16.vlgmr.msra.gmra.mxu0 %vm269_vm2, %v3306_v14  ;;  %v7525_v14 = vld [vmem:[%s9098_s30 + $0x189] sm:$0xff] }
 0x146   : > { %v9811_v62 = vadd.f32 %v1458_v61, %v9608_v21  ;;  %v1502_v12 = vpop.f32.mrf.mxu1  ;;  %8487 = vmatmul.mubr.msk.bf16.vlgmr.msra.gmra.mxu1 %vm269_vm2, %v3307_v58  ;;  %8491 = vmatpush3.bf16.msra.mxu0 %v9654_v44  ;;  %v3311_v7 = vpack.c.bf16 %v7525_v14, %v7524_v41 }
 0x147   : > { %v9818_v3 = vadd.f32 %v1502_v12, %v9612_v22  ;;  %8497 = vmatpush3.bf16.msra.mxu1 %v9654_v44  ;;  %v8194_v17 = vpop.f32.mrf.mxu0  ;;  %8492 = vmatprep.mubr.msk.bf16.mxu0 %vm9005_vm1, %v9004_v1  ;;  %v3308_v22 = vpack.c.bf16 %v7519_v51, %v7518_v19  ;;  %v9865_v19 = vsel %vm273_vm0, %v7575_v53, 0 }
 0x148   : > { %v8200_v21 = vpop.f32.mrf.mxu1  ;;  %8498 = vmatprep.mubr.msk.bf16.mxu1 %vm9005_vm1, %v9004_v1  ;;  %8502 = vmatprep.subr.bf16.mxu0 %v9004_v1 }
 0x149   : > { %v1461_v16 = vpop.f32.mrf.mxu0  ;;  %8508 = vmatprep.subr.bf16.mxu1 %v9004_v1 }
 0x14a   : > { %v9830_v24 = vadd.f32 %v1461_v16, %v9623_v25  ;;  %v1505_v27 = vpop.f32.mrf.mxu1  ;;  %v7522_v25 = vld [vmem:[%s9098_s30 + $0x169] sm:$0xff] }
 0x14b   : > { %v9833_v28 = vadd.f32 %v1505_v27, %v9626_v30  ;;  %v8195_v33 = vpop.f32.mrf.mxu0 }
 0x14c   : > { %v8201_v13 = vpop.f32.mrf.mxu1 }
 0x14d   : > { %v1546_v43 = vpop.f32.mrf.mxu0  ;;  %8493 = vmatmul.mubr.msk.bf16.vlgmr.msra.gmra.mxu0 %vm269_vm2, %v3308_v22 }
 0x14e   : > { %v9837_v9 = vadd.f32 %v1546_v43, %v9628_v29  ;;  %v1590_v35 = vpop.f32.mrf.mxu1  ;;  %8499 = vmatmul.mubr.msk.bf16.vlgmr.msra.gmra.mxu1 %vm269_vm2, %v3309_v0  ;;  %8503 = vmatpush3.bf16.msra.mxu0 %v9654_v44 }
 0x14f   : > { %v9844_v11 = vadd.f32 %v1590_v35, %v9632_v32  ;;  %8509 = vmatpush3.bf16.msra.mxu1 %v9654_v44  ;;  %v8206_v30 = vpop.f32.mrf.mxu0  ;;  %8504 = vmatprep.mubr.msk.bf16.mxu0 %vm9005_vm1, %v9004_v1  ;;  %v3310_v44 = vpack.c.bf16 %v7523_v59, %v7522_v25  ;;  %v7548_v35 = vld [vmem:[%s9098_s30 + $0x52] sm:$0xff] }
 0x150   : > { %v8212_v29 = vpop.f32.mrf.mxu1  ;;  %8510 = vmatprep.mubr.msk.bf16.mxu1 %vm9005_vm1, %v9004_v1  ;;  %8514 = vmatprep.subr.bf16.mxu0 %v9004_v1 }
 0x151   : > { %v1549_v32 = vpop.f32.mrf.mxu0  ;;  %8520 = vmatprep.subr.bf16.mxu1 %v9004_v1 }
 0x152   : > { %v9859_v58 = vadd.f32 %v1549_v32, %v9648_v37  ;;  %v1593_v60 = vpop.f32.mrf.mxu1 }
 0x153   : > { %v9862_v61 = vadd.f32 %v1593_v60, %v9651_v40  ;;  %v8207_v12 = vpop.f32.mrf.mxu0 }
 0x154   : > { %v8213_v51 = vpop.f32.mrf.mxu1 }
 0x155   : > { %v1634_v17 = vpop.f32.mrf.mxu0  ;;  %8505 = vmatmul.mubr.msk.bf16.vlgmr.msra.gmra.mxu0 %vm269_vm2, %v3310_v44  ;;  %v7552_v44 = vld [vmem:[%s9098_s30 + $0x82] sm:$0xff] }
 0x156   : > { %v9869_v8 = vadd.f32 %v1634_v17, %v9656_v63  ;;  %v1678_v4 = vpop.f32.mrf.mxu1  ;;  %8511 = vmatmul.mubr.msk.bf16.vlgmr.msra.gmra.mxu1 %vm269_vm2, %v3311_v7  ;;  %8515 = vmatpush3.bf16.msra.mxu0 %v9865_v19  ;;  %v7553_v7 = vld [vmem:[%s9098_s30 + $0x92] sm:$0xff] }
 0x157   : > { %v9874_v37 = vadd.f32 %v1678_v4, %v9660_v48  ;;  %8521 = vmatpush3.bf16.msra.mxu1 %v9865_v19  ;;  %v8218_v40 = vpop.f32.mrf.mxu0  ;;  %8516 = vmatprep.mubr.msk.bf16.mxu0 %vm9005_vm1, %v9004_v1 }
 0x158   : > { %v8224_v21 = vpop.f32.mrf.mxu1  ;;  %8522 = vmatprep.mubr.msk.bf16.mxu1 %vm9005_vm1, %v9004_v1  ;;  %8526 = vmatprep.subr.bf16.mxu0 %v9004_v1 }
 0x159   : > { %v1637_v63 = vpop.f32.mrf.mxu0  ;;  %8532 = vmatprep.subr.bf16.mxu1 %v9004_v1 }
 0x15a   : > { %v9884_v48 = vadd.f32 %v1637_v63, %v9674_v38  ;;  %v1681_v16 = vpop.f32.mrf.mxu1  ;;  %v7547_v38 = vld [vmem:[%s9098_s30 + $0x4a] sm:$0xff] }
 0x15b   : > { %v9887_v22 = vadd.f32 %v1681_v16, %v9677_v2  ;;  %v8219_v27 = vpop.f32.mrf.mxu0 }
 0x15c   : > { %v8225_v0 = vpop.f32.mrf.mxu1 }
 0x15d   : > { %v1775_v33 = vpop.f32.mrf.mxu0  ;;  %8517 = vmatmul.mubr.msk.bf16.vlgmr.msra.gmra.mxu0 %vm269_vm2, %v9385_v45 }
 0x15e   : > { %v9892_v13 = vadd.f32 %v1775_v33, %v9681_v15  ;;  %v1819_v43 = vpop.f32.mrf.mxu1  ;;  %8523 = vmatmul.mubr.msk.bf16.vlgmr.msra.gmra.mxu1 %vm269_vm2, %v9402_v50  ;;  %8527 = vmatpush3.bf16.msra.mxu0 %v9865_v19  ;;  %v4087_v15 = vpack.c.bf16 %v7548_v35, %v7547_v38  ;;  %v7556_v33 = vld [vmem:[%s9098_s30 + $0xb2] sm:$0xff]  ;;  %v7557_v38 = vld [vmem:[%s9098_s30 + $0xc2] sm:$0xff]  ;;  %v7558_v35 = vld [vmem:[%s9098_s30 + $0xca] sm:$0xff] }
 0x15f   : > { %v9900_v2 = vadd.f32 %v1819_v43, %v9688_v23  ;;  %8533 = vmatpush3.bf16.msra.mxu1 %v9865_v19  ;;  %v8230_v25 = vpop.f32.mrf.mxu0  ;;  %8528 = vmatprep.mubr.msk.bf16.mxu0 %vm9005_vm1, %v9004_v1 }
 0x160   : > { %v8236_v45 = vpop.f32.mrf.mxu1  ;;  %8534 = vmatprep.mubr.msk.bf16.mxu1 %vm9005_vm1, %v9004_v1  ;;  %8538 = vmatprep.subr.bf16.mxu0 %v9004_v1 }
 0x161   : > { %v1778_v50 = vpop.f32.mrf.mxu0  ;;  %8544 = vmatprep.subr.bf16.mxu1 %v9004_v1 }
 0x162   : > { %v9910_v23 = vadd.f32 %v1778_v50, %v9700_v34  ;;  %v1822_v59 = vpop.f32.mrf.mxu1  ;;  %v7551_v34 = vld [vmem:[%s9098_s30 + $0x7a] sm:$0xff] }
 0x163   : > { %v9913_v30 = vadd.f32 %v1822_v59, %v9703_v31  ;;  %v8231_v41 = vpop.f32.mrf.mxu0 }
 0x164   : > { %v8237_v14 = vpop.f32.mrf.mxu1 }
 0x165   : > { %v1863_v29 = vpop.f32.mrf.mxu0  ;;  %8529 = vmatmul.mubr.msk.bf16.vlgmr.msra.gmra.mxu0 %vm269_vm2, %v4087_v15  ;;  %v4092_v15 = vpack.c.bf16 %v7558_v35, %v7557_v38  ;;  %v7565_v38 = vld [vmem:[%s9098_s30 + $0x122] sm:$0xff]  ;;  %v7566_v35 = vld [vmem:[%s9098_s30 + $0x12a] sm:$0xff] }
 0x166   : > { %v9917_v53 = vadd.f32 %v1863_v29, %v9707_v52  ;;  %v1907_v32 = vpop.f32.mrf.mxu1  ;;  %8535 = vmatmul.mubr.msk.bf16.vlgmr.msra.gmra.mxu1 %vm269_vm2, %v9419_v56  ;;  %8539 = vmatpush3.bf16.msra.mxu0 %v9865_v19  ;;  %v7554_v52 = vld [vmem:[%s9098_s30 + $0x9a] sm:$0xff] }
 0x167   : > { %v9925_v31 = vadd.f32 %v1907_v32, %v9714_v55  ;;  %8545 = vmatpush3.bf16.msra.mxu1 %v9865_v19  ;;  %v8242_v60 = vpop.f32.mrf.mxu0  ;;  %8540 = vmatprep.mubr.msk.bf16.mxu0 %vm9005_vm1, %v9004_v1  ;;  %v4089_v55 = vpack.c.bf16 %v7552_v44, %v7551_v34  ;;  %v4090_v4 = vpack.c.bf16 %v7554_v52, %v7553_v7  ;;  %v7560_v44 = vld [vmem:[%s9098_s30 + $0xe2] sm:$0xff]  ;;  %v7561_v7 = vld [vmem:[%s9098_s30 + $0xf2] sm:$0xff]  ;;  %v7562_v52 = vld [vmem:[%s9098_s30 + $0xfa] sm:$0xff] }
 0x168   : > { %v8248_v12 = vpop.f32.mrf.mxu1  ;;  %8546 = vmatprep.mubr.msk.bf16.mxu1 %vm9005_vm1, %v9004_v1  ;;  %8550 = vmatprep.subr.bf16.mxu0 %v9004_v1 }
 0x169   : > { %v1866_v56 = vpop.f32.mrf.mxu0  ;;  %8556 = vmatprep.subr.bf16.mxu1 %v9004_v1 }
 0x16a   : > { %v9937_v51 = vadd.f32 %v1866_v56, %v9726_v5  ;;  %v1910_v17 = vpop.f32.mrf.mxu1  ;;  %v7555_v5 = vld [vmem:[%s9098_s30 + $0xaa] sm:$0xff] }
 0x16b   : > { %v9940_v40 = vadd.f32 %v1910_v17, %v9729_v10  ;;  %v8243_v21 = vpop.f32.mrf.mxu0  ;;  %v4094_v17 = vpack.c.bf16 %v7562_v52, %v7561_v7  ;;  %v7569_v7 = vld [vmem:[%s9098_s30 + $0x152] sm:$0xff]  ;;  %v7570_v52 = vld [vmem:[%s9098_s30 + $0x15a] sm:$0xff] }
 0x16c   : > { %v8249_v63 = vpop.f32.mrf.mxu1 }
 0x16d   : > { %v1951_v16 = vpop.f32.mrf.mxu0  ;;  %8541 = vmatmul.mubr.msk.bf16.vlgmr.msra.gmra.mxu0 %vm269_vm2, %v4089_v55 }
 0x16e   : > { %v9944_v27 = vadd.f32 %v1951_v16, %v9733_v26  ;;  %v1995_v0 = vpop.f32.mrf.mxu1  ;;  %8547 = vmatmul.mubr.msk.bf16.vlgmr.msra.gmra.mxu1 %vm269_vm2, %v4090_v4  ;;  %8551 = vmatpush3.bf16.msra.mxu0 %v9865_v19 }
 0x16f   : > { %v9951_v43 = vadd.f32 %v1995_v0, %v9740_v42  ;;  %8557 = vmatpush3.bf16.msra.mxu1 %v9865_v19  ;;  %v8254_v10 = vpop.f32.mrf.mxu0  ;;  %8552 = vmatprep.mubr.msk.bf16.mxu0 %vm9005_vm1, %v9004_v1  ;;  %v4091_v42 = vpack.c.bf16 %v7556_v33, %v7555_v5  ;;  %v7564_v33 = vld [vmem:[%s9098_s30 + $0x112] sm:$0xff] }
 0x170   : > { %v8260_v26 = vpop.f32.mrf.mxu1  ;;  %8558 = vmatprep.mubr.msk.bf16.mxu1 %vm9005_vm1, %v9004_v1  ;;  %8562 = vmatprep.subr.bf16.mxu0 %v9004_v1 }
 0x171   : > { %v1954_v25 = vpop.f32.mrf.mxu0  ;;  %8568 = vmatprep.subr.bf16.mxu1 %v9004_v1 }
 0x172   : > { %v9963_v45 = vadd.f32 %v1954_v25, %v9752_v36  ;;  %v1998_v50 = vpop.f32.mrf.mxu1  ;;  %v7559_v36 = vld [vmem:[%s9098_s30 + $0xda] sm:$0xff] }
 0x173   : > { %v9966_v59 = vadd.f32 %v1998_v50, %v9755_v46  ;;  %v8255_v41 = vpop.f32.mrf.mxu0  ;;  %v4096_v50 = vpack.c.bf16 %v7566_v35, %v7565_v38  ;;  %v7573_v38 = vld [vmem:[%s9098_s30 + $0x182] sm:$0xff]  ;;  %v7574_v35 = vld [vmem:[%s9098_s30 + $0x18a] sm:$0xff] }
 0x174   : > { %v8261_v14 = vpop.f32.mrf.mxu1 }
 0x175   : > { %v2039_v29 = vpop.f32.mrf.mxu0  ;;  %8553 = vmatmul.mubr.msk.bf16.vlgmr.msra.gmra.mxu0 %vm269_vm2, %v4091_v42 }
 0x176   : > { %v9970_v32 = vadd.f32 %v2039_v29, %v9759_v47  ;;  %v2083_v34 = vpop.f32.mrf.mxu1  ;;  %8559 = vmatmul.mubr.msk.bf16.vlgmr.msra.gmra.mxu1 %vm269_vm2, %v4092_v15  ;;  %8563 = vmatpush3.bf16.msra.mxu0 %v9865_v19 }
 0x177   : > { %v9977_v60 = vadd.f32 %v2083_v34, %v9766_v49  ;;  %8569 = vmatpush3.bf16.msra.mxu1 %v9865_v19  ;;  %v8266_v46 = vpop.f32.mrf.mxu0  ;;  %8564 = vmatprep.mubr.msk.bf16.mxu0 %vm9005_vm1, %v9004_v1  ;;  %v4093_v49 = vpack.c.bf16 %v7560_v44, %v7559_v36  ;;  %v7568_v44 = vld [vmem:[%s9098_s30 + $0x142] sm:$0xff] }
 0x178   : > { %v8272_v47 = vpop.f32.mrf.mxu1  ;;  %8570 = vmatprep.mubr.msk.bf16.mxu1 %vm9005_vm1, %v9004_v1  ;;  %8574 = vmatprep.subr.bf16.mxu0 %v9004_v1 }
 0x179   : > { %v2042_v12 = vpop.f32.mrf.mxu0  ;;  %8580 = vmatprep.subr.bf16.mxu1 %v9004_v1 }
 0x17a   : > { %v9989_v56 = vadd.f32 %v2042_v12, %v9778_v18  ;;  %v2086_v55 = vpop.f32.mrf.mxu1  ;;  %v7563_v18 = vld [vmem:[%s9098_s30 + $0x10a] sm:$0xff] }
 0x17b   : > { %v9992_v4 = vadd.f32 %v2086_v55, %v9781_v20  ;;  %v8267_v21 = vpop.f32.mrf.mxu0  ;;  %v4098_v55 = vpack.c.bf16 %v7570_v52, %v7569_v7  ;;  %v7594_v52 = vld [vmem:[%s9098_s30 + $0x48] sm:$0xff] }
 0x17c   : > { %v8273_v63 = vpop.f32.mrf.mxu1 }
 0x17d   : > { %v2127_v16 = vpop.f32.mrf.mxu0  ;;  %8565 = vmatmul.mubr.msk.bf16.vlgmr.msra.gmra.mxu0 %vm269_vm2, %v4093_v49 }
 0x17e   : > { %v9996_v0 = vadd.f32 %v2127_v16, %v9785_v54  ;;  %v2171_v5 = vpop.f32.mrf.mxu1  ;;  %8571 = vmatmul.mubr.msk.bf16.vlgmr.msra.gmra.mxu1 %vm269_vm2, %v4094_v17  ;;  %8575 = vmatpush3.bf16.msra.mxu0 %v9865_v19 }
 0x17f   : > { %v10003_v10 = vadd.f32 %v2171_v5, %v9792_v57  ;;  %8581 = vmatpush3.bf16.msra.mxu1 %v9865_v19  ;;  %v8278_v20 = vpop.f32.mrf.mxu0  ;;  %8576 = vmatprep.mubr.msk.bf16.mxu0 %vm9005_vm1, %v9004_v1  ;;  %v4095_v57 = vpack.c.bf16 %v7564_v33, %v7563_v18  ;;  %v7572_v33 = vld [vmem:[%s9098_s30 + $0x172] sm:$0xff] }
 0x180   : > { %v8284_v54 = vpop.f32.mrf.mxu1  ;;  %8582 = vmatprep.mubr.msk.bf16.mxu1 %vm9005_vm1, %v9004_v1  ;;  %8586 = vmatprep.subr.bf16.mxu0 %v9004_v1 }
 0x181   : > { %v2130_v26 = vpop.f32.mrf.mxu0  ;;  %8592 = vmatprep.subr.bf16.mxu1 %v9004_v1  ;;  %v7624_v54 = vld [vmem:[%s11076_s1 + $0xc] sm:$0x3] }
 0x182   : > { %v10015_v25 = vadd.f32 %v2130_v26, %v9804_v39  ;;  %v2174_v42 = vpop.f32.mrf.mxu1  ;;  %v7567_v39 = vld [vmem:[%s9098_s30 + $0x13a] sm:$0xff] }
 0x183   : > { %v10018_v15 = vadd.f32 %v2174_v42, %v9807_v6  ;;  %v8279_v41 = vpop.f32.mrf.mxu0  ;;  %v4100_v42 = vpack.c.bf16 %v7574_v35, %v7573_v38  ;;  %v7598_v35 = vld [vmem:[%s9098_s30 + $0x78] sm:$0xff] }
 0x184   : > { %v8285_v14 = vpop.f32.mrf.mxu1 }
 0x185   : > { %v2215_v29 = vpop.f32.mrf.mxu0  ;;  %8577 = vmatmul.mubr.msk.bf16.vlgmr.msra.gmra.mxu0 %vm269_vm2, %v4095_v57  ;;  %v10076_v14 = vsel %vm273_vm0, %v7624_v54, 0 }
 0x186   : > { %v10022_v34 = vadd.f32 %v2215_v29, %v9811_v62  ;;  %v2259_v36 = vpop.f32.mrf.mxu1  ;;  %8583 = vmatmul.mubr.msk.bf16.vlgmr.msra.gmra.mxu1 %vm269_vm2, %v4096_v50  ;;  %8587 = vmatpush3.bf16.msra.mxu0 %v9865_v19 }
 0x187   : > { %v10029_v46 = vadd.f32 %v2259_v36, %v9818_v3  ;;  %8593 = vmatpush3.bf16.msra.mxu1 %v9865_v19  ;;  %v8290_v6 = vpop.f32.mrf.mxu0  ;;  %8588 = vmatprep.mubr.msk.bf16.mxu0 %vm9005_vm1, %v9004_v1  ;;  %v4097_v3 = vpack.c.bf16 %v7568_v44, %v7567_v39  ;;  %v7593_v44 = vld [vmem:[%s9098_s30 + $0x38] sm:$0xff] }
 0x188   : > { %v8296_v62 = vpop.f32.mrf.mxu1  ;;  %8594 = vmatprep.mubr.msk.bf16.mxu1 %vm9005_vm1, %v9004_v1  ;;  %8598 = vmatprep.subr.bf16.mxu0 %v9004_v1 }
 0x189   : > { %v2218_v47 = vpop.f32.mrf.mxu0  ;;  %8604 = vmatprep.subr.bf16.mxu1 %v9004_v1  ;;  %v7595_v62 = vld [vmem:[%s9098_s30 + $0x50] sm:$0xff] }
 0x18a   : > { %v10041_v12 = vadd.f32 %v2218_v47, %v9830_v24  ;;  %v2262_v49 = vpop.f32.mrf.mxu1  ;;  %v7571_v24 = vld [vmem:[%s9098_s30 + $0x16a] sm:$0xff] }
 0x18b   : > { %v10044_v17 = vadd.f32 %v2262_v49, %v9833_v28  ;;  %v8291_v21 = vpop.f32.mrf.mxu0 }
 0x18c   : > { %v8297_v63 = vpop.f32.mrf.mxu1 }
 0x18d   : > { %v2303_v16 = vpop.f32.mrf.mxu0  ;;  %8589 = vmatmul.mubr.msk.bf16.vlgmr.msra.gmra.mxu0 %vm269_vm2, %v4097_v3 }
 0x18e   : > { %v10048_v5 = vadd.f32 %v2303_v16, %v9837_v9  ;;  %v2347_v18 = vpop.f32.mrf.mxu1  ;;  %8595 = vmatmul.mubr.msk.bf16.vlgmr.msra.gmra.mxu1 %vm269_vm2, %v4098_v55  ;;  %8599 = vmatpush3.bf16.msra.mxu0 %v9865_v19  ;;  %v4876_v55 = vpack.c.bf16 %v7595_v62, %v7594_v52  ;;  %v7602_v52 = vld [vmem:[%s9098_s30 + $0xa8] sm:$0xff]  ;;  %v7603_v62 = vld [vmem:[%s9098_s30 + $0xb0] sm:$0xff] }
 0x18f   : > { %v10055_v20 = vadd.f32 %v2347_v18, %v9844_v11  ;;  %8605 = vmatpush3.bf16.msra.mxu1 %v9865_v19  ;;  %v8302_v28 = vpop.f32.mrf.mxu0  ;;  %8600 = vmatprep.mubr.msk.bf16.mxu0 %vm9005_vm1, %v9004_v1  ;;  %v4099_v19 = vpack.c.bf16 %v7572_v33, %v7571_v24 }
 0x190   : > { %v8308_v9 = vpop.f32.mrf.mxu1  ;;  %8606 = vmatprep.mubr.msk.bf16.mxu1 %vm9005_vm1, %v9004_v1  ;;  %8610 = vmatprep.subr.bf16.mxu0 %v9004_v1  ;;  %v7597_v28 = vld [vmem:[%s9098_s30 + $0x68] sm:$0xff] }
 0x191   : > { %v2306_v11 = vpop.f32.mrf.mxu0  ;;  %8616 = vmatprep.subr.bf16.mxu1 %v9004_v1  ;;  %v7599_v9 = vld [vmem:[%s9098_s30 + $0x80] sm:$0xff] }
 0x192   : > { %v10070_v26 = vadd.f32 %v2306_v11, %v9859_v58  ;;  %v2350_v57 = vpop.f32.mrf.mxu1 }
 0x193   : > { %v10073_v50 = vadd.f32 %v2350_v57, %v9862_v61  ;;  %v8303_v41 = vpop.f32.mrf.mxu0  ;;  %v7592_v61 = vld [vmem:[%s9098_s30 + $0x30] sm:$0xff]  ;;  %v4878_v57 = vpack.c.bf16 %v7599_v9, %v7598_v35  ;;  %v7606_v35 = vld [vmem:[%s9098_s30 + $0xd8] sm:$0xff]  ;;  %v7607_v9 = vld [vmem:[%s9098_s30 + $0xe0] sm:$0xff] }
 0x194   : > { %v8309_v29 = vpop.f32.mrf.mxu1 }
 0x195   : > { %v2391_v36 = vpop.f32.mrf.mxu0  ;;  %8601 = vmatmul.mubr.msk.bf16.vlgmr.msra.gmra.mxu0 %vm269_vm2, %v4099_v19 }
 0x196   : > { %v10080_v39 = vadd.f32 %v2391_v36, %v9869_v8  ;;  %v2435_v58 = vpop.f32.mrf.mxu1  ;;  %8607 = vmatmul.mubr.msk.bf16.vlgmr.msra.gmra.mxu1 %vm269_vm2, %v4100_v42  ;;  %8611 = vmatpush3.bf16.msra.mxu0 %v10076_v14 }
 0x197   : > { %v10087_v6 = vadd.f32 %v2435_v58, %v9874_v37  ;;  %8617 = vmatpush3.bf16.msra.mxu1 %v10076_v14  ;;  %v8314_v7 = vpop.f32.mrf.mxu0  ;;  %8612 = vmatprep.mubr.msk.bf16.mxu0 %vm9005_vm1, %v9004_v1  ;;  %v4875_v37 = vpack.c.bf16 %v7593_v44, %v7592_v61  ;;  %v7601_v44 = vld [vmem:[%s9098_s30 + $0x98] sm:$0xff] }
 0x198   : > { %v8320_v8 = vpop.f32.mrf.mxu1  ;;  %8618 = vmatprep.mubr.msk.bf16.mxu1 %vm9005_vm1, %v9004_v1  ;;  %8622 = vmatprep.subr.bf16.mxu0 %v9004_v1 }
 0x199   : > { %v2394_v47 = vpop.f32.mrf.mxu0  ;;  %8628 = vmatprep.subr.bf16.mxu1 %v9004_v1 }
 0x19a   : > { %v10099_v3 = vadd.f32 %v2394_v47, %v9884_v48  ;;  %v2438_v49 = vpop.f32.mrf.mxu1  ;;  %v7596_v48 = vld [vmem:[%s9098_s30 + $0x60] sm:$0xff] }
 0x19b   : > { %v10102_v21 = vadd.f32 %v2438_v49, %v9887_v22  ;;  %v8315_v63 = vpop.f32.mrf.mxu0  ;;  %v4880_v49 = vpack.c.bf16 %v7603_v62, %v7602_v52  ;;  %v7610_v52 = vld [vmem:[%s9098_s30 + $0x108] sm:$0xff]  ;;  %v7611_v62 = vld [vmem:[%s9098_s30 + $0x110] sm:$0xff] }
 0x19c   : > { %v8321_v16 = vpop.f32.mrf.mxu1 }
 0x19d   : > { %v2565_v18 = vpop.f32.mrf.mxu0  ;;  %8613 = vmatmul.mubr.msk.bf16.vlgmr.msra.gmra.mxu0 %vm269_vm2, %v4875_v37 }
 0x19e   : > { %v10106_v24 = vadd.f32 %v2565_v18, %v9892_v13  ;;  %v2609_v33 = vpop.f32.mrf.mxu1  ;;  %8619 = vmatmul.mubr.msk.bf16.vlgmr.msra.gmra.mxu1 %vm269_vm2, %v4876_v55  ;;  %8623 = vmatpush3.bf16.msra.mxu0 %v10076_v14 }
 0x19f   : > { %v10113_v38 = vadd.f32 %v2609_v33, %v9900_v2  ;;  %8629 = vmatpush3.bf16.msra.mxu1 %v10076_v14  ;;  %v8326_v22 = vpop.f32.mrf.mxu0  ;;  %8624 = vmatprep.mubr.msk.bf16.mxu0 %vm9005_vm1, %v9004_v1  ;;  %v4877_v2 = vpack.c.bf16 %v7597_v28, %v7596_v48  ;;  %v7605_v28 = vld [vmem:[%s9098_s30 + $0xc8] sm:$0xff] }
 0x1a0   : > { %v8332_v13 = vpop.f32.mrf.mxu1  ;;  %8630 = vmatprep.mubr.msk.bf16.mxu1 %vm9005_vm1, %v9004_v1  ;;  %8634 = vmatprep.subr.bf16.mxu0 %v9004_v1 }
 0x1a1   : > { %v2568_v54 = vpop.f32.mrf.mxu0  ;;  %8640 = vmatprep.subr.bf16.mxu1 %v9004_v1 }
 0x1a2   : > { %v10125_v11 = vadd.f32 %v2568_v54, %v9910_v23  ;;  %v2612_v19 = vpop.f32.mrf.mxu1  ;;  %v7600_v23 = vld [vmem:[%s9098_s30 + $0x90] sm:$0xff] }
 0x1a3   : > { %v10128_v42 = vadd.f32 %v2612_v19, %v9913_v30  ;;  %v8327_v41 = vpop.f32.mrf.mxu0  ;;  %v4882_v19 = vpack.c.bf16 %v7607_v9, %v7606_v35  ;;  %v7614_v35 = vld [vmem:[%s9098_s30 + $0x138] sm:$0xff]  ;;  %v7615_v9 = vld [vmem:[%s9098_s30 + $0x140] sm:$0xff] }
 0x1a4   : > { %v8333_v29 = vpop.f32.mrf.mxu1 }
 0x1a5   : > { %v2653_v36 = vpop.f32.mrf.mxu0  ;;  %8625 = vmatmul.mubr.msk.bf16.vlgmr.msra.gmra.mxu0 %vm269_vm2, %v4877_v2 }
 0x1a6   : > { %v10132_v58 = vadd.f32 %v2653_v36, %v9917_v53  ;;  %v2697_v61 = vpop.f32.mrf.mxu1  ;;  %8631 = vmatmul.mubr.msk.bf16.vlgmr.msra.gmra.mxu1 %vm269_vm2, %v4878_v57  ;;  %8635 = vmatpush3.bf16.msra.mxu0 %v10076_v14 }
 0x1a7   : > { %v10139_v7 = vadd.f32 %v2697_v61, %v9925_v31  ;;  %8641 = vmatpush3.bf16.msra.mxu1 %v10076_v14  ;;  %v8338_v30 = vpop.f32.mrf.mxu0  ;;  %8636 = vmatprep.mubr.msk.bf16.mxu0 %vm9005_vm1, %v9004_v1  ;;  %v4879_v31 = vpack.c.bf16 %v7601_v44, %v7600_v23  ;;  %v7609_v44 = vld [vmem:[%s9098_s30 + $0xf8] sm:$0xff] }
 0x1a8   : > { %v8344_v53 = vpop.f32.mrf.mxu1  ;;  %8642 = vmatprep.mubr.msk.bf16.mxu1 %vm9005_vm1, %v9004_v1  ;;  %8646 = vmatprep.subr.bf16.mxu0 %v9004_v1 }
 0x1a9   : > { %v2656_v8 = vpop.f32.mrf.mxu0  ;;  %8652 = vmatprep.subr.bf16.mxu1 %v9004_v1 }
 0x1aa   : > { %v10151_v47 = vadd.f32 %v2656_v8, %v9937_v51  ;;  %v2700_v37 = vpop.f32.mrf.mxu1  ;;  %v7604_v51 = vld [vmem:[%s9098_s30 + $0xc0] sm:$0xff] }
 0x1ab   : > { %v10154_v55 = vadd.f32 %v2700_v37, %v9940_v40  ;;  %v8339_v63 = vpop.f32.mrf.mxu0  ;;  %v4884_v37 = vpack.c.bf16 %v7611_v62, %v7610_v52  ;;  %v7618_v52 = vld [vmem:[%s9098_s30 + $0x168] sm:$0xff]  ;;  %v7619_v62 = vld [vmem:[%s9098_s30 + $0x170] sm:$0xff] }
 0x1ac   : > { %v8345_v16 = vpop.f32.mrf.mxu1 }
 0x1ad   : > { %v2741_v18 = vpop.f32.mrf.mxu0  ;;  %8637 = vmatmul.mubr.msk.bf16.vlgmr.msra.gmra.mxu0 %vm269_vm2, %v4879_v31 }
 0x1ae   : > { %v10158_v33 = vadd.f32 %v2741_v18, %v9944_v27  ;;  %v2785_v48 = vpop.f32.mrf.mxu1  ;;  %8643 = vmatmul.mubr.msk.bf16.vlgmr.msra.gmra.mxu1 %vm269_vm2, %v4880_v49  ;;  %8647 = vmatpush3.bf16.msra.mxu0 %v10076_v14 }
 0x1af   : > { %v10165_v22 = vadd.f32 %v2785_v48, %v9951_v43  ;;  %8653 = vmatpush3.bf16.msra.mxu1 %v10076_v14  ;;  %v8350_v40 = vpop.f32.mrf.mxu0  ;;  %8648 = vmatprep.mubr.msk.bf16.mxu0 %vm9005_vm1, %v9004_v1  ;;  %v4881_v43 = vpack.c.bf16 %v7605_v28, %v7604_v51  ;;  %v7613_v28 = vld [vmem:[%s9098_s30 + $0x128] sm:$0xff] }
 0x1b0   : > { %v8356_v27 = vpop.f32.mrf.mxu1  ;;  %8654 = vmatprep.mubr.msk.bf16.mxu1 %vm9005_vm1, %v9004_v1  ;;  %8658 = vmatprep.subr.bf16.mxu0 %v9004_v1 }
 0x1b1   : > { %v2744_v13 = vpop.f32.mrf.mxu0  ;;  %8664 = vmatprep.subr.bf16.mxu1 %v9004_v1 }
 0x1b2   : > { %v10177_v54 = vadd.f32 %v2744_v13, %v9963_v45  ;;  %v2788_v2 = vpop.f32.mrf.mxu1  ;;  %v7608_v45 = vld [vmem:[%s9098_s30 + $0xf0] sm:$0xff] }
 0x1b3   : > { %v10180_v57 = vadd.f32 %v2788_v2, %v9966_v59  ;;  %v8351_v41 = vpop.f32.mrf.mxu0  ;;  %v4886_v2 = vpack.c.bf16 %v7615_v9, %v7614_v35  ;;  %v7622_v35 = vld [vmem:[%s9098_s30 + $0x198] sm:$0xff]  ;;  %v7623_v9 = vld [vmem:[%s9098_s30 + $0x1a0] sm:$0xff] }
 0x1b4   : > { %v8357_v29 = vpop.f32.mrf.mxu1 }
 0x1b5   : > { %v2829_v36 = vpop.f32.mrf.mxu0  ;;  %8649 = vmatmul.mubr.msk.bf16.vlgmr.msra.gmra.mxu0 %vm269_vm2, %v4881_v43 }
 0x1b6   : > { %v10184_v61 = vadd.f32 %v2829_v36, %v9970_v32  ;;  %v2873_v23 = vpop.f32.mrf.mxu1  ;;  %8655 = vmatmul.mubr.msk.bf16.vlgmr.msra.gmra.mxu1 %vm269_vm2, %v4882_v19  ;;  %8659 = vmatpush3.bf16.msra.mxu0 %v10076_v14 }
 0x1b7   : > { %v10191_v30 = vadd.f32 %v2873_v23, %v9977_v60  ;;  %8665 = vmatpush3.bf16.msra.mxu1 %v10076_v14  ;;  %v8362_v59 = vpop.f32.mrf.mxu0  ;;  %8660 = vmatprep.mubr.msk.bf16.mxu0 %vm9005_vm1, %v9004_v1  ;;  %v4883_v60 = vpack.c.bf16 %v7609_v44, %v7608_v45  ;;  %v7617_v44 = vld [vmem:[%s9098_s30 + $0x158] sm:$0xff] }
 0x1b8   : > { %v8368_v32 = vpop.f32.mrf.mxu1  ;;  %8666 = vmatprep.mubr.msk.bf16.mxu1 %vm9005_vm1, %v9004_v1  ;;  %8670 = vmatprep.subr.bf16.mxu0 %v9004_v1 }
 0x1b9   : > { %v2832_v53 = vpop.f32.mrf.mxu0  ;;  %8676 = vmatprep.subr.bf16.mxu1 %v9004_v1 }
 0x1ba   : > { %v10203_v8 = vadd.f32 %v2832_v53, %v9989_v56  ;;  %v2876_v31 = vpop.f32.mrf.mxu1  ;;  %v7612_v56 = vld [vmem:[%s9098_s30 + $0x120] sm:$0xff] }
 0x1bb   : > { %v10206_v49 = vadd.f32 %v2876_v31, %v9992_v4  ;;  %v8363_v63 = vpop.f32.mrf.mxu0  ;;  %v4888_v31 = vpack.c.bf16 %v7619_v62, %v7618_v52  ;;  %v7643_v62 = vld [vmem:[%s9098_s30 + $0x49] sm:$0xff] }
 0x1bc   : > { %v8369_v16 = vpop.f32.mrf.mxu1 }
 0x1bd   : > { %v2917_v18 = vpop.f32.mrf.mxu0  ;;  %8661 = vmatmul.mubr.msk.bf16.vlgmr.msra.gmra.mxu0 %vm269_vm2, %v4883_v60 }
 0x1be   : > { %v10210_v48 = vadd.f32 %v2917_v18, %v9996_v0  ;;  %v2961_v51 = vpop.f32.mrf.mxu1  ;;  %8667 = vmatmul.mubr.msk.bf16.vlgmr.msra.gmra.mxu1 %vm269_vm2, %v4884_v37  ;;  %8671 = vmatpush3.bf16.msra.mxu0 %v10076_v14 }
 0x1bf   : > { %v10217_v40 = vadd.f32 %v2961_v51, %v10003_v10  ;;  %8677 = vmatpush3.bf16.msra.mxu1 %v10076_v14  ;;  %v8374_v4 = vpop.f32.mrf.mxu0  ;;  %8672 = vmatprep.mubr.msk.bf16.mxu0 %vm9005_vm1, %v9004_v1  ;;  %v4885_v10 = vpack.c.bf16 %v7613_v28, %v7612_v56  ;;  %v7621_v28 = vld [vmem:[%s9098_s30 + $0x188] sm:$0xff] }
 0x1c0   : > { %v8380_v0 = vpop.f32.mrf.mxu1  ;;  %8678 = vmatprep.mubr.msk.bf16.mxu1 %vm9005_vm1, %v9004_v1  ;;  %8682 = vmatprep.subr.bf16.mxu0 %v9004_v1 }
 0x1c1   : > { %v2920_v27 = vpop.f32.mrf.mxu0  ;;  %8688 = vmatprep.subr.bf16.mxu1 %v9004_v1  ;;  %v7673_v0 = vld [vmem:[%s11076_s1 + $0xe] sm:$0x3] }
 0x1c2   : > { %v10229_v13 = vadd.f32 %v2920_v27, %v10015_v25  ;;  %v2964_v43 = vpop.f32.mrf.mxu1  ;;  %v7616_v25 = vld [vmem:[%s9098_s30 + $0x150] sm:$0xff] }
 0x1c3   : > { %v10232_v19 = vadd.f32 %v2964_v43, %v10018_v15  ;;  %v8375_v41 = vpop.f32.mrf.mxu0  ;;  %v4890_v43 = vpack.c.bf16 %v7623_v9, %v7622_v35  ;;  %v7647_v9 = vld [vmem:[%s9098_s30 + $0x79] sm:$0xff] }
 0x1c4   : > { %v8381_v29 = vpop.f32.mrf.mxu1 }
 0x1c5   : > { %v3005_v36 = vpop.f32.mrf.mxu0  ;;  %8673 = vmatmul.mubr.msk.bf16.vlgmr.msra.gmra.mxu0 %vm269_vm2, %v4885_v10  ;;  %v10290_v29 = vsel %vm273_vm0, %v7673_v0, 0 }
 0x1c6   : > { %v10236_v23 = vadd.f32 %v3005_v36, %v10022_v34  ;;  %v3049_v45 = vpop.f32.mrf.mxu1  ;;  %8679 = vmatmul.mubr.msk.bf16.vlgmr.msra.gmra.mxu1 %vm269_vm2, %v4886_v2  ;;  %8683 = vmatpush3.bf16.msra.mxu0 %v10076_v14 }
 0x1c7   : > { %v10243_v59 = vadd.f32 %v3049_v45, %v10029_v46  ;;  %8689 = vmatpush3.bf16.msra.mxu1 %v10076_v14  ;;  %v8386_v15 = vpop.f32.mrf.mxu0  ;;  %8684 = vmatprep.mubr.msk.bf16.mxu0 %vm9005_vm1, %v9004_v1  ;;  %v4887_v46 = vpack.c.bf16 %v7617_v44, %v7616_v25  ;;  %v7642_v44 = vld [vmem:[%s9098_s30 + $0x39] sm:$0xff] }
 0x1c8   : > { %v8392_v34 = vpop.f32.mrf.mxu1  ;;  %8690 = vmatprep.mubr.msk.bf16.mxu1 %vm9005_vm1, %v9004_v1  ;;  %8694 = vmatprep.subr.bf16.mxu0 %v9004_v1 }
 0x1c9   : > { %v3008_v32 = vpop.f32.mrf.mxu0  ;;  %8700 = vmatprep.subr.bf16.mxu1 %v9004_v1  ;;  %v7644_v34 = vld [vmem:[%s9098_s30 + $0x51] sm:$0xff] }
 0x1ca   : > { %v10255_v53 = vadd.f32 %v3008_v32, %v10041_v12  ;;  %v3052_v60 = vpop.f32.mrf.mxu1  ;;  %v7620_v12 = vld [vmem:[%s9098_s30 + $0x180] sm:$0xff] }
 0x1cb   : > { %v10258_v37 = vadd.f32 %v3052_v60, %v10044_v17  ;;  %v8387_v63 = vpop.f32.mrf.mxu0 }
 0x1cc   : > { %v8393_v16 = vpop.f32.mrf.mxu1 }
 0x1cd   : > { %v3093_v18 = vpop.f32.mrf.mxu0  ;;  %8685 = vmatmul.mubr.msk.bf16.vlgmr.msra.gmra.mxu0 %vm269_vm2, %v4887_v46 }
 0x1ce   : > { %v10262_v51 = vadd.f32 %v3093_v18, %v10048_v5  ;;  %v3137_v56 = vpop.f32.mrf.mxu1  ;;  %8691 = vmatmul.mubr.msk.bf16.vlgmr.msra.gmra.mxu1 %vm269_vm2, %v4888_v31  ;;  %8695 = vmatpush3.bf16.msra.mxu0 %v10076_v14  ;;  %v5665_v31 = vpack.c.bf16 %v7644_v34, %v7643_v62  ;;  %v7651_v62 = vld [vmem:[%s9098_s30 + $0xa9] sm:$0xff]  ;;  %v7652_v34 = vld [vmem:[%s9098_s30 + $0xb1] sm:$0xff] }
 0x1cf   : > { %v10269_v4 = vadd.f32 %v3137_v56, %v10055_v20  ;;  %8701 = vmatpush3.bf16.msra.mxu1 %v10076_v14  ;;  %v8398_v17 = vpop.f32.mrf.mxu0  ;;  %8696 = vmatprep.mubr.msk.bf16.mxu0 %vm9005_vm1, %v9004_v1  ;;  %v4889_v14 = vpack.c.bf16 %v7621_v28, %v7620_v12 }
 0x1d0   : > { %v8404_v5 = vpop.f32.mrf.mxu1  ;;  %8702 = vmatprep.mubr.msk.bf16.mxu1 %vm9005_vm1, %v9004_v1  ;;  %8706 = vmatprep.subr.bf16.mxu0 %v9004_v1  ;;  %v7646_v17 = vld [vmem:[%s9098_s30 + $0x69] sm:$0xff] }
 0x1d1   : > { %v3096_v20 = vpop.f32.mrf.mxu0  ;;  %8712 = vmatprep.subr.bf16.mxu1 %v9004_v1  ;;  %v7648_v5 = vld [vmem:[%s9098_s30 + $0x81] sm:$0xff] }
 0x1d2   : > { %v10284_v27 = vadd.f32 %v3096_v20, %v10070_v26  ;;  %v3140_v10 = vpop.f32.mrf.mxu1 }
 0x1d3   : > { %v10287_v2 = vadd.f32 %v3140_v10, %v10073_v50  ;;  %v8399_v41 = vpop.f32.mrf.mxu0  ;;  %v7641_v50 = vld [vmem:[%s9098_s30 + $0x31] sm:$0xff]  ;;  %v5667_v10 = vpack.c.bf16 %v7648_v5, %v7647_v9  ;;  %v7655_v9 = vld [vmem:[%s9098_s30 + $0xd9] sm:$0xff]  ;;  %v7656_v5 = vld [vmem:[%s9098_s30 + $0xe1] sm:$0xff] }
 0x1d4   : > { %v8405_v36 = vpop.f32.mrf.mxu1 }
 0x1d5   : > { %v3181_v45 = vpop.f32.mrf.mxu0  ;;  %8697 = vmatmul.mubr.msk.bf16.vlgmr.msra.gmra.mxu0 %vm269_vm2, %v4889_v14 }
 0x1d6   : > { %v10294_v25 = vadd.f32 %v3181_v45, %v10080_v39  ;;  %v3225_v26 = vpop.f32.mrf.mxu1  ;;  %8703 = vmatmul.mubr.msk.bf16.vlgmr.msra.gmra.mxu1 %vm269_vm2, %v4890_v43  ;;  %8707 = vmatpush3.bf16.msra.mxu0 %v10290_v29 }
 0x1d7   : > { %v10301_v15 = vadd.f32 %v3225_v26, %v10087_v6  ;;  %8713 = vmatpush3.bf16.msra.mxu1 %v10290_v29  ;;  %v8410_v52 = vpop.f32.mrf.mxu0  ;;  %8708 = vmatprep.mubr.msk.bf16.mxu0 %vm9005_vm1, %v9004_v1  ;;  %v5664_v6 = vpack.c.bf16 %v7642_v44, %v7641_v50  ;;  %v7650_v44 = vld [vmem:[%s9098_s30 + $0x99] sm:$0xff] }
 0x1d8   : > { %v8416_v39 = vpop.f32.mrf.mxu1  ;;  %8714 = vmatprep.mubr.msk.bf16.mxu1 %vm9005_vm1, %v9004_v1  ;;  %8718 = vmatprep.subr.bf16.mxu0 %v9004_v1 }
 0x1d9   : > { %v3184_v32 = vpop.f32.mrf.mxu0  ;;  %8724 = vmatprep.subr.bf16.mxu1 %v9004_v1 }
 0x1da   : > { %v10313_v46 = vadd.f32 %v3184_v32, %v10099_v3  ;;  %v3228_v60 = vpop.f32.mrf.mxu1  ;;  %v7645_v3 = vld [vmem:[%s9098_s30 + $0x61] sm:$0xff] }
 0x1db   : > { %v10316_v63 = vadd.f32 %v3228_v60, %v10102_v21  ;;  %v8411_v16 = vpop.f32.mrf.mxu0  ;;  %v5669_v60 = vpack.c.bf16 %v7652_v34, %v7651_v62  ;;  %v7659_v62 = vld [vmem:[%s9098_s30 + $0x109] sm:$0xff]  ;;  %v7660_v34 = vld [vmem:[%s9098_s30 + $0x111] sm:$0xff] }
 0x1dc   : > { %v8417_v18 = vpop.f32.mrf.mxu1 }
 0x1dd   : > { %v3354_v56 = vpop.f32.mrf.mxu0  ;;  %8709 = vmatmul.mubr.msk.bf16.vlgmr.msra.gmra.mxu0 %vm269_vm2, %v5664_v6 }
 0x1de   : > { %v10320_v12 = vadd.f32 %v3354_v56, %v10106_v24  ;;  %v3398_v28 = vpop.f32.mrf.mxu1  ;;  %8715 = vmatmul.mubr.msk.bf16.vlgmr.msra.gmra.mxu1 %vm269_vm2, %v5665_v31  ;;  %8719 = vmatpush3.bf16.msra.mxu0 %v10290_v29 }
 0x1df   : > { %v10327_v35 = vadd.f32 %v3398_v28, %v10113_v38  ;;  %8725 = vmatpush3.bf16.msra.mxu1 %v10290_v29  ;;  %v8422_v21 = vpop.f32.mrf.mxu0  ;;  %8720 = vmatprep.mubr.msk.bf16.mxu0 %vm9005_vm1, %v9004_v1  ;;  %v5666_v38 = vpack.c.bf16 %v7646_v17, %v7645_v3  ;;  %v7654_v17 = vld [vmem:[%s9098_s30 + $0xc9] sm:$0xff] }
 0x1e0   : > { %v8428_v24 = vpop.f32.mrf.mxu1  ;;  %8726 = vmatprep.mubr.msk.bf16.mxu1 %vm9005_vm1, %v9004_v1  ;;  %8730 = vmatprep.subr.bf16.mxu0 %v9004_v1 }
 0x1e1   : > { %v3357_v0 = vpop.f32.mrf.mxu0  ;;  %8736 = vmatprep.subr.bf16.mxu1 %v9004_v1 }
 0x1e2   : > { %v10339_v20 = vadd.f32 %v3357_v0, %v10125_v11  ;;  %v3401_v14 = vpop.f32.mrf.mxu1  ;;  %v7649_v11 = vld [vmem:[%s9098_s30 + $0x91] sm:$0xff] }
 0x1e3   : > { %v10342_v43 = vadd.f32 %v3401_v14, %v10128_v42  ;;  %v8423_v41 = vpop.f32.mrf.mxu0  ;;  %v5671_v14 = vpack.c.bf16 %v7656_v5, %v7655_v9  ;;  %v7663_v9 = vld [vmem:[%s9098_s30 + $0x139] sm:$0xff]  ;;  %v7664_v5 = vld [vmem:[%s9098_s30 + $0x141] sm:$0xff] }
 0x1e4   : > { %v8429_v36 = vpop.f32.mrf.mxu1 }
 0x1e5   : > { %v3442_v45 = vpop.f32.mrf.mxu0  ;;  %8721 = vmatmul.mubr.msk.bf16.vlgmr.msra.gmra.mxu0 %vm269_vm2, %v5666_v38 }
 0x1e6   : > { %v10346_v26 = vadd.f32 %v3442_v45, %v10132_v58  ;;  %v3486_v50 = vpop.f32.mrf.mxu1  ;;  %8727 = vmatmul.mubr.msk.bf16.vlgmr.msra.gmra.mxu1 %vm269_vm2, %v5667_v10  ;;  %8731 = vmatpush3.bf16.msra.mxu0 %v10290_v29 }
 0x1e7   : > { %v10353_v52 = vadd.f32 %v3486_v50, %v10139_v7  ;;  %8737 = vmatpush3.bf16.msra.mxu1 %v10290_v29  ;;  %v8434_v42 = vpop.f32.mrf.mxu0  ;;  %8732 = vmatprep.mubr.msk.bf16.mxu0 %vm9005_vm1, %v9004_v1  ;;  %v5668_v7 = vpack.c.bf16 %v7650_v44, %v7649_v11  ;;  %v7658_v44 = vld [vmem:[%s9098_s30 + $0xf9] sm:$0xff] }
 0x1e8   : > { %v8440_v58 = vpop.f32.mrf.mxu1  ;;  %8738 = vmatprep.mubr.msk.bf16.mxu1 %vm9005_vm1, %v9004_v1  ;;  %8742 = vmatprep.subr.bf16.mxu0 %v9004_v1 }
 0x1e9   : > { %v3445_v39 = vpop.f32.mrf.mxu0  ;;  %8748 = vmatprep.subr.bf16.mxu1 %v9004_v1 }
 0x1ea   : > { %v10365_v32 = vadd.f32 %v3445_v39, %v10151_v47  ;;  %v3489_v6 = vpop.f32.mrf.mxu1  ;;  %v7653_v47 = vld [vmem:[%s9098_s30 + $0xc1] sm:$0xff] }
 0x1eb   : > { %v10368_v31 = vadd.f32 %v3489_v6, %v10154_v55  ;;  %v8435_v16 = vpop.f32.mrf.mxu0  ;;  %v5673_v6 = vpack.c.bf16 %v7660_v34, %v7659_v62  ;;  %v7667_v62 = vld [vmem:[%s9098_s30 + $0x169] sm:$0xff]  ;;  %v7668_v34 = vld [vmem:[%s9098_s30 + $0x171] sm:$0xff] }
 0x1ec   : > { %v8441_v18 = vpop.f32.mrf.mxu1 }
 0x1ed   : > { %v3530_v56 = vpop.f32.mrf.mxu0  ;;  %8733 = vmatmul.mubr.msk.bf16.vlgmr.msra.gmra.mxu0 %vm269_vm2, %v5668_v7 }
 0x1ee   : > { %v10372_v28 = vadd.f32 %v3530_v56, %v10158_v33  ;;  %v3574_v3 = vpop.f32.mrf.mxu1  ;;  %8739 = vmatmul.mubr.msk.bf16.vlgmr.msra.gmra.mxu1 %vm269_vm2, %v5669_v60  ;;  %8743 = vmatpush3.bf16.msra.mxu0 %v10290_v29 }
 0x1ef   : > { %v10379_v21 = vadd.f32 %v3574_v3, %v10165_v22  ;;  %8749 = vmatpush3.bf16.msra.mxu1 %v10290_v29  ;;  %v8446_v55 = vpop.f32.mrf.mxu0  ;;  %8744 = vmatprep.mubr.msk.bf16.mxu0 %vm9005_vm1, %v9004_v1  ;;  %v5670_v22 = vpack.c.bf16 %v7654_v17, %v7653_v47  ;;  %v7662_v17 = vld [vmem:[%s9098_s30 + $0x129] sm:$0xff] }
 0x1f0   : > { %v8452_v33 = vpop.f32.mrf.mxu1  ;;  %8750 = vmatprep.mubr.msk.bf16.mxu1 %vm9005_vm1, %v9004_v1  ;;  %8754 = vmatprep.subr.bf16.mxu0 %v9004_v1 }
 0x1f1   : > { %v3533_v24 = vpop.f32.mrf.mxu0  ;;  %8760 = vmatprep.subr.bf16.mxu1 %v9004_v1 }
 0x1f2   : > { %v10391_v0 = vadd.f32 %v3533_v24, %v10177_v54  ;;  %v3577_v38 = vpop.f32.mrf.mxu1  ;;  %v7657_v54 = vld [vmem:[%s9098_s30 + $0xf1] sm:$0xff] }
 0x1f3   : > { %v10394_v10 = vadd.f32 %v3577_v38, %v10180_v57  ;;  %v8447_v41 = vpop.f32.mrf.mxu0  ;;  %v5675_v38 = vpack.c.bf16 %v7664_v5, %v7663_v9  ;;  %v7671_v9 = vld [vmem:[%s9098_s30 + $0x199] sm:$0xff]  ;;  %v7672_v5 = vld [vmem:[%s9098_s30 + $0x1a1] sm:$0xff] }
 0x1f4   : > { %v8453_v36 = vpop.f32.mrf.mxu1 }
 0x1f5   : > { %v3618_v45 = vpop.f32.mrf.mxu0  ;;  %8745 = vmatmul.mubr.msk.bf16.vlgmr.msra.gmra.mxu0 %vm269_vm2, %v5670_v22 }
 0x1f6   : > { %v10398_v50 = vadd.f32 %v3618_v45, %v10184_v61  ;;  %v3662_v11 = vpop.f32.mrf.mxu1  ;;  %8751 = vmatmul.mubr.msk.bf16.vlgmr.msra.gmra.mxu1 %vm269_vm2, %v5671_v14  ;;  %8755 = vmatpush3.bf16.msra.mxu0 %v10290_v29 }
 0x1f7   : > { %v10405_v42 = vadd.f32 %v3662_v11, %v10191_v30  ;;  %8761 = vmatpush3.bf16.msra.mxu1 %v10290_v29  ;;  %v8458_v57 = vpop.f32.mrf.mxu0  ;;  %8756 = vmatprep.mubr.msk.bf16.mxu0 %vm9005_vm1, %v9004_v1  ;;  %v5672_v30 = vpack.c.bf16 %v7658_v44, %v7657_v54  ;;  %v7666_v44 = vld [vmem:[%s9098_s30 + $0x159] sm:$0xff] }
 0x1f8   : > { %v8464_v61 = vpop.f32.mrf.mxu1  ;;  %8762 = vmatprep.mubr.msk.bf16.mxu1 %vm9005_vm1, %v9004_v1  ;;  %8766 = vmatprep.subr.bf16.mxu0 %v9004_v1 }
 0x1f9   : > { %v3621_v58 = vpop.f32.mrf.mxu0  ;;  %8772 = vmatprep.subr.bf16.mxu1 %v9004_v1 }
 0x1fa   : > { %v10417_v39 = vadd.f32 %v3621_v58, %v10203_v8  ;;  %v3665_v7 = vpop.f32.mrf.mxu1  ;;  %v7661_v8 = vld [vmem:[%s9098_s30 + $0x121] sm:$0xff] }
 0x1fb   : > { %v10420_v60 = vadd.f32 %v3665_v7, %v10206_v49  ;;  %v8459_v16 = vpop.f32.mrf.mxu0  ;;  %v5677_v7 = vpack.c.bf16 %v7668_v34, %v7667_v62  ;;  %v7692_v34 = vld [vmem:[%s9098_s30 + $0x4a] sm:$0xff] }
 0x1fc   : > { %v8465_v18 = vpop.f32.mrf.mxu1 }
 0x1fd   : > { %v3706_v56 = vpop.f32.mrf.mxu0  ;;  %8757 = vmatmul.mubr.msk.bf16.vlgmr.msra.gmra.mxu0 %vm269_vm2, %v5672_v30 }
 0x1fe   : > { %v10424_v3 = vadd.f32 %v3706_v56, %v10210_v48  ;;  %v3750_v47 = vpop.f32.mrf.mxu1  ;;  %8763 = vmatmul.mubr.msk.bf16.vlgmr.msra.gmra.mxu1 %vm269_vm2, %v5673_v6  ;;  %8767 = vmatpush3.bf16.msra.mxu0 %v10290_v29 }
 0x1ff   : > { %v10431_v55 = vadd.f32 %v3750_v47, %v10217_v40  ;;  %8773 = vmatpush3.bf16.msra.mxu1 %v10290_v29  ;;  %v8470_v49 = vpop.f32.mrf.mxu0  ;;  %8768 = vmatprep.mubr.msk.bf16.mxu0 %vm9005_vm1, %v9004_v1  ;;  %v5674_v40 = vpack.c.bf16 %v7662_v17, %v7661_v8  ;;  %v7670_v17 = vld [vmem:[%s9098_s30 + $0x189] sm:$0xff] }
 0x200   : > { %v8476_v48 = vpop.f32.mrf.mxu1  ;;  %8774 = vmatprep.mubr.msk.bf16.mxu1 %vm9005_vm1, %v9004_v1  ;;  %8778 = vmatprep.subr.bf16.mxu0 %v9004_v1 }
 0x201   : > { %v3709_v33 = vpop.f32.mrf.mxu0  ;;  %8784 = vmatprep.subr.bf16.mxu1 %v9004_v1  ;;  %v7722_v48 = vld [vmem:[%s11076_s1 + $0x10] sm:$0x3] }
 0x202   : > { %v10443_v24 = vadd.f32 %v3709_v33, %v10229_v13  ;;  %v3753_v22 = vpop.f32.mrf.mxu1  ;;  %v7665_v13 = vld [vmem:[%s9098_s30 + $0x151] sm:$0xff] }
 0x203   : > { %v10446_v14 = vadd.f32 %v3753_v22, %v10232_v19  ;;  %v8471_v41 = vpop.f32.mrf.mxu0  ;;  %v5679_v22 = vpack.c.bf16 %v7672_v5, %v7671_v9  ;;  %v7696_v5 = vld [vmem:[%s9098_s30 + $0x7a] sm:$0xff] }
 0x204   : > { %v8477_v36 = vpop.f32.mrf.mxu1 }
 0x205   : > { %v3794_v45 = vpop.f32.mrf.mxu0  ;;  %8769 = vmatmul.mubr.msk.bf16.vlgmr.msra.gmra.mxu0 %vm269_vm2, %v5674_v40  ;;  %v10504_v36 = vsel %vm273_vm0, %v7722_v48, 0 }
 0x206   : > { %v10450_v11 = vadd.f32 %v3794_v45, %v10236_v23  ;;  %v3838_v54 = vpop.f32.mrf.mxu1  ;;  %8775 = vmatmul.mubr.msk.bf16.vlgmr.msra.gmra.mxu1 %vm269_vm2, %v5675_v38  ;;  %8779 = vmatpush3.bf16.msra.mxu0 %v10290_v29 }
 0x207   : > { %v10457_v57 = vadd.f32 %v3838_v54, %v10243_v59  ;;  %8785 = vmatpush3.bf16.msra.mxu1 %v10290_v29  ;;  %v8482_v19 = vpop.f32.mrf.mxu0  ;;  %8780 = vmatprep.mubr.msk.bf16.mxu0 %vm9005_vm1, %v9004_v1  ;;  %v5676_v59 = vpack.c.bf16 %v7666_v44, %v7665_v13  ;;  %v7691_v44 = vld [vmem:[%s9098_s30 + $0x3a] sm:$0xff] }
 0x208   : > { %v8488_v23 = vpop.f32.mrf.mxu1  ;;  %8786 = vmatprep.mubr.msk.bf16.mxu1 %vm9005_vm1, %v9004_v1  ;;  %8790 = vmatprep.subr.bf16.mxu0 %v9004_v1 }
 0x209   : > { %v3797_v61 = vpop.f32.mrf.mxu0  ;;  %8796 = vmatprep.subr.bf16.mxu1 %v9004_v1  ;;  %v7693_v23 = vld [vmem:[%s9098_s30 + $0x52] sm:$0xff] }
 0x20a   : > { %v10469_v58 = vadd.f32 %v3797_v61, %v10255_v53  ;;  %v3841_v30 = vpop.f32.mrf.mxu1  ;;  %v7669_v53 = vld [vmem:[%s9098_s30 + $0x181] sm:$0xff] }
 0x20b   : > { %v10472_v6 = vadd.f32 %v3841_v30, %v10258_v37  ;;  %v8483_v16 = vpop.f32.mrf.mxu0 }
 0x20c   : > { %v8489_v18 = vpop.f32.mrf.mxu1 }
 0x20d   : > { %v3882_v56 = vpop.f32.mrf.mxu0  ;;  %8781 = vmatmul.mubr.msk.bf16.vlgmr.msra.gmra.mxu0 %vm269_vm2, %v5676_v59 }
 0x20e   : > { %v10476_v47 = vadd.f32 %v3882_v56, %v10262_v51  ;;  %v3926_v8 = vpop.f32.mrf.mxu1  ;;  %8787 = vmatmul.mubr.msk.bf16.vlgmr.msra.gmra.mxu1 %vm269_vm2, %v5677_v7  ;;  %8791 = vmatpush3.bf16.msra.mxu0 %v10290_v29  ;;  %v6454_v7 = vpack.c.bf16 %v7693_v23, %v7692_v34  ;;  %v7700_v34 = vld [vmem:[%s9098_s30 + $0xaa] sm:$0xff]  ;;  %v7701_v23 = vld [vmem:[%s9098_s30 + $0xb2] sm:$0xff] }
 0x20f   : > { %v10483_v49 = vadd.f32 %v3926_v8, %v10269_v4  ;;  %8797 = vmatpush3.bf16.msra.mxu1 %v10290_v29  ;;  %v8494_v37 = vpop.f32.mrf.mxu0  ;;  %8792 = vmatprep.mubr.msk.bf16.mxu0 %vm9005_vm1, %v9004_v1  ;;  %v5678_v29 = vpack.c.bf16 %v7670_v17, %v7669_v53 }
 0x210   : > { %v8500_v51 = vpop.f32.mrf.mxu1  ;;  %8798 = vmatprep.mubr.msk.bf16.mxu1 %vm9005_vm1, %v9004_v1  ;;  %8802 = vmatprep.subr.bf16.mxu0 %v9004_v1  ;;  %v7695_v37 = vld [vmem:[%s9098_s30 + $0x6a] sm:$0xff] }
 0x211   : > { %v3885_v4 = vpop.f32.mrf.mxu0  ;;  %8808 = vmatprep.subr.bf16.mxu1 %v9004_v1  ;;  %v7697_v51 = vld [vmem:[%s9098_s30 + $0x82] sm:$0xff] }
 0x212   : > { %v10498_v33 = vadd.f32 %v3885_v4, %v10284_v27  ;;  %v3929_v40 = vpop.f32.mrf.mxu1 }
 0x213   : > { %v10501_v38 = vadd.f32 %v3929_v40, %v10287_v2  ;;  %v8495_v41 = vpop.f32.mrf.mxu0  ;;  %v7690_v2 = vld [vmem:[%s9098_s30 + $0x32] sm:$0xff]  ;;  %v6456_v40 = vpack.c.bf16 %v7697_v51, %v7696_v5  ;;  %v7704_v5 = vld [vmem:[%s9098_s30 + $0xda] sm:$0xff]  ;;  %v7705_v51 = vld [vmem:[%s9098_s30 + $0xe2] sm:$0xff] }
 0x214   : > { %v8501_v45 = vpop.f32.mrf.mxu1 }
 0x215   : > { %v3970_v54 = vpop.f32.mrf.mxu0  ;;  %8793 = vmatmul.mubr.msk.bf16.vlgmr.msra.gmra.mxu0 %vm269_vm2, %v5678_v29 }
 0x216   : > { %v10508_v13 = vadd.f32 %v3970_v54, %v10294_v25  ;;  %v4014_v27 = vpop.f32.mrf.mxu1  ;;  %8799 = vmatmul.mubr.msk.bf16.vlgmr.msra.gmra.mxu1 %vm269_vm2, %v5679_v22  ;;  %8803 = vmatpush3.bf16.msra.mxu0 %v10504_v36 }
 0x217   : > { %v10515_v19 = vadd.f32 %v4014_v27, %v10301_v15  ;;  %8809 = vmatpush3.bf16.msra.mxu1 %v10504_v36  ;;  %v8506_v62 = vpop.f32.mrf.mxu0  ;;  %8804 = vmatprep.mubr.msk.bf16.mxu0 %vm9005_vm1, %v9004_v1  ;;  %v6453_v15 = vpack.c.bf16 %v7691_v44, %v7690_v2  ;;  %v7699_v44 = vld [vmem:[%s9098_s30 + $0x9a] sm:$0xff] }
 0x218   : > { %v8512_v25 = vpop.f32.mrf.mxu1  ;;  %8810 = vmatprep.mubr.msk.bf16.mxu1 %vm9005_vm1, %v9004_v1  ;;  %8814 = vmatprep.subr.bf16.mxu0 %v9004_v1 }
 0x219   : > { %v3973_v61 = vpop.f32.mrf.mxu0  ;;  %8820 = vmatprep.subr.bf16.mxu1 %v9004_v1 }
 0x21a   : > { %v10527_v59 = vadd.f32 %v3973_v61, %v10313_v46  ;;  %v4017_v30 = vpop.f32.mrf.mxu1  ;;  %v7694_v46 = vld [vmem:[%s9098_s30 + $0x62] sm:$0xff] }
 0x21b   : > { %v10530_v16 = vadd.f32 %v4017_v30, %v10316_v63  ;;  %v8507_v18 = vpop.f32.mrf.mxu0  ;;  %v6458_v30 = vpack.c.bf16 %v7701_v23, %v7700_v34  ;;  %v7708_v34 = vld [vmem:[%s9098_s30 + $0x10a] sm:$0xff]  ;;  %v7709_v23 = vld [vmem:[%s9098_s30 + $0x112] sm:$0xff] }
 0x21c   : > { %v8513_v56 = vpop.f32.mrf.mxu1 }
 0x21d   : > { %v4143_v8 = vpop.f32.mrf.mxu0  ;;  %8805 = vmatmul.mubr.msk.bf16.vlgmr.msra.gmra.mxu0 %vm269_vm2, %v6453_v15 }
 0x21e   : > { %v10534_v53 = vadd.f32 %v4143_v8, %v10320_v12  ;;  %v4187_v17 = vpop.f32.mrf.mxu1  ;;  %8811 = vmatmul.mubr.msk.bf16.vlgmr.msra.gmra.mxu1 %vm269_vm2, %v6454_v7  ;;  %8815 = vmatpush3.bf16.msra.mxu0 %v10504_v36 }
 0x21f   : > { %v10541_v9 = vadd.f32 %v4187_v17, %v10327_v35  ;;  %8821 = vmatpush3.bf16.msra.mxu1 %v10504_v36  ;;  %v8518_v63 = vpop.f32.mrf.mxu0  ;;  %8816 = vmatprep.mubr.msk.bf16.mxu0 %vm9005_vm1, %v9004_v1  ;;  %v6455_v35 = vpack.c.bf16 %v7695_v37, %v7694_v46  ;;  %v7703_v37 = vld [vmem:[%s9098_s30 + $0xca] sm:$0xff] }
 0x220   : > { %v8524_v12 = vpop.f32.mrf.mxu1  ;;  %8822 = vmatprep.mubr.msk.bf16.mxu1 %vm9005_vm1, %v9004_v1  ;;  %8826 = vmatprep.subr.bf16.mxu0 %v9004_v1 }
 0x221   : > { %v4146_v48 = vpop.f32.mrf.mxu0  ;;  %8832 = vmatprep.subr.bf16.mxu1 %v9004_v1 }
 0x222   : > { %v10553_v4 = vadd.f32 %v4146_v48, %v10339_v20  ;;  %v4190_v29 = vpop.f32.mrf.mxu1  ;;  %v7698_v20 = vld [vmem:[%s9098_s30 + $0x92] sm:$0xff] }
 0x223   : > { %v10556_v22 = vadd.f32 %v4190_v29, %v10342_v43  ;;  %v8519_v41 = vpop.f32.mrf.mxu0  ;;  %v6460_v29 = vpack.c.bf16 %v7705_v51, %v7704_v5  ;;  %v7712_v5 = vld [vmem:[%s9098_s30 + $0x13a] sm:$0xff]  ;;  %v7713_v51 = vld [vmem:[%s9098_s30 + $0x142] sm:$0xff] }
 0x224   : > { %v8525_v45 = vpop.f32.mrf.mxu1 }
 0x225   : > { %v4231_v54 = vpop.f32.mrf.mxu0  ;;  %8817 = vmatmul.mubr.msk.bf16.vlgmr.msra.gmra.mxu0 %vm269_vm2, %v6455_v35 }
 0x226   : > { %v10560_v27 = vadd.f32 %v4231_v54, %v10346_v26  ;;  %v4275_v2 = vpop.f32.mrf.mxu1  ;;  %8823 = vmatmul.mubr.msk.bf16.vlgmr.msra.gmra.mxu1 %vm269_vm2, %v6456_v40  ;;  %8827 = vmatpush3.bf16.msra.mxu0 %v10504_v36 }
 0x227   : > { %v10567_v62 = vadd.f32 %v4275_v2, %v10353_v52  ;;  %8833 = vmatpush3.bf16.msra.mxu1 %v10504_v36  ;;  %v8530_v43 = vpop.f32.mrf.mxu0  ;;  %8828 = vmatprep.mubr.msk.bf16.mxu0 %vm9005_vm1, %v9004_v1  ;;  %v6457_v52 = vpack.c.bf16 %v7699_v44, %v7698_v20  ;;  %v7707_v44 = vld [vmem:[%s9098_s30 + $0xfa] sm:$0xff] }
 0x228   : > { %v8536_v26 = vpop.f32.mrf.mxu1  ;;  %8834 = vmatprep.mubr.msk.bf16.mxu1 %vm9005_vm1, %v9004_v1  ;;  %8838 = vmatprep.subr.bf16.mxu0 %v9004_v1 }
 0x229   : > { %v4234_v25 = vpop.f32.mrf.mxu0  ;;  %8844 = vmatprep.subr.bf16.mxu1 %v9004_v1 }
 0x22a   : > { %v10579_v61 = vadd.f32 %v4234_v25, %v10365_v32  ;;  %v4278_v15 = vpop.f32.mrf.mxu1  ;;  %v7702_v32 = vld [vmem:[%s9098_s30 + $0xc2] sm:$0xff] }
 0x22b   : > { %v10582_v7 = vadd.f32 %v4278_v15, %v10368_v31  ;;  %v8531_v18 = vpop.f32.mrf.mxu0  ;;  %v6462_v15 = vpack.c.bf16 %v7709_v23, %v7708_v34  ;;  %v7716_v34 = vld [vmem:[%s9098_s30 + $0x16a] sm:$0xff]  ;;  %v7717_v23 = vld [vmem:[%s9098_s30 + $0x172] sm:$0xff] }
 0x22c   : > { %v8537_v56 = vpop.f32.mrf.mxu1 }
 0x22d   : > { %v4319_v8 = vpop.f32.mrf.mxu0  ;;  %8829 = vmatmul.mubr.msk.bf16.vlgmr.msra.gmra.mxu0 %vm269_vm2, %v6457_v52 }
 0x22e   : > { %v10586_v17 = vadd.f32 %v4319_v8, %v10372_v28  ;;  %v4363_v46 = vpop.f32.mrf.mxu1  ;;  %8835 = vmatmul.mubr.msk.bf16.vlgmr.msra.gmra.mxu1 %vm269_vm2, %v6458_v30  ;;  %8839 = vmatpush3.bf16.msra.mxu0 %v10504_v36 }
 0x22f   : > { %v10593_v63 = vadd.f32 %v4363_v46, %v10379_v21  ;;  %8845 = vmatpush3.bf16.msra.mxu1 %v10504_v36  ;;  %v8542_v31 = vpop.f32.mrf.mxu0  ;;  %8840 = vmatprep.mubr.msk.bf16.mxu0 %vm9005_vm1, %v9004_v1  ;;  %v6459_v21 = vpack.c.bf16 %v7703_v37, %v7702_v32  ;;  %v7711_v37 = vld [vmem:[%s9098_s30 + $0x12a] sm:$0xff] }
 0x230   : > { %v8548_v28 = vpop.f32.mrf.mxu1  ;;  %8846 = vmatprep.mubr.msk.bf16.mxu1 %vm9005_vm1, %v9004_v1  ;;  %8850 = vmatprep.subr.bf16.mxu0 %v9004_v1 }
 0x231   : > { %v4322_v12 = vpop.f32.mrf.mxu0  ;;  %8856 = vmatprep.subr.bf16.mxu1 %v9004_v1 }
 0x232   : > { %v10605_v48 = vadd.f32 %v4322_v12, %v10391_v0  ;;  %v4366_v35 = vpop.f32.mrf.mxu1  ;;  %v7706_v0 = vld [vmem:[%s9098_s30 + $0xf2] sm:$0xff] }
 0x233   : > { %v10608_v40 = vadd.f32 %v4366_v35, %v10394_v10  ;;  %v8543_v41 = vpop.f32.mrf.mxu0  ;;  %v6464_v35 = vpack.c.bf16 %v7713_v51, %v7712_v5  ;;  %v7720_v5 = vld [vmem:[%s9098_s30 + $0x19a] sm:$0xff]  ;;  %v7721_v51 = vld [vmem:[%s9098_s30 + $0x1a2] sm:$0xff] }
 0x234   : > { %v8549_v45 = vpop.f32.mrf.mxu1 }
 0x235   : > { %v4407_v54 = vpop.f32.mrf.mxu0  ;;  %8841 = vmatmul.mubr.msk.bf16.vlgmr.msra.gmra.mxu0 %vm269_vm2, %v6459_v21 }
 0x236   : > { %v10612_v2 = vadd.f32 %v4407_v54, %v10398_v50  ;;  %v4451_v20 = vpop.f32.mrf.mxu1  ;;  %8847 = vmatmul.mubr.msk.bf16.vlgmr.msra.gmra.mxu1 %vm269_vm2, %v6460_v29  ;;  %8851 = vmatpush3.bf16.msra.mxu0 %v10504_v36 }
 0x237   : > { %v10619_v43 = vadd.f32 %v4451_v20, %v10405_v42  ;;  %8857 = vmatpush3.bf16.msra.mxu1 %v10504_v36  ;;  %v8554_v10 = vpop.f32.mrf.mxu0  ;;  %8852 = vmatprep.mubr.msk.bf16.mxu0 %vm9005_vm1, %v9004_v1  ;;  %v6461_v42 = vpack.c.bf16 %v7707_v44, %v7706_v0  ;;  %v7715_v44 = vld [vmem:[%s9098_s30 + $0x15a] sm:$0xff] }
 0x238   : > { %v8560_v50 = vpop.f32.mrf.mxu1  ;;  %8858 = vmatprep.mubr.msk.bf16.mxu1 %vm9005_vm1, %v9004_v1  ;;  %8862 = vmatprep.subr.bf16.mxu0 %v9004_v1 }
 0x239   : > { %v4410_v26 = vpop.f32.mrf.mxu0  ;;  %8868 = vmatprep.subr.bf16.mxu1 %v9004_v1 }
 0x23a   : > { %v10631_v25 = vadd.f32 %v4410_v26, %v10417_v39  ;;  %v4454_v52 = vpop.f32.mrf.mxu1  ;;  %v7710_v39 = vld [vmem:[%s9098_s30 + $0x122] sm:$0xff] }
 0x23b   : > { %v10634_v30 = vadd.f32 %v4454_v52, %v10420_v60  ;;  %v8555_v18 = vpop.f32.mrf.mxu0  ;;  %v6466_v52 = vpack.c.bf16 %v7717_v23, %v7716_v34 }
 0x23c   : > { %v8561_v56 = vpop.f32.mrf.mxu1 }
 0x23d   : > { %v4495_v8 = vpop.f32.mrf.mxu0  ;;  %8853 = vmatmul.mubr.msk.bf16.vlgmr.msra.gmra.mxu0 %vm269_vm2, %v6461_v42 }
 0x23e   : > { %v10638_v46 = vadd.f32 %v4495_v8, %v10424_v3  ;;  %v4539_v32 = vpop.f32.mrf.mxu1  ;;  %8859 = vmatmul.mubr.msk.bf16.vlgmr.msra.gmra.mxu1 %vm269_vm2, %v6462_v15  ;;  %8863 = vmatpush3.bf16.msra.mxu0 %v10504_v36 }
 0x23f   : > { %v10645_v31 = vadd.f32 %v4539_v32, %v10431_v55  ;;  %8869 = vmatpush3.bf16.msra.mxu1 %v10504_v36  ;;  %v8566_v60 = vpop.f32.mrf.mxu0  ;;  %8864 = vmatprep.mubr.msk.bf16.mxu0 %vm9005_vm1, %v9004_v1  ;;  %v6463_v55 = vpack.c.bf16 %v7711_v37, %v7710_v39  ;;  %v7719_v37 = vld [vmem:[%s9098_s30 + $0x18a] sm:$0xff] }
 0x240   : > { %v8572_v3 = vpop.f32.mrf.mxu1  ;;  %8870 = vmatprep.mubr.msk.bf16.mxu1 %vm9005_vm1, %v9004_v1  ;;  %8874 = vmatprep.subr.bf16.mxu0 %v9004_v1 }
 0x241   : > { %v4498_v28 = vpop.f32.mrf.mxu0  ;;  %8880 = vmatprep.subr.bf16.mxu1 %v9004_v1 }
 0x242   : > { %v10657_v12 = vadd.f32 %v4498_v28, %v10443_v24  ;;  %v4542_v21 = vpop.f32.mrf.mxu1  ;;  %v7714_v24 = vld [vmem:[%s9098_s30 + $0x152] sm:$0xff] }
 0x243   : > { %v10660_v29 = vadd.f32 %v4542_v21, %v10446_v14  ;;  %v8567_v41 = vpop.f32.mrf.mxu0 }
 0x244   : > { %v8573_v45 = vpop.f32.mrf.mxu1 }
 0x245   : > { %v4583_v54 = vpop.f32.mrf.mxu0  ;;  %8865 = vmatmul.mubr.msk.bf16.vlgmr.msra.gmra.mxu0 %vm269_vm2, %v6463_v55 }
 0x246   : > { %v10664_v20 = vadd.f32 %v4583_v54, %v10450_v11  ;;  %v4627_v0 = vpop.f32.mrf.mxu1  ;;  %8871 = vmatmul.mubr.msk.bf16.vlgmr.msra.gmra.mxu1 %vm269_vm2, %v6464_v35  ;;  %8875 = vmatpush3.bf16.msra.mxu0 %v10504_v36 }
 0x247   : > { %v10671_v10 = vadd.f32 %v4627_v0, %v10457_v57  ;;  %8881 = vmatpush3.bf16.msra.mxu1 %v10504_v36  ;;  %v8578_v14 = vpop.f32.mrf.mxu0  ;;  %8876 = vmatprep.mubr.msk.bf16.mxu0 %vm9005_vm1, %v9004_v1  ;;  %v6465_v57 = vpack.c.bf16 %v7715_v44, %v7714_v24 }
 0x248   : > { %v8584_v11 = vpop.f32.mrf.mxu1  ;;  %8882 = vmatprep.mubr.msk.bf16.mxu1 %vm9005_vm1, %v9004_v1  ;;  %8886 = vmatprep.subr.bf16.mxu0 %v9004_v1 }
 0x249   : > { %v4586_v50 = vpop.f32.mrf.mxu0  ;;  %8892 = vmatprep.subr.bf16.mxu1 %v9004_v1 }
 0x24a   : > { %v10683_v26 = vadd.f32 %v4586_v50, %v10469_v58  ;;  %v4630_v42 = vpop.f32.mrf.mxu1  ;;  %v7718_v58 = vld [vmem:[%s9098_s30 + $0x182] sm:$0xff] }
 0x24b   : > { %v10686_v15 = vadd.f32 %v4630_v42, %v10472_v6  ;;  %v8579_v18 = vpop.f32.mrf.mxu0  ;;  %v6467_v28 = vpack.c.bf16 %v7719_v37, %v7718_v58 }
 0x24c   : > { %v8585_v56 = vpop.f32.mrf.mxu1 }
 0x24d   : > { %v4671_v8 = vpop.f32.mrf.mxu0  ;;  %8877 = vmatmul.mubr.msk.bf16.vlgmr.msra.gmra.mxu0 %vm269_vm2, %v6465_v57 }
 0x24e   : > { %v10690_v32 = vadd.f32 %v4671_v8, %v10476_v47  ;;  %v4715_v39 = vpop.f32.mrf.mxu1  ;;  %8883 = vmatmul.mubr.msk.bf16.vlgmr.msra.gmra.mxu1 %vm269_vm2, %v6466_v52  ;;  %8887 = vmatpush3.bf16.msra.mxu0 %v10504_v36 }
 0x24f   : > { %v10697_v60 = vadd.f32 %v4715_v39, %v10483_v49  ;;  %8893 = vmatpush3.bf16.msra.mxu1 %v10504_v36  ;;  %v8590_v6 = vpop.f32.mrf.mxu0  ;;  %8888 = vmatprep.mubr.msk.bf16.mxu0 %vm9005_vm1, %v9004_v1  ;;  %v6468_v49 = vpack.c.bf16 %v7721_v51, %v7720_v5 }
 0x250   : > { %v8596_v47 = vpop.f32.mrf.mxu1  ;;  %8894 = vmatprep.mubr.msk.bf16.mxu1 %vm9005_vm1, %v9004_v1 }
 0x251   : > { %v4674_v3 = vpop.f32.mrf.mxu0 }
 0x252   : > { %v10707_v55 = vadd.f32 %v4674_v3, %v10498_v33  ;;  %v4718_v21 = vpop.f32.mrf.mxu1 }
 0x253   : > { %v10710_v35 = vadd.f32 %v4718_v21, %v10501_v38  ;;  %v8591_v36 = vpop.f32.mrf.mxu0 }
 0x254   : > { %v8597_v41 = vpop.f32.mrf.mxu1 }
 0x255   : > { %v4759_v45 = vpop.f32.mrf.mxu0  ;;  %8889 = vmatmul.mubr.msk.bf16.vlgmr.msra.gmra.mxu0 %vm269_vm2, %v6467_v28 }
 0x256   : > { %v10714_v54 = vadd.f32 %v4759_v45, %v10508_v13  ;;  %v4803_v0 = vpop.f32.mrf.mxu1  ;;  %8895 = vmatmul.mubr.msk.bf16.vlgmr.msra.gmra.mxu1 %vm269_vm2, %v6468_v49 }
 0x257   : > { %v10718_v1 = vadd.f32 %v4803_v0, %v10515_v19  ;;  %v8602_v33 = vpop.f32.mrf.mxu0 }
 0x258   : > { %v8608_v24 = vpop.f32.mrf.mxu1 }
 0x259   : > { %v4762_v44 = vpop.f32.mrf.mxu0 }
 0x25a   : > { %v10721_v38 = vadd.f32 %v4762_v44, %v10527_v59  ;;  %v4806_v14 = vpop.f32.mrf.mxu1 }
 0x25b   : > { %v10724_v34 = vadd.f32 %v4806_v14, %v10530_v16  ;;  %v8603_v23 = vpop.f32.mrf.mxu0 }
 0x25c   : > { %v8609_v11 = vpop.f32.mrf.mxu1 }
 0x25d   : > { %v4933_v13 = vpop.f32.mrf.mxu0 }
 0x25e   : > { %v10727_v50 = vadd.f32 %v4933_v13, %v10534_v53  ;;  %v4977_v57 = vpop.f32.mrf.mxu1 }
 0x25f   : > { %v10730_v19 = vadd.f32 %v4977_v57, %v10541_v9  ;;  %v8614_v42 = vpop.f32.mrf.mxu0 }
 0x260   : > { %v8620_v52 = vpop.f32.mrf.mxu1 }
 0x261   : > { %v4936_v18 = vpop.f32.mrf.mxu0 }
 0x262   : > { %v10733_v59 = vadd.f32 %v4936_v18, %v10553_v4  ;;  %v4980_v56 = vpop.f32.mrf.mxu1 }
 0x263   : > { %v10736_v16 = vadd.f32 %v4980_v56, %v10556_v22  ;;  %v8615_v8 = vpop.f32.mrf.mxu0 }
 0x264   : > { %v8621_v39 = vpop.f32.mrf.mxu1 }
 0x265   : > { %v5021_v58 = vpop.f32.mrf.mxu0 }
 0x266   : > { %v10739_v53 = vadd.f32 %v5021_v58, %v10560_v27  ;;  %v5065_v37 = vpop.f32.mrf.mxu1 }
 0x267   : > { %v10742_v9 = vadd.f32 %v5065_v37, %v10567_v62  ;;  %v8626_v6 = vpop.f32.mrf.mxu0 }
 0x268   : > { %v8632_v5 = vpop.f32.mrf.mxu1 }
 0x269   : > { %v5024_v51 = vpop.f32.mrf.mxu0 }
 0x26a   : > { %v10745_v4 = vadd.f32 %v5024_v51, %v10579_v61  ;;  %v5068_v47 = vpop.f32.mrf.mxu1 }
 0x26b   : > { %v10748_v22 = vadd.f32 %v5068_v47, %v10582_v7  ;;  %v8627_v3 = vpop.f32.mrf.mxu0 }
 0x26c   : > { %v8633_v28 = vpop.f32.mrf.mxu1 }
 0x26d   : > { %v5109_v21 = vpop.f32.mrf.mxu0 }
 0x26e   : > { %v10751_v27 = vadd.f32 %v5109_v21, %v10586_v17  ;;  %v5153_v49 = vpop.f32.mrf.mxu1 }
 0x26f   : > { %v10754_v62 = vadd.f32 %v5153_v49, %v10593_v63  ;;  %v8638_v36 = vpop.f32.mrf.mxu0 }
 0x270   : > { %v8644_v41 = vpop.f32.mrf.mxu1 }
 0x271   : > { %v5112_v45 = vpop.f32.mrf.mxu0 }
 0x272   : > { %v10757_v61 = vadd.f32 %v5112_v45, %v10605_v48  ;;  %v5156_v0 = vpop.f32.mrf.mxu1 }
 0x273   : > { %v10760_v7 = vadd.f32 %v5156_v0, %v10608_v40  ;;  %v8639_v33 = vpop.f32.mrf.mxu0 }
 0x274   : > { %v8645_v24 = vpop.f32.mrf.mxu1 }
 0x275   : > { %v5197_v44 = vpop.f32.mrf.mxu0 }
 0x276   : > { %v10763_v17 = vadd.f32 %v5197_v44, %v10612_v2  ;;  %v5241_v14 = vpop.f32.mrf.mxu1 }
 0x277   : > { %v10766_v63 = vadd.f32 %v5241_v14, %v10619_v43  ;;  %v8650_v23 = vpop.f32.mrf.mxu0 }
 0x278   : > { %v8656_v11 = vpop.f32.mrf.mxu1 }
 0x279   : > { %v5200_v13 = vpop.f32.mrf.mxu0 }
 0x27a   : > { %v10769_v48 = vadd.f32 %v5200_v13, %v10631_v25  ;;  %v5244_v57 = vpop.f32.mrf.mxu1 }
 0x27b   : > { %v10772_v40 = vadd.f32 %v5244_v57, %v10634_v30  ;;  %v8651_v42 = vpop.f32.mrf.mxu0 }
 0x27c   : > { %v8657_v52 = vpop.f32.mrf.mxu1 }
 0x27d   : > { %v5285_v18 = vpop.f32.mrf.mxu0 }
 0x27e   : > { %v10775_v2 = vadd.f32 %v5285_v18, %v10638_v46  ;;  %v5329_v56 = vpop.f32.mrf.mxu1 }
 0x27f   : > { %v10778_v43 = vadd.f32 %v5329_v56, %v10645_v31  ;;  %v8662_v8 = vpop.f32.mrf.mxu0 }
 0x280   : > { %v8668_v39 = vpop.f32.mrf.mxu1 }
 0x281   : > { %v5288_v58 = vpop.f32.mrf.mxu0 }
 0x282   : > { %v10781_v25 = vadd.f32 %v5288_v58, %v10657_v12  ;;  %v5332_v37 = vpop.f32.mrf.mxu1 }
 0x283   : > { %v10784_v30 = vadd.f32 %v5332_v37, %v10660_v29  ;;  %v8663_v6 = vpop.f32.mrf.mxu0 }
 0x284   : > { %v8669_v5 = vpop.f32.mrf.mxu1 }
 0x285   : > { %v5373_v51 = vpop.f32.mrf.mxu0 }
 0x286   : > { %v10787_v46 = vadd.f32 %v5373_v51, %v10664_v20  ;;  %v5417_v47 = vpop.f32.mrf.mxu1 }
 0x287   : > { %v10790_v31 = vadd.f32 %v5417_v47, %v10671_v10  ;;  %v8674_v3 = vpop.f32.mrf.mxu0 }
 0x288   : > { %v8680_v28 = vpop.f32.mrf.mxu1 }
 0x289   : > { %v5376_v21 = vpop.f32.mrf.mxu0 }
 0x28a   : > { %v10793_v12 = vadd.f32 %v5376_v21, %v10683_v26  ;;  %v5420_v49 = vpop.f32.mrf.mxu1 }
 0x28b   : > { %v10796_v29 = vadd.f32 %v5420_v49, %v10686_v15  ;;  %v8675_v36 = vpop.f32.mrf.mxu0 }
 0x28c   : > { %v8681_v41 = vpop.f32.mrf.mxu1 }
 0x28d   : > { %v5461_v45 = vpop.f32.mrf.mxu0 }
 0x28e   : > { %v10799_v20 = vadd.f32 %v5461_v45, %v10690_v32  ;;  %v5505_v0 = vpop.f32.mrf.mxu1 }
 0x28f   : > { %v10802_v10 = vadd.f32 %v5505_v0, %v10697_v60  ;;  %v8686_v33 = vpop.f32.mrf.mxu0 }
 0x290   : > { %v8692_v24 = vpop.f32.mrf.mxu1 }
 0x291   : > { %11081 = vst [vmem:[#allocation5_spill] sm:$0xff] %v10802_v10  ;;  %v5464_v44 = vpop.f32.mrf.mxu0 }
 0x292   : > { %v10805_v26 = vadd.f32 %v5464_v44, %v10707_v55  ;;  %v5508_v14 = vpop.f32.mrf.mxu1 }
 0x293   : > { %v10808_v15 = vadd.f32 %v5508_v14, %v10710_v35  ;;  %v8687_v23 = vpop.f32.mrf.mxu0 }
 0x294   : > { %11082 = vst [vmem:[#allocation6_spill] sm:$0xff] %v10805_v26  ;;  %v8693_v11 = vpop.f32.mrf.mxu1 }
 0x295   : > { %11083 = vst [vmem:[#allocation7_spill] sm:$0xff] %v10808_v15  ;;  %v5549_v13 = vpop.f32.mrf.mxu0 }
 0x296   : > { %v10811_v32 = vadd.f32 %v5549_v13, %v10714_v54  ;;  %v5593_v57 = vpop.f32.mrf.mxu1 }
 0x297   : > { %v10814_v60 = vadd.f32 %v5593_v57, %v10718_v1  ;;  %v8698_v42 = vpop.f32.mrf.mxu0 }
 0x298   : > { %11084 = vst [vmem:[#allocation8_spill] sm:$0xff] %v10811_v32  ;;  %v8704_v52 = vpop.f32.mrf.mxu1 }
 0x299   : > { %11085 = vst [vmem:[#allocation9_spill] sm:$0xff] %v10814_v60  ;;  %v5552_v18 = vpop.f32.mrf.mxu0 }
 0x29a   : > { %v10817_v55 = vadd.f32 %v5552_v18, %v10721_v38  ;;  %v5596_v56 = vpop.f32.mrf.mxu1 }
 0x29b   : > { %v10820_v35 = vadd.f32 %v5596_v56, %v10724_v34  ;;  %v8699_v8 = vpop.f32.mrf.mxu0 }
 0x29c   : > { %11086 = vst [vmem:[#allocation10_spill] sm:$0xff] %v10817_v55  ;;  %v8705_v39 = vpop.f32.mrf.mxu1 }
 0x29d   : > { %11087 = vst [vmem:[#allocation11_spill] sm:$0xff] %v10820_v35  ;;  %v10822_v58 = vpop.f32.mrf.mxu0 }
 0x29e   : > { %v10824_v54 = vpop.f32.mrf.mxu1 }
 0x29f   : > { %v8710_v37 = vpop.f32.mrf.mxu0 }
 0x2a0   : > { %v8716_v6 = vpop.f32.mrf.mxu1 }
 0x2a1   : > { %v10826_v1 = vpop.f32.mrf.mxu0 }
 0x2a2   : > { %v10828_v5 = vpop.f32.mrf.mxu1 }
 0x2a3   : > { %v8711_v51 = vpop.f32.mrf.mxu0 }
 0x2a4   : > { %v8717_v47 = vpop.f32.mrf.mxu1 }
 0x2a5   : > { %v10830_v38 = vpop.f32.mrf.mxu0 }
 0x2a6   : > { %v10832_v3 = vpop.f32.mrf.mxu1 }
 0x2a7   : > { %v8722_v34 = vpop.f32.mrf.mxu0 }
 0x2a8   : > { %v8728_v28 = vpop.f32.mrf.mxu1 }
 0x2a9   : > { %v10834_v21 = vpop.f32.mrf.mxu0 }
 0x2aa   : > { %v10836_v49 = vpop.f32.mrf.mxu1 }
 0x2ab   : > { %v8723_v36 = vpop.f32.mrf.mxu0 }
 0x2ac   : > { %v8729_v41 = vpop.f32.mrf.mxu1 }
 0x2ad   : > { %v10838_v45 = vpop.f32.mrf.mxu0 }
 0x2ae   : > { %v10840_v0 = vpop.f32.mrf.mxu1 }
 0x2af   : > { %v8734_v33 = vpop.f32.mrf.mxu0 }
 0x2b0   : > { %v8740_v24 = vpop.f32.mrf.mxu1 }
 0x2b1   : > { %v10842_v44 = vpop.f32.mrf.mxu0 }
 0x2b2   : > { %v10844_v14 = vpop.f32.mrf.mxu1 }
 0x2b3   : > { %v8735_v23 = vpop.f32.mrf.mxu0 }
 0x2b4   : > { %v8741_v11 = vpop.f32.mrf.mxu1 }
 0x2b5   : > { %v10846_v13 = vpop.f32.mrf.mxu0 }
 0x2b6   : > { %v10848_v57 = vpop.f32.mrf.mxu1 }
 0x2b7   : > { %v8746_v42 = vpop.f32.mrf.mxu0 }
 0x2b8   : > { %v8752_v52 = vpop.f32.mrf.mxu1 }
 0x2b9   : > { %v10850_v18 = vpop.f32.mrf.mxu0 }
 0x2ba   : > { %v10852_v56 = vpop.f32.mrf.mxu1 }
 0x2bb   : > { %v8747_v8 = vpop.f32.mrf.mxu0 }
 0x2bc   : > { %v8753_v39 = vpop.f32.mrf.mxu1 }
 0x2bd   : > { %v10854_v37 = vpop.f32.mrf.mxu0 }
 0x2be   : > { %v10856_v6 = vpop.f32.mrf.mxu1 }
 0x2bf   : > { %v8758_v51 = vpop.f32.mrf.mxu0 }
 0x2c0   : > { %v8764_v47 = vpop.f32.mrf.mxu1 }
 0x2c1   : > { %v10858_v34 = vpop.f32.mrf.mxu0 }
 0x2c2   : > { %v10860_v28 = vpop.f32.mrf.mxu1 }
 0x2c3   : > { %v8759_v36 = vpop.f32.mrf.mxu0 }
 0x2c4   : > { %v8765_v41 = vpop.f32.mrf.mxu1 }
 0x2c5   : > { %v10862_v33 = vpop.f32.mrf.mxu0 }
 0x2c6   : > { %v10864_v24 = vpop.f32.mrf.mxu1 }
 0x2c7   : > { %v8770_v23 = vpop.f32.mrf.mxu0 }
 0x2c8   : > { %v8776_v11 = vpop.f32.mrf.mxu1 }
 0x2c9   : > { %v10866_v42 = vpop.f32.mrf.mxu0 }
 0x2ca   : > { %v10868_v52 = vpop.f32.mrf.mxu1 }
 0x2cb   : > { %v8771_v8 = vpop.f32.mrf.mxu0 }
 0x2cc   : > { %v8777_v39 = vpop.f32.mrf.mxu1 }
 0x2cd   : > { %v10870_v51 = vpop.f32.mrf.mxu0 }
 0x2ce   : > { %v10872_v47 = vpop.f32.mrf.mxu1 }
 0x2cf   : > { %11088 = vst [vmem:[#allocation12_spill] sm:$0xff] %v10872_v47  ;;  %v8782_v35 = vpop.f32.mrf.mxu0 }
 0x2d0   : > { %v8788_v36 = vpop.f32.mrf.mxu1  ;;  %v6389_v35 = vadd.f32 %v10822_v58, %v10727_v50 }
 0x2d1   : > { %v10874_v41 = vpop.f32.mrf.mxu0 }
 0x2d2   : > { %11089 = vst [vmem:[#allocation13_spill] sm:$0xff] %v10874_v41  ;;  %v10876_v55 = vpop.f32.mrf.mxu1 }
 0x2d3   : > { %11090 = vst [vmem:[#allocation14_spill] sm:$0xff] %v10876_v55  ;;  %v8783_v23 = vpop.f32.mrf.mxu0 }
 0x2d4   : > { %v8789_v11 = vpop.f32.mrf.mxu1  ;;  %v6391_v23 = vadd.f32 %v10824_v54, %v10730_v19  ;;  %v6392_v19 = vadd.f32 %v10828_v5, %v10736_v16 }
 0x2d5   : > { %v10878_v60 = vpop.f32.mrf.mxu0 }
 0x2d6   : > { %11091 = vst [vmem:[#allocation15_spill] sm:$0xff] %v10878_v60  ;;  %v10880_v32 = vpop.f32.mrf.mxu1 }
 0x2d7   : > { %11092 = vst [vmem:[#allocation16_spill] sm:$0xff] %v10880_v32  ;;  %v8794_v8 = vpop.f32.mrf.mxu0  ;;  %v10894_v32 = vld [vmem:[%s11077_s2] ss:$0 sm:$0xff] }
 0x2d8   : > { %v8800_v39 = vpop.f32.mrf.mxu1 }
 0x2d9   : > { %v10882_v15 = vpop.f32.mrf.mxu0 }
 0x2da   : > { %11093 = vst [vmem:[#allocation17_spill] sm:$0xff] %v10882_v15  ;;  %v10884_v26 = vpop.f32.mrf.mxu1  ;;  %v6390_v15 = vadd.f32 %v10826_v1, %v10733_v59 }
 0x2db   : > { %11094 = vst [vmem:[#allocation18_spill] sm:$0xff] %v10884_v26  ;;  %v8795_v47 = vpop.f32.mrf.mxu0 }
 0x2dc   : > { %v8801_v36 = vpop.f32.mrf.mxu1 }
 0x2dd   : > { %v6511_v11 = vpop.f32.mrf.mxu0 }
 0x2de   : > { %v7178_v8 = vadd.f32 %v6511_v11, %v6389_v35  ;;  %v6555_v39 = vpop.f32.mrf.mxu1 }
 0x2df   : > { %v7180_v26 = vadd.f32 %v6555_v39, %v6391_v23  ;;  %v8806_v47 = vpop.f32.mrf.mxu0  ;;  %v6393_v23 = vadd.f32 %v10830_v38, %v10739_v53 }
 0x2e0   : > { %v7217_v50 = vadd.f32 %v10894_v32, %v7178_v8  ;;  %v8812_v58 = vpop.f32.mrf.mxu1 }
 0x2e1   : > { %v7219_v54 = vadd.f32 %v10894_v32, %v7180_v26  ;;  %v6514_v36 = vpop.f32.mrf.mxu0  ;;  %v6395_v26 = vadd.f32 %v10832_v3, %v10742_v9  ;;  %v6396_v9 = vadd.f32 %v10836_v49, %v10748_v22  ;;  %v6399_v22 = vadd.f32 %v10840_v0, %v10754_v62 }
 0x2e2   : > { %v7249_v60 = vmax.f32 %v7217_v50, 0.0  ;;  %v7179_v55 = vadd.f32 %v6514_v36, %v6390_v15  ;;  %v6558_v41 = vpop.f32.mrf.mxu1  ;;  %v6400_v62 = vadd.f32 %v10844_v14, %v10760_v7  ;;  %v6403_v7 = vadd.f32 %v10848_v57, %v10766_v63 }
 0x2e3   : > { %v7251_v10 = vmax.f32 %v7219_v54, 0.0  ;;  %v7181_v35 = vadd.f32 %v6558_v41, %v6392_v19  ;;  %v8807_v11 = vpop.f32.mrf.mxu0  ;;  %v6404_v63 = vadd.f32 %v10852_v56, %v10772_v40  ;;  %v6407_v40 = vadd.f32 %v10856_v6, %v10778_v43 }
 0x2e4   : > { %7281 = vst [vmem:[%s10906_s6] sm:$0xff] %v7249_v60  ;;  %v7218_v59 = vadd.f32 %v10894_v32, %v7179_v55  ;;  %v8813_v16 = vpop.f32.mrf.mxu1  ;;  %v6394_v60 = vadd.f32 %v10834_v21, %v10745_v4  ;;  %v6397_v4 = vadd.f32 %v10838_v45, %v10751_v27  ;;  %v6398_v27 = vadd.f32 %v10842_v44, %v10757_v61 }
 0x2e5   : > { %7283 = vst [vmem:[%s10906_s6 + $0x10] sm:$0xff] %v7251_v10  ;;  %v7220_v15 = vadd.f32 %v10894_v32, %v7181_v35  ;;  %v6599_v1 = vpop.f32.mrf.mxu0  ;;  %v6401_v61 = vadd.f32 %v10846_v13, %v10763_v17  ;;  %v6402_v17 = vadd.f32 %v10850_v18, %v10769_v48  ;;  %v6405_v48 = vadd.f32 %v10854_v37, %v10775_v2 }
 0x2e6   : > { %v7250_v5 = vmax.f32 %v7218_v59, 0.0  ;;  %v7182_v41 = vadd.f32 %v6599_v1, %v6393_v23  ;;  %v6643_v53 = vpop.f32.mrf.mxu1  ;;  %v6406_v2 = vadd.f32 %v10858_v34, %v10781_v25  ;;  %v6408_v43 = vadd.f32 %v10860_v28, %v10784_v30 }
 0x2e7   : > { %v7252_v38 = vmax.f32 %v7220_v15, 0.0  ;;  %v7184_v8 = vadd.f32 %v6643_v53, %v6395_v26  ;;  %v8818_v39 = vpop.f32.mrf.mxu0  ;;  %v6409_v25 = vadd.f32 %v10862_v33, %v10787_v46  ;;  %v6411_v30 = vadd.f32 %v10864_v24, %v10790_v31 }
 0x2e8   : > { %7282 = vst [vmem:[%s10906_s6 + $0x8] sm:$0xff] %v7250_v5  ;;  %v7221_v55 = vadd.f32 %v10894_v32, %v7182_v41  ;;  %v8824_v47 = vpop.f32.mrf.mxu1  ;;  %v6410_v46 = vadd.f32 %v10866_v42, %v10793_v12  ;;  %v6412_v31 = vadd.f32 %v10868_v52, %v10796_v29  ;;  %v6413_v12 = vadd.f32 %v10870_v51, %v10799_v20  ;;  %v11096_v29 = vld [vmem:[#allocation12_spill] sm:$0xff]  ;;  %v11098_v20 = vld [vmem:[#allocation13_spill] sm:$0xff] }
 0x2e9   : > { %7284 = vst [vmem:[%s10906_s6 + $0x18] sm:$0xff] %v7252_v38  ;;  %v7223_v10 = vadd.f32 %v10894_v32, %v7184_v8  ;;  %v6602_v3 = vpop.f32.mrf.mxu0 }
 0x2ea   : > { %v7253_v50 = vmax.f32 %v7221_v55, 0.0  ;;  %v7183_v58 = vadd.f32 %v6602_v3, %v6394_v60  ;;  %v6646_v19 = vpop.f32.mrf.mxu1 }
 0x2eb   : > { %v7255_v54 = vmax.f32 %v7223_v10, 0.0  ;;  %v7185_v36 = vadd.f32 %v6646_v19, %v6396_v9  ;;  %v8819_v35 = vpop.f32.mrf.mxu0 }
 0x2ec   : > { %7285 = vst [vmem:[%s10906_s6 + $0x20] sm:$0xff] %v7253_v50  ;;  %v7222_v21 = vadd.f32 %v10894_v32, %v7183_v58  ;;  %v8825_v11 = vpop.f32.mrf.mxu1 }
 0x2ed   : > { %7287 = vst [vmem:[%s10906_s6 + $0x30] sm:$0xff] %v7255_v54  ;;  %v7224_v49 = vadd.f32 %v10894_v32, %v7185_v36  ;;  %v6687_v23 = vpop.f32.mrf.mxu0 }
 0x2ee   : > { %v7254_v59 = vmax.f32 %v7222_v21, 0.0  ;;  %v7186_v16 = vadd.f32 %v6687_v23, %v6397_v4  ;;  %v6731_v26 = vpop.f32.mrf.mxu1 }
 0x2ef   : > { %v7256_v15 = vmax.f32 %v7224_v49, 0.0  ;;  %v7188_v1 = vadd.f32 %v6731_v26, %v6399_v22  ;;  %v8830_v5 = vpop.f32.mrf.mxu0 }
 0x2f0   : > { %7286 = vst [vmem:[%s10906_s6 + $0x28] sm:$0xff] %v7254_v59  ;;  %v7225_v45 = vadd.f32 %v10894_v32, %v7186_v16  ;;  %v8836_v41 = vpop.f32.mrf.mxu1 }
 0x2f1   : > { %7288 = vst [vmem:[%s10906_s6 + $0x38] sm:$0xff] %v7256_v15  ;;  %v7227_v0 = vadd.f32 %v10894_v32, %v7188_v1  ;;  %v6690_v53 = vpop.f32.mrf.mxu0 }
 0x2f2   : > { %v7257_v38 = vmax.f32 %v7225_v45, 0.0  ;;  %v7187_v8 = vadd.f32 %v6690_v53, %v6398_v27  ;;  %v6734_v39 = vpop.f32.mrf.mxu1 }
 0x2f3   : > { %v7259_v60 = vmax.f32 %v7227_v0, 0.0  ;;  %v7189_v55 = vadd.f32 %v6734_v39, %v6400_v62  ;;  %v8831_v47 = vpop.f32.mrf.mxu0 }
 0x2f4   : > { %7289 = vst [vmem:[%s10906_s6 + $0x40] sm:$0xff] %v7257_v38  ;;  %v7226_v44 = vadd.f32 %v10894_v32, %v7187_v8  ;;  %v8837_v9 = vpop.f32.mrf.mxu1 }
 0x2f5   : > { %7291 = vst [vmem:[%s10906_s6 + $0x50] sm:$0xff] %v7259_v60  ;;  %v7228_v14 = vadd.f32 %v10894_v32, %v7189_v55  ;;  %v6775_v10 = vpop.f32.mrf.mxu0 }
 0x2f6   : > { %v7258_v3 = vmax.f32 %v7226_v44, 0.0  ;;  %v7190_v50 = vadd.f32 %v6775_v10, %v6401_v61  ;;  %v6819_v58 = vpop.f32.mrf.mxu1 }
 0x2f7   : > { %v7260_v19 = vmax.f32 %v7228_v14, 0.0  ;;  %v7192_v54 = vadd.f32 %v6819_v58, %v6403_v7  ;;  %v8842_v36 = vpop.f32.mrf.mxu0 }
 0x2f8   : > { %7290 = vst [vmem:[%s10906_s6 + $0x48] sm:$0xff] %v7258_v3  ;;  %v7229_v13 = vadd.f32 %v10894_v32, %v7190_v50  ;;  %v8848_v35 = vpop.f32.mrf.mxu1 }
 0x2f9   : > { %7292 = vst [vmem:[%s10906_s6 + $0x58] sm:$0xff] %v7260_v19  ;;  %v7231_v57 = vadd.f32 %v10894_v32, %v7192_v54  ;;  %v6778_v4 = vpop.f32.mrf.mxu0 }
 0x2fa   : > { %v7261_v21 = vmax.f32 %v7229_v13, 0.0  ;;  %v7191_v11 = vadd.f32 %v6778_v4, %v6402_v17  ;;  %v6822_v22 = vpop.f32.mrf.mxu1 }
 0x2fb   : > { %v7263_v49 = vmax.f32 %v7231_v57, 0.0  ;;  %v7193_v23 = vadd.f32 %v6822_v22, %v6404_v63  ;;  %v8843_v59 = vpop.f32.mrf.mxu0  ;;  %v11095_v57 = vld [vmem:[#allocation5_spill] sm:$0xff] }
 0x2fc   : > { %7293 = vst [vmem:[%s10906_s6 + $0x60] sm:$0xff] %v7261_v21  ;;  %v7230_v18 = vadd.f32 %v10894_v32, %v7191_v11  ;;  %v8849_v16 = vpop.f32.mrf.mxu1  ;;  %v6415_v52 = vadd.f32 %v11096_v29, %v11095_v57 }
 0x2fd   : > { %7295 = vst [vmem:[%s10906_s6 + $0x70] sm:$0xff] %v7263_v49  ;;  %v7232_v56 = vadd.f32 %v10894_v32, %v7193_v23  ;;  %v6863_v26 = vpop.f32.mrf.mxu0 }
 0x2fe   : > { %v7262_v15 = vmax.f32 %v7230_v18, 0.0  ;;  %v7194_v1 = vadd.f32 %v6863_v26, %v6405_v48  ;;  %v6907_v5 = vpop.f32.mrf.mxu1  ;;  %v11097_v18 = vld [vmem:[#allocation6_spill] sm:$0xff] }
 0x2ff   : > { %v7264_v27 = vmax.f32 %v7232_v56, 0.0  ;;  %v7196_v45 = vadd.f32 %v6907_v5, %v6407_v40  ;;  %v8854_v41 = vpop.f32.mrf.mxu0  ;;  %v6414_v51 = vadd.f32 %v11098_v20, %v11097_v18  ;;  %v11099_v56 = vld [vmem:[#allocation7_spill] sm:$0xff]  ;;  %v11100_v26 = vld [vmem:[#allocation14_spill] sm:$0xff] }
 0x300   : > { %7294 = vst [vmem:[%s10906_s6 + $0x68] sm:$0xff] %v7262_v15  ;;  %v7233_v37 = vadd.f32 %v10894_v32, %v7194_v1  ;;  %v8860_v62 = vpop.f32.mrf.mxu1  ;;  %v6416_v15 = vadd.f32 %v11100_v26, %v11099_v56 }
 0x301   : > { %7296 = vst [vmem:[%s10906_s6 + $0x78] sm:$0xff] %v7264_v27  ;;  %v7235_v6 = vadd.f32 %v10894_v32, %v7196_v45  ;;  %v6866_v0 = vpop.f32.mrf.mxu0 }
 0x302   : > { %v7265_v53 = vmax.f32 %v7233_v37, 0.0  ;;  %v7195_v38 = vadd.f32 %v6866_v0, %v6406_v2  ;;  %v6910_v8 = vpop.f32.mrf.mxu1 }
 0x303   : > { %v7267_v39 = vmax.f32 %v7235_v6, 0.0  ;;  %v7197_v60 = vadd.f32 %v6910_v8, %v6408_v43  ;;  %v8855_v55 = vpop.f32.mrf.mxu0  ;;  %v11101_v43 = vld [vmem:[#allocation8_spill] sm:$0xff]  ;;  %v11102_v6 = vld [vmem:[#allocation15_spill] sm:$0xff]  ;;  %v11103_v8 = vld [vmem:[#allocation9_spill] sm:$0xff] }
 0x304   : > { %7297 = vst [vmem:[%s10906_s6 + $0x80] sm:$0xff] %v7265_v53  ;;  %v7234_v34 = vadd.f32 %v10894_v32, %v7195_v38  ;;  %v8861_v47 = vpop.f32.mrf.mxu1  ;;  %v6417_v0 = vadd.f32 %v11102_v6, %v11101_v43 }
 0x305   : > { %7299 = vst [vmem:[%s10906_s6 + $0x90] sm:$0xff] %v7267_v39  ;;  %v7236_v28 = vadd.f32 %v10894_v32, %v7197_v60  ;;  %v6951_v61 = vpop.f32.mrf.mxu0  ;;  %v11104_v39 = vld [vmem:[#allocation16_spill] sm:$0xff] }
 0x306   : > { %v7266_v44 = vmax.f32 %v7234_v34, 0.0  ;;  %v7198_v9 = vadd.f32 %v6951_v61, %v6409_v25  ;;  %v6995_v7 = vpop.f32.mrf.mxu1  ;;  %v6419_v60 = vadd.f32 %v11104_v39, %v11103_v8 }
 0x307   : > { %v7268_v14 = vmax.f32 %v7236_v28, 0.0  ;;  %v7200_v10 = vadd.f32 %v6995_v7, %v6411_v30  ;;  %v8866_v3 = vpop.f32.mrf.mxu0  ;;  %v11106_v7 = vld [vmem:[#allocation17_spill] sm:$0xff] }
 0x308   : > { %7298 = vst [vmem:[%s10906_s6 + $0x88] sm:$0xff] %v7266_v44  ;;  %v7237_v33 = vadd.f32 %v10894_v32, %v7198_v9  ;;  %v8872_v50 = vpop.f32.mrf.mxu1  ;;  %v11105_v9 = vld [vmem:[#allocation10_spill] sm:$0xff] }
 0x309   : > { %7300 = vst [vmem:[%s10906_s6 + $0x98] sm:$0xff] %v7268_v14  ;;  %v7239_v24 = vadd.f32 %v10894_v32, %v7200_v10  ;;  %v6954_v58 = vpop.f32.mrf.mxu0  ;;  %v6418_v14 = vadd.f32 %v11106_v7, %v11105_v9 }
 0x30a   : > { %v7269_v19 = vmax.f32 %v7237_v33, 0.0  ;;  %v7199_v54 = vadd.f32 %v6954_v58, %v6410_v46  ;;  %v6998_v36 = vpop.f32.mrf.mxu1  ;;  %v11107_v46 = vld [vmem:[#allocation11_spill] sm:$0xff]  ;;  %v11108_v33 = vld [vmem:[#allocation18_spill] sm:$0xff] }
 0x30b   : > { %v7271_v17 = vmax.f32 %v7239_v24, 0.0  ;;  %v7201_v13 = vadd.f32 %v6998_v36, %v6412_v31  ;;  %v8867_v35 = vpop.f32.mrf.mxu0  ;;  %v6420_v50 = vadd.f32 %v11108_v33, %v11107_v46 }
 0x30c   : > { %7301 = vst [vmem:[%s10906_s6 + $0xa0] sm:$0xff] %v7269_v19  ;;  %v7238_v42 = vadd.f32 %v10894_v32, %v7199_v54  ;;  %v8873_v63 = vpop.f32.mrf.mxu1 }
 0x30d   : > { %7303 = vst [vmem:[%s10906_s6 + $0xb0] sm:$0xff] %v7271_v17  ;;  %v7240_v4 = vadd.f32 %v10894_v32, %v7201_v13  ;;  %v7039_v21 = vpop.f32.mrf.mxu0 }
 0x30e   : > { %v7270_v11 = vmax.f32 %v7238_v42, 0.0  ;;  %v7202_v22 = vadd.f32 %v7039_v21, %v6413_v12  ;;  %v7083_v49 = vpop.f32.mrf.mxu1 }
 0x30f   : > { %v7272_v23 = vmax.f32 %v7240_v4, 0.0  ;;  %v7204_v59 = vadd.f32 %v7083_v49, %v6415_v52  ;;  %v8878_v48 = vpop.f32.mrf.mxu0 }
 0x310   : > { %7302 = vst [vmem:[%s10906_s6 + $0xa8] sm:$0xff] %v7270_v11  ;;  %v7241_v16 = vadd.f32 %v10894_v32, %v7202_v22  ;;  %v8884_v40 = vpop.f32.mrf.mxu1 }
 0x311   : > { %7304 = vst [vmem:[%s10906_s6 + $0xb8] sm:$0xff] %v7272_v23  ;;  %v7243_v1 = vadd.f32 %v10894_v32, %v7204_v59  ;;  %v7042_v5 = vpop.f32.mrf.mxu0 }
 0x312   : > { %v7273_v27 = vmax.f32 %v7241_v16, 0.0  ;;  %v7203_v45 = vadd.f32 %v7042_v5, %v6414_v51  ;;  %v7086_v41 = vpop.f32.mrf.mxu1 }
 0x313   : > { %v7275_v2 = vmax.f32 %v7243_v1, 0.0  ;;  %v7205_v37 = vadd.f32 %v7086_v41, %v6416_v15  ;;  %v8879_v62 = vpop.f32.mrf.mxu0 }
 0x314   : > { %7305 = vst [vmem:[%s10906_s6 + $0xc0] sm:$0xff] %v7273_v27  ;;  %v7242_v53 = vadd.f32 %v10894_v32, %v7203_v45  ;;  %v8885_v38 = vpop.f32.mrf.mxu1 }
 0x315   : > { %7307 = vst [vmem:[%s10906_s6 + $0xd0] sm:$0xff] %v7275_v2  ;;  %v7244_v55 = vadd.f32 %v10894_v32, %v7205_v37  ;;  %v7127_v25 = vpop.f32.mrf.mxu0 }
 0x316   : > { %v7274_v34 = vmax.f32 %v7242_v53, 0.0  ;;  %v7206_v47 = vadd.f32 %v7127_v25, %v6417_v0  ;;  %v7171_v30 = vpop.f32.mrf.mxu1 }
 0x317   : > { %v7276_v28 = vmax.f32 %v7244_v55, 0.0  ;;  %v7208_v61 = vadd.f32 %v7171_v30, %v6419_v60  ;;  %v8890_v44 = vpop.f32.mrf.mxu0 }
 0x318   : > { %7306 = vst [vmem:[%s10906_s6 + $0xc8] sm:$0xff] %v7274_v34  ;;  %v7245_v10 = vadd.f32 %v10894_v32, %v7206_v47  ;;  %v8896_v3 = vpop.f32.mrf.mxu1 }
 0x319   : > { %7308 = vst [vmem:[%s10906_s6 + $0xd8] sm:$0xff] %v7276_v28  ;;  %v7247_v31 = vadd.f32 %v10894_v32, %v7208_v61  ;;  %v7130_v24 = vpop.f32.mrf.mxu0 }
 0x31a   : > { %v7277_v58 = vmax.f32 %v7245_v10, 0.0  ;;  %v7207_v19 = vadd.f32 %v7130_v24, %v6418_v14  ;;  %v7174_v54 = vpop.f32.mrf.mxu1 }
 0x31b   : > { %v7279_v36 = vmax.f32 %v7247_v31, 0.0  ;;  %v7209_v17 = vadd.f32 %v7174_v54, %v6420_v50  ;;  %v8891_v13 = vpop.f32.mrf.mxu0 }
 0x31c   : > { %7309 = vst [vmem:[%s10906_s6 + $0xe0] sm:$0xff] %v7277_v58  ;;  %v7246_v35 = vadd.f32 %v10894_v32, %v7207_v19  ;;  %v8897_v12 = vpop.f32.mrf.mxu1 }
 0x31d   : > { %7311 = vst [vmem:[%s10906_s6 + $0xf0] sm:$0xff] %v7279_v36  ;;  %v7248_v42 = vadd.f32 %v10894_v32, %v7209_v17 }
 0x31e   : > { %v7278_v63 = vmax.f32 %v7246_v35, 0.0 }
 0x31f   : > { %v7280_v57 = vmax.f32 %v7248_v42, 0.0 }
 0x320   : > { %7310 = vst [vmem:[%s10906_s6 + $0xe8] sm:$0xff] %v7278_v63 }
 0x321   : > { %7312 = vst [vmem:[%s10906_s6 + $0xf8] sm:$0xff] %v7280_v57 }
 0x322   : > { %8955 = shalt.err (!%p8952_p3)
}
 0x323   : > { %s8956_s25 = scalar_lea.hbm %s11027_s11, 4096  ;;  %s8960_s28 = scalar_lea.hbm %s11078_s3, 8192 }
 0x324   : > { %p8957_p4 = scmp.ne.s32.totalorder %s11027_s11, %s8956_s25  ;;  %p8961_p9 = scmp.lt.s32.totalorder %s11027_s11, %s11078_s3 }
 0x325   : > { %p8962_p10 = scmp.lt.s32.totalorder %s8960_s28, %s8956_s25 }
 0x326   : > { %p8958_p7 = pnand %p8957_p4, %p9067_p5 }
 0x327   : > { %p8963_p11 = por %p8962_p10, %p8961_p9 }
 0x328   : > { %p8959_p8 = pneg %p8958_p7 }
 0x32a   : > { %p8964_p12 = pnand %p8963_p11, %p8959_p8 }
 0x32c   : > { %8967 = shalt.err (!%p8964_p12)
}
 0x32d   : > { %s9007_s4 = smov 128   ;;  %s9008_s5 = smov 8  }
 0x32e   : > { %8899 = dma.vmem_to_hbm [thread:$0]  (%p9067_p5), %s11029_s8, 4096, %s11027_s11, %s11035_s16, %s9007_s4, %s9007_s4, %s9008_s5  }
 0x32f PF: > { %p8905_p13 = scmp.ge.s32.totalorder %s9002_s15, 2  ;;  %s7342_s6 = sand.u32 1, %s8990_s12  }
 0x330   : > { %s7343_s7 = scalar_lea.sflag [#allocation3], %s7342_s6 }
 0x331   : > { %p8902_p0 = pnand %p8905_p13, %p9071_p6 }
 0x333   : > { %p8903_p1 = pneg %p8902_p0 }
 0x335   : > { %8985 = dma.done.wait (%p8903_p1), %s7343_s7, 4096  }
 0x336   : > { %8987 = vsyncadd (%p8903_p1), %s7343_s7, 4294963200  ;;  %p13_p2 = scmp.ge.s32.totalorder %s9054_s18, 4   ;;  %s11109_s12 = smov %s8994_s13 }
 0x337   : > { %s11110_s13 = smov %s8998_s14  ;;  %s11111_s14 = smov %s9065_s21 }
 0x338   : > { %s11112_s15 = smov %s9054_s18  ;;  %15 = sbr.rel (!%p13_p2) target bundleno = 3 (0x3), region = 77 }
 0x33d   :  { %7348 = vsyncpa [#allocation3], 1 }
 0x33e   :  { %7350 = vsyncpa [#allocation3 + $0x1], 1 }

</bundles_post_ra>
